<compile_context>
chip_gen: v5e
topology: v5e:2x2
jax: 0.10.0
libtpu: 0.0.40
codegen_flags: <defaults>
</compile_context>

<pallas_src>
import functools

import jax
import jax.numpy as jnp
from jax.experimental import pallas as pl
from jax.experimental.pallas import tpu as pltpu


def _round_up(x, m):
    return (x + m - 1) // m * m


def gcn_agg_kernel(a_ref, dr_ref, y_ref, b_ref, o_ref, acc_ref, *, activation):
    """One grid step of: act(dinv_row * (A_hat @ Y) + b), Y precomputed in XLA.

    Grid = (row tiles of A, column/reduction tiles of A).  The output block is
    resident across the reduction axis; acc_ref is the f32 accumulator.
    """
    k = pl.program_id(1)

    @pl.when(k == 0)
    def _init():
        acc_ref[...] = jnp.zeros_like(acc_ref)

    # Pure A-streaming GEMM: bf16 operands, f32 accumulate on the MXU.
    acc_ref[...] += jnp.dot(a_ref[...], y_ref[...],
                            preferred_element_type=jnp.float32)

    @pl.when(k == pl.num_programs(1) - 1)
    def _finalize():
        z = dr_ref[...] * acc_ref[...] + b_ref[...]
        if activation == "relu":
            out = jnp.maximum(z, 0.0)
        elif activation == "log_softmax" and z.shape[-1] == 2:
            # 2-class specialization: lane slices + EUP exp/log.
            z0 = z[:, 0:1]
            z1 = z[:, 1:2]
            m = jnp.maximum(z0, z1)
            lse = m + jnp.log(jnp.exp(z0 - m) + jnp.exp(z1 - m))
            out = z - lse
        elif activation == "log_softmax":
            m = jnp.max(z, axis=-1, keepdims=True)
            zs = z - m
            out = zs - jnp.log(jnp.sum(jnp.exp(zs), axis=-1, keepdims=True))
        else:
            out = z
        o_ref[...] = out.astype(o_ref.dtype)


def _gcn_aggregate(a_hat_bf16, dinv2, y_bf16, b, *, activation,
                   tile_m, tile_k, out_dtype):
    n_pad = a_hat_bf16.shape[0]
    fout = y_bf16.shape[1]
    grid = (n_pad // tile_m, n_pad // tile_k)

    return pl.pallas_call(
        functools.partial(gcn_agg_kernel, activation=activation),
        out_shape=jax.ShapeDtypeStruct((n_pad, fout), out_dtype),
        grid_spec=pltpu.PrefetchScalarGridSpec(
            num_scalar_prefetch=0,
            grid=grid,
            in_specs=[
                pl.BlockSpec((tile_m, tile_k), lambda i, k: (i, k)),  # A_hat tile
                pl.BlockSpec((tile_m, 1), lambda i, k: (i, 0)),       # dinv rows
                pl.BlockSpec((tile_k, fout), lambda i, k: (k, 0)),    # Y rows
                pl.BlockSpec((1, fout), lambda i, k: (0, 0)),         # bias
            ],
            out_specs=pl.BlockSpec((tile_m, fout), lambda i, k: (i, 0)),
            scratch_shapes=[pltpu.VMEM((tile_m, fout), jnp.float32)],
        ),
        compiler_params=pltpu.CompilerParams(
            dimension_semantics=("parallel", "arbitrary"),
            vmem_limit_bytes=32 * 1024 * 1024,
        ),
    )(a_hat_bf16, dinv2, y_bf16, b)


@jax.jit
def gnn_forward(x, edge_index, w1, b1, w2, b2):
    """x: [N, 3] f32, edge_index: [2, E] int32 (row 0 = source, row 1 = target)."""
    n = x.shape[0]
    # Lane-aligned node axis; >= 512 so tile_m=256 gives >= 2 row tiles
    # (v7x dual-TensorCore sharding) and the reduction tile can be large.
    n_pad = _round_up(max(n, 512), 512)
    tile_m = 256
    tile_k = 1024 if n_pad % 1024 == 0 else 512

    # --- fused XLA glue ------------------------------------------------------
    row, col = edge_index[0], edge_index[1]
    diag = jnp.arange(n, dtype=edge_index.dtype)
    src = jnp.concatenate([row, diag])          # self-loops folded into scatter
    dst = jnp.concatenate([col, diag])
    # A_hat built directly in bf16 (entries are small integer edge counts,
    # exact in bf16 up to 256; padded rows/cols stay zero).
    a_hat = jnp.zeros((n_pad, n_pad), jnp.bfloat16).at[dst, src].add(
        jnp.ones(dst.shape, jnp.bfloat16))

    # deg via a length-N scatter (no dense N^2 reduction): in-edges + self-loop.
    deg = jnp.ones((n,), jnp.float32).at[col].add(1.0)
    dinv = jax.lax.rsqrt(deg)                   # deg >= 1 always
    dinv2 = jnp.pad(dinv, (0, n_pad - n))[:, None]

    x_pad = jnp.pad(x, ((0, n_pad - n), (0, 0)))

    # Hoisted feature transforms (tiny N x F dense matmuls stay in XLA).
    y1 = (dinv2 * (x_pad @ w1)).astype(jnp.bfloat16)

    # Layer 1: GCNConv(3 -> 16) + ReLU, output in bf16.
    h = _gcn_aggregate(a_hat, dinv2, y1, b1, activation="relu",
                       tile_m=tile_m, tile_k=tile_k, out_dtype=jnp.bfloat16)

    y2 = (dinv2 * (h.astype(jnp.float32) @ w2)).astype(jnp.bfloat16)

    # Layer 2: GCNConv(16 -> 2) + log_softmax(dim=1).
    out = _gcn_aggregate(a_hat, dinv2, y2, b2, activation="log_softmax",
                         tile_m=tile_m, tile_k=tile_k, out_dtype=jnp.float32)
    return out[:n]


def gnn_reference(x, edge_index, w1, b1, w2, b2):
    """Pure-JAX f32 reference matching PyG GCNConv defaults."""
    n = x.shape[0]
    row, col = edge_index[0], edge_index[1]
    a_hat = jnp.zeros((n, n), jnp.float32).at[col, row].add(1.0)
    a_hat = a_hat + jnp.eye(n, dtype=jnp.float32)
    deg = jnp.sum(a_hat, axis=1)
    dinv = jnp.where(deg > 0, jax.lax.rsqrt(deg), 0.0)
    a_norm = a_hat * dinv[:, None] * dinv[None, :]
    h = jnp.maximum(a_norm @ (x @ w1) + b1, 0.0)
    z = a_norm @ (h @ w2) + b2
    return jax.nn.log_softmax(z, axis=1)


def glorot(key, shape):
    fan_in, fan_out = shape
    limit = (6.0 / (fan_in + fan_out)) ** 0.5
    return jax.random.uniform(key, shape, jnp.float32, -limit, limit)


if __name__ == "__main__":
    key = jax.random.PRNGKey(0)
    k_x, k_w1, k_w2 = jax.random.split(key, 3)

    N, F_IN, F_HID, F_OUT = 8, 3, 16, 2

    # Deterministic parameters (Glorot weights, zero bias).
    w1 = glorot(k_w1, (F_IN, F_HID))
    b1 = jnp.zeros((1, F_HID), jnp.float32)
    w2 = glorot(k_w2, (F_HID, F_OUT))
    b2 = jnp.zeros((1, F_OUT), jnp.float32)

    # Deterministic inputs: node features + a bidirectional ring graph.
    x = jax.random.normal(k_x, (N, F_IN), jnp.float32)
    src = jnp.arange(N, dtype=jnp.int32)
    dst = (src + 1) % N
    edge_index = jnp.stack(
        [jnp.concatenate([src, dst]), jnp.concatenate([dst, src])], axis=0
    )

    out = gnn_forward(x, edge_index, w1, b1, w2, b2)
    jax.block_until_ready(out)

    # Sanity: shape, finiteness, rows exponentiate-sum to 1, matches f32 ref
    # (loose tolerance: aggregation MXU operands are bf16 by design).
    assert out.shape == (N, F_OUT)
    assert bool(jnp.all(jnp.isfinite(out)))
    assert jnp.allclose(jnp.sum(jnp.exp(out), axis=1), 1.0, atol=1e-4)
    ref = gnn_reference(x, edge_index, w1, b1, w2, b2)
    assert jnp.allclose(out, ref, atol=5e-2), (out, ref)

    print("KERNEL_OK")
</pallas_src>

<mosaic_0001>
module attributes {stable_mosaic.version = 11 : i64} {
  func.func @gcn_agg_kernel(%arg0: i32, %arg1: i32, %arg2: memref<256x512xbf16, #tpu.memory_space<vmem>>, %arg3: memref<256x1xf32, #tpu.memory_space<vmem>>, %arg4: memref<512x16xbf16, #tpu.memory_space<vmem>>, %arg5: memref<1x16xf32, #tpu.memory_space<vmem>>, %arg6: memref<256x16xbf16, #tpu.memory_space<vmem>>, %arg7: memref<256x16xf32, #tpu.memory_space<vmem>>) attributes {dimension_semantics = [#tpu.dimension_semantics<parallel>, #tpu.dimension_semantics<arbitrary>], iteration_bounds = array<i64: 2, 1>, scalar_prefetch = 0 : i64, scratch_operands = 1 : i64, tpu.core_type = #tpu.core_type<tc>, window_params = [{transform_indices = @transform_0, window_bounds = array<i64: 256, 512>}, {transform_indices = @transform_1, window_bounds = array<i64: 256, 1>}, {transform_indices = @transform_2, window_bounds = array<i64: 512, 16>}, {pipeline_mode = #tpu.pipeline_mode<synchronous>, transform_indices = @transform_3, window_bounds = array<i64: 1, 16>}, {transform_indices = @transform_4, window_bounds = array<i64: 256, 16>}]} {
    %c0_i32 = arith.constant 0 : i32
    %0 = arith.cmpi eq, %arg1, %c0_i32 : i32
    %1 = arith.extui %0 : i1 to i32
    %c0_i32_0 = arith.constant 0 : i32
    %2 = arith.cmpi ne, %1, %c0_i32_0 : i32
    scf.if %2 {
      %cst_10 = arith.constant 0.000000e+00 : f32
      %12 = vector.broadcast %cst_10 : f32 to vector<256x16xf32>
      %c0_11 = arith.constant 0 : index
      %c0_12 = arith.constant 0 : index
      %13 = vector.load %arg7[%c0_11, %c0_12] : memref<256x16xf32, #tpu.memory_space<vmem>>, vector<256x16xf32>
      tpu.vector_store %arg7[%c0_11, %c0_12], %12 {strides = array<i32>} : memref<256x16xf32, #tpu.memory_space<vmem>>, vector<256x16xf32>,
    } else {
    }
    %c0 = arith.constant 0 : index
    %c0_1 = arith.constant 0 : index
    %3 = vector.load %arg7[%c0, %c0_1] : memref<256x16xf32, #tpu.memory_space<vmem>>, vector<256x16xf32>
    %c0_2 = arith.constant 0 : index
    %c0_3 = arith.constant 0 : index
    %4 = vector.load %arg2[%c0_2, %c0_3] : memref<256x512xbf16, #tpu.memory_space<vmem>>, vector<256x512xbf16>
    %c0_4 = arith.constant 0 : index
    %c0_5 = arith.constant 0 : index
    %5 = vector.load %arg4[%c0_4, %c0_5] : memref<512x16xbf16, #tpu.memory_space<vmem>>, vector<512x16xbf16>
    %cst = arith.constant dense<0.000000e+00> : vector<256x16xf32>
    %6 = tpu.matmul %4, %5, %cst {dimension_numbers = #tpu.dot_dimension_numbers<[1], [0], [0], [1], [0, 0, 1, 1], [], []>} : vector<256x512xbf16>, vector<512x16xbf16>, vector<256x16xf32> -> vector<256x16xf32>
    %7 = arith.addf %3, %6 : vector<256x16xf32>
    %c0_6 = arith.constant 0 : index
    %c0_7 = arith.constant 0 : index
    %8 = vector.load %arg7[%c0_6, %c0_7] : memref<256x16xf32, #tpu.memory_space<vmem>>, vector<256x16xf32>
    tpu.vector_store %arg7[%c0_6, %c0_7], %7 {strides = array<i32>} : memref<256x16xf32, #tpu.memory_space<vmem>>, vector<256x16xf32>,
    %c0_i32_8 = arith.constant 0 : i32
    %9 = arith.cmpi eq, %arg1, %c0_i32_8 : i32
    %10 = arith.extui %9 : i1 to i32
    %c0_i32_9 = arith.constant 0 : i32
    %11 = arith.cmpi ne, %10, %c0_i32_9 : i32
    scf.if %11 {
      %c0_10 = arith.constant 0 : index
      %c0_11 = arith.constant 0 : index
      %12 = vector.load %arg3[%c0_10, %c0_11] : memref<256x1xf32, #tpu.memory_space<vmem>>, vector<256x1xf32>
      %c0_12 = arith.constant 0 : index
      %c0_13 = arith.constant 0 : index
      %13 = vector.load %arg7[%c0_12, %c0_13] : memref<256x16xf32, #tpu.memory_space<vmem>>, vector<256x16xf32>
      %14 = vector.broadcast %12 : vector<256x1xf32> to vector<256x16xf32>
      %15 = arith.mulf %14, %13 : vector<256x16xf32>
      %c0_14 = arith.constant 0 : index
      %c0_15 = arith.constant 0 : index
      %16 = vector.load %arg5[%c0_14, %c0_15] : memref<1x16xf32, #tpu.memory_space<vmem>>, vector<1x16xf32>
      %17 = vector.broadcast %16 : vector<1x16xf32> to vector<256x16xf32>
      %18 = arith.addf %15, %17 : vector<256x16xf32>
      %cst_16 = arith.constant 0.000000e+00 : f32
      %19 = vector.broadcast %cst_16 : f32 to vector<256x16xf32>
      %20 = arith.maximumf %18, %19 : vector<256x16xf32>
      %21 = arith.truncf %20 : vector<256x16xf32> to vector<256x16xbf16>
      %c0_17 = arith.constant 0 : index
      %c0_18 = arith.constant 0 : index
      %22 = vector.load %arg6[%c0_17, %c0_18] : memref<256x16xbf16, #tpu.memory_space<vmem>>, vector<256x16xbf16>
      tpu.vector_store %arg6[%c0_17, %c0_18], %21 {strides = array<i32>} : memref<256x16xbf16, #tpu.memory_space<vmem>>, vector<256x16xbf16>,
    } else {
    }
    return
  }
  func.func @transform_0(%arg0: i32, %arg1: i32) -> (i32, i32) {
    %c0_i32 = arith.constant 0 : i32
    return %arg0, %arg1 : i32, i32
  }
  func.func @transform_1(%arg0: i32, %arg1: i32) -> (i32, i32) {
    %c0_i32 = arith.constant 0 : i32
    %c0_i32_0 = arith.constant 0 : i32
    return %arg0, %c0_i32 : i32, i32
  }
  func.func @transform_2(%arg0: i32, %arg1: i32) -> (i32, i32) {
    %c0_i32 = arith.constant 0 : i32
    %c0_i32_0 = arith.constant 0 : i32
    return %arg1, %c0_i32 : i32, i32
  }
  func.func @transform_3(%arg0: i32, %arg1: i32) -> (i32, i32) {
    %c0_i32 = arith.constant 0 : i32
    %c0_i32_0 = arith.constant 0 : i32
    %c0_i32_1 = arith.constant 0 : i32
    return %c0_i32, %c0_i32_0 : i32, i32
  }
  func.func @transform_4(%arg0: i32, %arg1: i32) -> (i32, i32) {
    %c0_i32 = arith.constant 0 : i32
    %c0_i32_0 = arith.constant 0 : i32
    return %arg0, %c0_i32 : i32, i32
  }
}

module attributes {stable_mosaic.version = 11 : i64} {
  func.func @gcn_agg_kernel(%arg0: i32, %arg1: i32, %arg2: memref<256x512xbf16, #tpu.memory_space<vmem>>, %arg3: memref<256x1xf32, #tpu.memory_space<vmem>>, %arg4: memref<512x2xbf16, #tpu.memory_space<vmem>>, %arg5: memref<1x2xf32, #tpu.memory_space<vmem>>, %arg6: memref<256x2xf32, #tpu.memory_space<vmem>>, %arg7: memref<256x2xf32, #tpu.memory_space<vmem>>) attributes {dimension_semantics = [#tpu.dimension_semantics<parallel>, #tpu.dimension_semantics<arbitrary>], iteration_bounds = array<i64: 2, 1>, scalar_prefetch = 0 : i64, scratch_operands = 1 : i64, tpu.core_type = #tpu.core_type<tc>, window_params = [{transform_indices = @transform_0, window_bounds = array<i64: 256, 512>}, {transform_indices = @transform_1, window_bounds = array<i64: 256, 1>}, {transform_indices = @transform_2, window_bounds = array<i64: 512, 2>}, {pipeline_mode = #tpu.pipeline_mode<synchronous>, transform_indices = @transform_3, window_bounds = array<i64: 1, 2>}, {transform_indices = @transform_4, window_bounds = array<i64: 256, 2>}]} {
    %c0_i32 = arith.constant 0 : i32
    %0 = arith.cmpi eq, %arg1, %c0_i32 : i32
    %1 = arith.extui %0 : i1 to i32
    %c0_i32_0 = arith.constant 0 : i32
    %2 = arith.cmpi ne, %1, %c0_i32_0 : i32
    scf.if %2 {
      %cst_10 = arith.constant 0.000000e+00 : f32
      %12 = vector.broadcast %cst_10 : f32 to vector<256x2xf32>
      %c0_11 = arith.constant 0 : index
      %c0_12 = arith.constant 0 : index
      %13 = vector.load %arg7[%c0_11, %c0_12] : memref<256x2xf32, #tpu.memory_space<vmem>>, vector<256x2xf32>
      tpu.vector_store %arg7[%c0_11, %c0_12], %12 {strides = array<i32>} : memref<256x2xf32, #tpu.memory_space<vmem>>, vector<256x2xf32>,
    } else {
    }
    %c0 = arith.constant 0 : index
    %c0_1 = arith.constant 0 : index
    %3 = vector.load %arg7[%c0, %c0_1] : memref<256x2xf32, #tpu.memory_space<vmem>>, vector<256x2xf32>
    %c0_2 = arith.constant 0 : index
    %c0_3 = arith.constant 0 : index
    %4 = vector.load %arg2[%c0_2, %c0_3] : memref<256x512xbf16, #tpu.memory_space<vmem>>, vector<256x512xbf16>
    %c0_4 = arith.constant 0 : index
    %c0_5 = arith.constant 0 : index
    %5 = vector.load %arg4[%c0_4, %c0_5] : memref<512x2xbf16, #tpu.memory_space<vmem>>, vector<512x2xbf16>
    %cst = arith.constant dense<0.000000e+00> : vector<256x2xf32>
    %6 = tpu.matmul %4, %5, %cst {dimension_numbers = #tpu.dot_dimension_numbers<[1], [0], [0], [1], [0, 0, 1, 1], [], []>} : vector<256x512xbf16>, vector<512x2xbf16>, vector<256x2xf32> -> vector<256x2xf32>
    %7 = arith.addf %3, %6 : vector<256x2xf32>
    %c0_6 = arith.constant 0 : index
    %c0_7 = arith.constant 0 : index
    %8 = vector.load %arg7[%c0_6, %c0_7] : memref<256x2xf32, #tpu.memory_space<vmem>>, vector<256x2xf32>
    tpu.vector_store %arg7[%c0_6, %c0_7], %7 {strides = array<i32>} : memref<256x2xf32, #tpu.memory_space<vmem>>, vector<256x2xf32>,
    %c0_i32_8 = arith.constant 0 : i32
    %9 = arith.cmpi eq, %arg1, %c0_i32_8 : i32
    %10 = arith.extui %9 : i1 to i32
    %c0_i32_9 = arith.constant 0 : i32
    %11 = arith.cmpi ne, %10, %c0_i32_9 : i32
    scf.if %11 {
      %c0_10 = arith.constant 0 : index
      %c0_11 = arith.constant 0 : index
      %12 = vector.load %arg3[%c0_10, %c0_11] : memref<256x1xf32, #tpu.memory_space<vmem>>, vector<256x1xf32>
      %c0_12 = arith.constant 0 : index
      %c0_13 = arith.constant 0 : index
      %13 = vector.load %arg7[%c0_12, %c0_13] : memref<256x2xf32, #tpu.memory_space<vmem>>, vector<256x2xf32>
      %14 = vector.broadcast %12 : vector<256x1xf32> to vector<256x2xf32>
      %15 = arith.mulf %14, %13 : vector<256x2xf32>
      %c0_14 = arith.constant 0 : index
      %c0_15 = arith.constant 0 : index
      %16 = vector.load %arg5[%c0_14, %c0_15] : memref<1x2xf32, #tpu.memory_space<vmem>>, vector<1x2xf32>
      %17 = vector.broadcast %16 : vector<1x2xf32> to vector<256x2xf32>
      %18 = arith.addf %15, %17 : vector<256x2xf32>
      %19 = vector.extract_strided_slice %18 {offsets = [0, 0], sizes = [256, 1], strides = [1, 1]} : vector<256x2xf32> to vector<256x1xf32>
      %20 = vector.extract_strided_slice %18 {offsets = [0, 1], sizes = [256, 1], strides = [1, 1]} : vector<256x2xf32> to vector<256x1xf32>
      %21 = arith.maximumf %19, %20 : vector<256x1xf32>
      %22 = arith.subf %19, %21 : vector<256x1xf32>
      %23 = math.exp %22 : vector<256x1xf32>
      %24 = arith.subf %20, %21 : vector<256x1xf32>
      %25 = math.exp %24 : vector<256x1xf32>
      %26 = arith.addf %23, %25 : vector<256x1xf32>
      %27 = math.log %26 : vector<256x1xf32>
      %28 = arith.addf %21, %27 : vector<256x1xf32>
      %29 = vector.broadcast %28 : vector<256x1xf32> to vector<256x2xf32>
      %30 = arith.subf %18, %29 : vector<256x2xf32>
      %c0_16 = arith.constant 0 : index
      %c0_17 = arith.constant 0 : index
      %31 = vector.load %arg6[%c0_16, %c0_17] : memref<256x2xf32, #tpu.memory_space<vmem>>, vector<256x2xf32>
      tpu.vector_store %arg6[%c0_16, %c0_17], %30 {strides = array<i32>} : memref<256x2xf32, #tpu.memory_space<vmem>>, vector<256x2xf32>,
    } else {
    }
    return
  }
  func.func @transform_0(%arg0: i32, %arg1: i32) -> (i32, i32) {
    %c0_i32 = arith.constant 0 : i32
    return %arg0, %arg1 : i32, i32
  }
  func.func @transform_1(%arg0: i32, %arg1: i32) -> (i32, i32) {
    %c0_i32 = arith.constant 0 : i32
    %c0_i32_0 = arith.constant 0 : i32
    return %arg0, %c0_i32 : i32, i32
  }
  func.func @transform_2(%arg0: i32, %arg1: i32) -> (i32, i32) {
    %c0_i32 = arith.constant 0 : i32
    %c0_i32_0 = arith.constant 0 : i32
    return %arg1, %c0_i32 : i32, i32
  }
  func.func @transform_3(%arg0: i32, %arg1: i32) -> (i32, i32) {
    %c0_i32 = arith.constant 0 : i32
    %c0_i32_0 = arith.constant 0 : i32
    %c0_i32_1 = arith.constant 0 : i32
    return %c0_i32, %c0_i32_0 : i32, i32
  }
  func.func @transform_4(%arg0: i32, %arg1: i32) -> (i32, i32) {
    %c0_i32 = arith.constant 0 : i32
    %c0_i32_0 = arith.constant 0 : i32
    return %arg0, %c0_i32 : i32, i32
  }
}

</mosaic_0001>

<bundles_post_ra>
// kernel: gnn_forward.2
= control target key start
LH: loop header
LB: loop body
LE: loop exit
PB: predicated region body
PF: predicated region fallthrough
CT: control target
= control target key end

     0   :  { %s2474_s15 = smov 0   ;;  %s2476_s16 = smov 0   ;;  %s2982_s0 = inlined_call_operand.vmem [shape: bf16[512,512], index: 0, kind: input, shape index: {}]   ;;  %s2983_s1 = inlined_call_operand.vmem [shape: f32[512,1], index: 1, kind: input, shape index: {}]   ;;  %s2984_s2 = inlined_call_operand.vmem [shape: bf16[512,16], index: 2, kind: input, shape index: {}]   ;;  %s2985_s3 = inlined_call_operand.vmem [shape: f32[1,16], index: 3, kind: input, shape index: {}]   ;;  %s2986_s4 = inlined_call_operand.vmem [shape: bf16[512,16], index: 4, kind: output, shape index: {}]  }
   0x1   :  { %s2478_s17 = smov 0  }
   0x2 LB: > { %s26_s18 = sadd.s32 1, %s2441_s16  ;;  %p1901_p0 = scmp.ge.s32.totalorder %s2445_s17, 1  ;;  %s2445_s17 = sphi %s2478_s17, %s14_s17   ;;  %s2441_s16 = sphi %s2476_s16, %s2988_s16   ;;  %s2437_s15 = sphi %s2474_s15, %s2987_s15  }
   0x3   : > { %p28_p1 = scmp.ge.s32.totalorder %s26_s18, 2  ;;  %p205_p2 = scmp.lt.s32.totalorder %s2445_s17, 3 }
   0x5   : > { %s2990_s18 = smov (%p28_p1, %s26_s18), 0  ;;  %p206_p3 = pnand %p1901_p0, %p205_p2 }
   0x6   : > { %s1902_s9 = sshll.u32 (!%p206_p3), %s2437_s15, 5 }
   0x7   : > { %209 = sbr.rel (%p206_p3) target bundleno = 450 (0x1c2), region = 36  ;;  %p248_p4 = scmp.lt.s32.totalorder (!%p206_p3), %s1902_s9, 63 }
   0xc   : > { %v2367_v0 = vld [vmem:[%s2984_s2 + $0x38] sm:$0xff]  ;;  %v2366_v4 = vld [vmem:[%s2984_s2 + $0x30] sm:$0xff]  ;;  %v2365_v8 = vld [vmem:[%s2984_s2 + $0x28] sm:$0xff]  ;;  %s2992_s9 = smov (!%p248_p4, %s1902_s9), 63  ;;  %v2447_v25 = vmov 0   ;;  %vm280_vm0 = vcmask 130048  }
   0xd   : > { %v2375_v1 = vld [vmem:[%s2984_s2 + $0x78] sm:$0xff]  ;;  %985 = vmatpush.bf16.msra.mxu0 %v2367_v0  ;;  %v2374_v5 = vld [vmem:[%s2984_s2 + $0x70] sm:$0xff]  ;;  %v2373_v9 = vld [vmem:[%s2984_s2 + $0x68] sm:$0xff]  ;;  %s1906_s29 = sshll.u32 %s2992_s9, 3  ;;  %s2295_s27 = sshll.u32 %s2992_s9, 4  ;;  %2418 = vset.pattern.permute.xlu0 %v2447_v25  ;;  %vm1765_vm1 = vcmask 125952  }
   0xe   : > { %v2383_v2 = vld [vmem:[%s2984_s2 + $0xb8] sm:$0xff]  ;;  %1074 = vmatpush.bf16.msra.mxu1 %v2375_v1  ;;  %v2382_v6 = vld [vmem:[%s2984_s2 + $0xb0] sm:$0xff]  ;;  %v2381_v10 = vld [vmem:[%s2984_s2 + $0xa8] sm:$0xff]  ;;  %s2561_s19 = scalar_lea.vmem %s2983_s1, %s1906_s29  ;;  %2419 = vset.pattern.permute.xlu1 %v2447_v25  ;;  %s2586_s8 = scalar_lea.vmem %s2982_s0, %s2295_s27 }
   0xf   : > { %v2391_v3 = vld [vmem:[%s2984_s2 + $0xf8] sm:$0xff]  ;;  %1163 = vmatpush.bf16.msra.mxu2 %v2383_v2  ;;  %v2390_v7 = vld [vmem:[%s2984_s2 + $0xf0] sm:$0xff]  ;;  %v2389_v11 = vld [vmem:[%s2984_s2 + $0xe8] sm:$0xff]  ;;  %2420 = vset.pattern.permute.xlu2 %v2447_v25  ;;  %s1908_s28 = sshll.u32 %s2992_s9, 2 }
  0x10   : > { %1252 = vmatpush.bf16.msra.mxu3 %v2391_v3  ;;  %v2364_v12 = vld [vmem:[%s2984_s2 + $0x20] sm:$0xff]  ;;  %v2363_v16 = vld [vmem:[%s2984_s2 + $0x18] sm:$0xff]  ;;  %v2362_v20 = vld [vmem:[%s2984_s2 + $0x10] sm:$0xff]  ;;  %s2784_s5 = scalar_lea.vmem %s2986_s4, %s1908_s28 }
  0x11   : > { %986 = vmatpush.bf16.msra.mxu0 %v2366_v4  ;;  %v2372_v13 = vld [vmem:[%s2984_s2 + $0x60] sm:$0xff]  ;;  %v2371_v17 = vld [vmem:[%s2984_s2 + $0x58] sm:$0xff]  ;;  %v2370_v21 = vld [vmem:[%s2984_s2 + $0x50] sm:$0xff] }
  0x12   : > { %1075 = vmatpush.bf16.msra.mxu1 %v2374_v5  ;;  %v2380_v14 = vld [vmem:[%s2984_s2 + $0xa0] sm:$0xff]  ;;  %v2379_v18 = vld [vmem:[%s2984_s2 + $0x98] sm:$0xff]  ;;  %v2378_v23 = vld [vmem:[%s2984_s2 + $0x90] sm:$0xff] }
  0x13   : > { %1164 = vmatpush.bf16.msra.mxu2 %v2382_v6  ;;  %v2388_v15 = vld [vmem:[%s2984_s2 + $0xe0] sm:$0xff]  ;;  %v2387_v19 = vld [vmem:[%s2984_s2 + $0xd8] sm:$0xff]  ;;  %v2386_v24 = vld [vmem:[%s2984_s2 + $0xd0] sm:$0xff] }
  0x14   : > { %1253 = vmatpush.bf16.msra.mxu3 %v2390_v7  ;;  %v1409_v22 = vld [vmem:[%s2561_s19] sm:$0xff]  ;;  %v2361_v26 = vld [vmem:[%s2984_s2 + $0x8] sm:$0xff]  ;;  %v2298_v35 = vld [vmem:[%s2586_s8 + $0xc] sm:$0xf0] }
  0x15   : > { %987 = vmatpush.bf16.msra.mxu0 %v2365_v8  ;;  %1475 = vperm.xlu0 %2418, %v1409_v22   ;;  %v2369_v27 = vld [vmem:[%s2984_s2 + $0x48] sm:$0xff]  ;;  %v2360_v30 = vld [vmem:[%s2984_s2] sm:$0xff]  ;;  %v1913_v37 = vld [vmem:[%s2586_s8 + $0x10] sm:$0xf0] }
  0x16   : > { %1076 = vmatpush.bf16.msra.mxu1 %v2373_v9  ;;  %v2377_v28 = vld [vmem:[%s2984_s2 + $0x88] sm:$0xff]  ;;  %v2368_v31 = vld [vmem:[%s2984_s2 + $0x40] sm:$0xff]  ;;  %v2299_v39 = vld [vmem:[%s2586_s8 + $0x14] sm:$0xf0] }
  0x17   : > { %1165 = vmatpush.bf16.msra.mxu2 %v2381_v10  ;;  %v2385_v29 = vld [vmem:[%s2984_s2 + $0xc8] sm:$0xff]  ;;  %v2376_v32 = vld [vmem:[%s2984_s2 + $0x80] sm:$0xff]  ;;  %v1921_v41 = vld [vmem:[%s2586_s8 + $0x18] sm:$0xf0] }
  0x18   : > { %1254 = vmatpush.bf16.msra.mxu3 %v2389_v11  ;;  %v2384_v33 = vld [vmem:[%s2984_s2 + $0xc0] sm:$0xff]  ;;  %v1919_v38 = vld [vmem:[%s2586_s8 + $0x8] sm:$0xf]  ;;  %v2297_v40 = vld [vmem:[%s2586_s8 + $0xc] sm:$0xf] }
  0x19   : > { %988 = vmatpush.bf16.msra.mxu0 %v2364_v12  ;;  %v1911_v34 = vld [vmem:[%s2586_s8] sm:$0xf]  ;;  %v2296_v36 = vld [vmem:[%s2586_s8 + $0x4] sm:$0xf]  ;;  %v1920_v44 = vor.u32 %v2299_v39, %v1919_v38  ;;  %v1924_v45 = vor.u32 %v2297_v40, %v1921_v41  ;;  %v1410_v46 = vld [vmem:[%s2561_s19 + $0x8] sm:$0xff] }
  0x1a   : > { %1077 = vmatpush.bf16.msra.mxu1 %v2372_v13  ;;  %v1912_v42 = vor.u32 %v2298_v35, %v1911_v34  ;;  %v1916_v43 = vor.u32 %v2296_v36, %v1913_v37  ;;  %v1411_v47 = vld [vmem:[%s2561_s19 + $0x10] sm:$0xff]  ;;  %v1927_v48 = vld [vmem:[%s2586_s8 + $0x20] sm:$0xf]  ;;  %v2300_v50 = vld [vmem:[%s2586_s8 + $0x24] sm:$0xf] }
  0x1b   : > { %1166 = vmatpush.bf16.msra.mxu2 %v2380_v14  ;;  %1485 = vperm.xlu1 %2419, %v1411_v47   ;;  %v2302_v49 = vld [vmem:[%s2586_s8 + $0x2c] sm:$0xf0]  ;;  %v1929_v51 = vld [vmem:[%s2586_s8 + $0x30] sm:$0xf0]  ;;  %v1935_v52 = vld [vmem:[%s2586_s8 + $0x28] sm:$0xf] }
  0x1c   : > { %1255 = vmatpush.bf16.msra.mxu3 %v2388_v15  ;;  %v2303_v53 = vld [vmem:[%s2586_s8 + $0x34] sm:$0xf0]  ;;  %v2301_v54 = vld [vmem:[%s2586_s8 + $0x2c] sm:$0xf]  ;;  %v1937_v55 = vld [vmem:[%s2586_s8 + $0x38] sm:$0xf0]  ;;  %v1928_v56 = vor.u32 %v2302_v49, %v1927_v48  ;;  %v1932_v57 = vor.u32 %v2300_v50, %v1929_v51 }
  0x1d   : > { %989 = vmatpush.bf16.msra.mxu0 %v2363_v16  ;;  %1480 = vperm.xlu0 %2418, %v1410_v46   ;;  %v1936_v58 = vor.u32 %v2303_v53, %v1935_v52  ;;  %v1940_v59 = vor.u32 %v2301_v54, %v1937_v55  ;;  %v1412_v60 = vld [vmem:[%s2561_s19 + $0x18] sm:$0xff]  ;;  %v1943_v61 = vld [vmem:[%s2586_s8 + $0x40] sm:$0xf]  ;;  %v2306_v62 = vld [vmem:[%s2586_s8 + $0x4c] sm:$0xf0] }
  0x1e   : > { %1078 = vmatpush.bf16.msra.mxu1 %v2371_v17  ;;  %v2304_v63 = vld [vmem:[%s2586_s8 + $0x44] sm:$0xf]  ;;  %v1945_v0 = vld [vmem:[%s2586_s8 + $0x50] sm:$0xf0]  ;;  %v1951_v1 = vld [vmem:[%s2586_s8 + $0x48] sm:$0xf]  ;;  %v1944_v5 = vor.u32 %v2306_v62, %v1943_v61 }
  0x1f   : > { %1167 = vmatpush.bf16.msra.mxu2 %v2379_v18  ;;  %v2307_v2 = vld [vmem:[%s2586_s8 + $0x54] sm:$0xf0]  ;;  %v2305_v3 = vld [vmem:[%s2586_s8 + $0x4c] sm:$0xf]  ;;  %v1953_v4 = vld [vmem:[%s2586_s8 + $0x58] sm:$0xf0]  ;;  %v1948_v6 = vor.u32 %v2304_v63, %v1945_v0 }
  0x20   : > { %1256 = vmatpush.bf16.msra.mxu3 %v2387_v19  ;;  %v1952_v7 = vor.u32 %v2307_v2, %v1951_v1  ;;  %v1956_v8 = vor.u32 %v2305_v3, %v1953_v4  ;;  %v1415_v9 = vld [vmem:[%s2561_s19 + $0x30] sm:$0xff]  ;;  %v1959_v10 = vld [vmem:[%s2586_s8 + $0x60] sm:$0xf]  ;;  %v2308_v12 = vld [vmem:[%s2586_s8 + $0x64] sm:$0xf]  ;;  %v2448_v1 = vmov 0.0  }
  0x21   : > { %990 = vmatpush.bf16.msra.mxu0 %v2362_v20  ;;  %v2310_v11 = vld [vmem:[%s2586_s8 + $0x6c] sm:$0xf0]  ;;  %v1961_v13 = vld [vmem:[%s2586_s8 + $0x70] sm:$0xf0]  ;;  %v1967_v14 = vld [vmem:[%s2586_s8 + $0x68] sm:$0xf] }
  0x22   : > { %1079 = vmatpush.bf16.msra.mxu1 %v2370_v21  ;;  %v2311_v15 = vld [vmem:[%s2586_s8 + $0x74] sm:$0xf0]  ;;  %v2309_v16 = vld [vmem:[%s2586_s8 + $0x6c] sm:$0xf]  ;;  %v1969_v17 = vld [vmem:[%s2586_s8 + $0x78] sm:$0xf0]  ;;  %v1960_v18 = vor.u32 %v2310_v11, %v1959_v10  ;;  %v1964_v19 = vor.u32 %v2308_v12, %v1961_v13 }
  0x23   : > { %1168 = vmatpush.bf16.msra.mxu2 %v2378_v23  ;;  %1490 = vperm.xlu1 %2419, %v1412_v60   ;;  %v1968_v20 = vor.u32 %v2311_v15, %v1967_v14  ;;  %v1972_v21 = vor.u32 %v2309_v16, %v1969_v17  ;;  %v1413_v22 = vld [vmem:[%s2561_s19 + $0x20] sm:$0xff]  ;;  %v1416_v23 = vld [vmem:[%s2561_s19 + $0x38] sm:$0xff]  ;;  %v1418_v37 = vld [vmem:[%s2561_s19 + $0x48] sm:$0xff]  ;;  %281 = vst.msk [vmem:[#allocation2] sm:$0xff] %vm280_vm0, %v2448_v1 }
  0x24   : > { %1257 = vmatpush.bf16.msra.mxu3 %v2386_v24  ;;  %1495 = vperm.xlu2 %2420, %v1413_v22   ;;  %v1414_v24 = vld [vmem:[%s2561_s19 + $0x28] sm:$0xff]  ;;  %v1975_v25 = vld [vmem:[%s2586_s8 + $0x80] sm:$0xf]  ;;  %v1419_v38 = vld [vmem:[%s2561_s19 + $0x50] sm:$0xff]  ;;  %282 = vst.msk [vmem:[#allocation2 + $0x8] sm:$0xff] %vm280_vm0, %v2448_v1 }
  0x25   : > { %991 = vmatpush.bf16.msra.mxu0 %v2361_v26  ;;  %1505 = vperm.xlu0 %2418, %v1415_v9   ;;  %v2314_v26 = vld [vmem:[%s2586_s8 + $0x8c] sm:$0xf0]  ;;  %v1991_v39 = vld [vmem:[%s2586_s8 + $0xa0] sm:$0xf]  ;;  %v2316_v41 = vld [vmem:[%s2586_s8 + $0xa4] sm:$0xf] }
  0x26   : > { %1080 = vmatpush.bf16.msra.mxu1 %v2369_v27  ;;  %v2312_v27 = vld [vmem:[%s2586_s8 + $0x84] sm:$0xf]  ;;  %v2318_v40 = vld [vmem:[%s2586_s8 + $0xac] sm:$0xf0]  ;;  %v2001_v46 = vld [vmem:[%s2586_s8 + $0xb8] sm:$0xf0] }
  0x27   : > { %1169 = vmatpush.bf16.msra.mxu2 %v2377_v28  ;;  %v1977_v28 = vld [vmem:[%s2586_s8 + $0x90] sm:$0xf0]  ;;  %v1992_v47 = vor.u32 %v2318_v40, %v1991_v39  ;;  %v1417_v51 = vld [vmem:[%s2561_s19 + $0x40] sm:$0xff]  ;;  %v2322_v53 = vld [vmem:[%s2586_s8 + $0xcc] sm:$0xf0]  ;;  %283 = vst.msk [vmem:[#allocation2 + $0x10] sm:$0xff] %vm280_vm0, %v2448_v1 }
  0x28   : > { %1258 = vmatpush.bf16.msra.mxu3 %v2385_v29  ;;  %v1983_v29 = vld [vmem:[%s2586_s8 + $0x88] sm:$0xf]  ;;  %v1980_v34 = vor.u32 %v2312_v27, %v1977_v28  ;;  %v2007_v52 = vld [vmem:[%s2586_s8 + $0xc0] sm:$0xf]  ;;  %v2320_v54 = vld [vmem:[%s2586_s8 + $0xc4] sm:$0xf] }
  0x29   : > { %992 = vmatpush.bf16.msra.mxu0 %v2360_v30  ;;  %v2315_v30 = vld [vmem:[%s2586_s8 + $0x94] sm:$0xf0]  ;;  %v2009_v55 = vld [vmem:[%s2586_s8 + $0xd0] sm:$0xf0]  ;;  %v2008_v60 = vor.u32 %v2322_v53, %v2007_v52  ;;  %v1421_v0 = vld [vmem:[%s2561_s19 + $0x60] sm:$0xff]  ;;  %284 = vst.msk [vmem:[#allocation2 + $0x18] sm:$0xff] %vm280_vm0, %v2448_v1 }
  0x2a   : > { %1081 = vmatpush.bf16.msra.mxu1 %v2368_v31  ;;  %v2313_v31 = vld [vmem:[%s2586_s8 + $0x8c] sm:$0xf]  ;;  %v1984_v35 = vor.u32 %v2315_v30, %v1983_v29  ;;  %v2012_v61 = vor.u32 %v2320_v54, %v2009_v55  ;;  %285 = vst.msk [vmem:[#allocation2 + $0x20] sm:$0xff] %vm280_vm0, %v2448_v1  ;;  %v2023_v2 = vld [vmem:[%s2586_s8 + $0xe0] sm:$0xf]  ;;  %v1420_v15 = vld [vmem:[%s2561_s19 + $0x58] sm:$0xff] }
  0x2b   : > { %1170 = vmatpush.bf16.msra.mxu2 %v2376_v32  ;;  %1510 = vperm.xlu1 %2419, %v1416_v23   ;;  %v1985_v32 = vld [vmem:[%s2586_s8 + $0x98] sm:$0xf0]  ;;  %v2326_v3 = vld [vmem:[%s2586_s8 + $0xec] sm:$0xf0]  ;;  %286 = vst.msk [vmem:[#allocation2 + $0x28] sm:$0xff] %vm280_vm0, %v2448_v1  ;;  %v1422_v4 = vld [vmem:[%s2561_s19 + $0x68] sm:$0xff] }
  0x2c   : > { %1259 = vmatpush.bf16.msra.mxu3 %v2384_v33  ;;  %993 = vmatmul.bf16.vlgmr.msra.gmra.mxu0 %v1912_v42  ;;  %v1976_v33 = vor.u32 %v2314_v26, %v1975_v25  ;;  %v1988_v36 = vor.u32 %v2313_v31, %v1985_v32  ;;  %v1993_v42 = vld [vmem:[%s2586_s8 + $0xb0] sm:$0xf0]  ;;  %287 = vst.msk [vmem:[#allocation2 + $0x30] sm:$0xff] %vm280_vm0, %v2448_v1  ;;  %v2325_v9 = vld [vmem:[%s2586_s8 + $0xec] sm:$0xf]  ;;  %v1425_v31 = vld [vmem:[%s2561_s19 + $0x80] sm:$0xff] }
  0x2d   : > { %1082 = vmatmul.bf16.vlgmr.msra.gmra.mxu1 %v1916_v43  ;;  %1500 = vperm.xlu2 %2420, %v1414_v24   ;;  %v1999_v43 = vld [vmem:[%s2586_s8 + $0xa8] sm:$0xf]  ;;  %v1996_v48 = vor.u32 %v2316_v41, %v1993_v42  ;;  %288 = vst.msk [vmem:[#allocation2 + $0x38] sm:$0xff] %vm280_vm0, %v2448_v1  ;;  %v2033_v10 = vld [vmem:[%s2586_s8 + $0xf8] sm:$0xf0]  ;;  %v2024_v11 = vor.u32 %v2326_v3, %v2023_v2  ;;  %v1423_v42 = vld [vmem:[%s2561_s19 + $0x70] sm:$0xff] }
  0x2e   : > { %1171 = vmatmul.bf16.vlgmr.msra.gmra.mxu2 %v1920_v44  ;;  %1520 = vperm.xlu0 %2418, %v1418_v37   ;;  %v2319_v44 = vld [vmem:[%s2586_s8 + $0xb4] sm:$0xf0]  ;;  %289 = vst.msk [vmem:[#allocation2 + $0x40] sm:$0xff] %vm280_vm0, %v2448_v1  ;;  %v2036_v14 = vor.u32 %v2325_v9, %v2033_v10  ;;  %v2039_v16 = vld [vmem:[%s2586_s8 + $0x100] sm:$0xf]  ;;  %v1430_v2 = vld [vmem:[%s2561_s19 + $0xa8] sm:$0xff] }
  0x2f   : > { %1260 = vmatmul.bf16.vlgmr.msra.gmra.mxu3 %v1924_v45  ;;  %v2317_v45 = vld [vmem:[%s2586_s8 + $0xac] sm:$0xf]  ;;  %v2000_v49 = vor.u32 %v2319_v44, %v1999_v43  ;;  %290 = vst.msk [vmem:[#allocation2 + $0x48] sm:$0xff] %vm280_vm0, %v2448_v1  ;;  %v2330_v17 = vld [vmem:[%s2586_s8 + $0x10c] sm:$0xf0]  ;;  %v1428_v43 = vld [vmem:[%s2561_s19 + $0x98] sm:$0xff] }
  0x30   : > { %v2004_v50 = vor.u32 %v2317_v45, %v2001_v46  ;;  %291 = vst.msk [vmem:[#allocation2 + $0x50] sm:$0xff] %vm280_vm0, %v2448_v1  ;;  %v2331_v22 = vld [vmem:[%s2586_s8 + $0x114] sm:$0xf0]  ;;  %v2329_v23 = vld [vmem:[%s2586_s8 + $0x10c] sm:$0xf]  ;;  %v2040_v25 = vor.u32 %v2330_v17, %v2039_v16  ;;  %v1427_v44 = vld [vmem:[%s2561_s19 + $0x90] sm:$0xff] }
  0x31   : > { %292 = vst.msk [vmem:[#allocation2 + $0x58] sm:$0xff] %vm280_vm0, %v2448_v1  ;;  %v2049_v24 = vld [vmem:[%s2586_s8 + $0x118] sm:$0xf0]  ;;  %v2055_v40 = vld [vmem:[%s2586_s8 + $0x120] sm:$0xf] }
  0x32   : > { %293 = vst.msk [vmem:[#allocation2 + $0x60] sm:$0xff] %vm280_vm0, %v2448_v1  ;;  %v2052_v30 = vor.u32 %v2329_v23, %v2049_v24  ;;  %v2334_v41 = vld [vmem:[%s2586_s8 + $0x12c] sm:$0xf0]  ;;  %v2332_v46 = vld [vmem:[%s2586_s8 + $0x124] sm:$0xf] }
  0x33   : > { %1525 = vperm.xlu1 %2419, %v1419_v38   ;;  %294 = vst.msk [vmem:[#allocation2 + $0x68] sm:$0xff] %vm280_vm0, %v2448_v1  ;;  %v313_v38 = vld [vmem:[#allocation2] sm:$0xff]  ;;  %v2056_v55 = vor.u32 %v2334_v41, %v2055_v40 }
  0x34   : > { %295 = vst.msk [vmem:[#allocation2 + $0x70] sm:$0xff] %vm280_vm0, %v2448_v1  ;;  %v2071_v17 = vld [vmem:[%s2586_s8 + $0x140] sm:$0xf] }
  0x35   : > { %1515 = vperm.xlu2 %2420, %v1417_v51   ;;  %296 = vst.msk [vmem:[#allocation2 + $0x78] sm:$0xff] %vm280_vm0, %v2448_v1  ;;  %v2065_v51 = vld [vmem:[%s2586_s8 + $0x138] sm:$0xf0] }
  0x36   : > { %1535 = vperm.xlu0 %2418, %v1421_v0   ;;  %297 = vst.msk [vmem:[#allocation2 + $0x80] sm:$0xff] %vm280_vm0, %v2448_v1 }
  0x37   : > { %298 = vst.msk [vmem:[#allocation2 + $0x88] sm:$0xff] %vm280_vm0, %v2448_v1 }
  0x38   : > { %299 = vst.msk [vmem:[#allocation2 + $0x90] sm:$0xff] %vm280_vm0, %v2448_v1 }
  0x39   : > { %300 = vst.msk [vmem:[#allocation2 + $0x98] sm:$0xff] %vm280_vm0, %v2448_v1 }
  0x3a   : > { %301 = vst.msk [vmem:[#allocation2 + $0xa0] sm:$0xff] %vm280_vm0, %v2448_v1 }
  0x3b   : > { %1540 = vperm.xlu1 %2419, %v1422_v4   ;;  %302 = vst.msk [vmem:[#allocation2 + $0xa8] sm:$0xff] %vm280_vm0, %v2448_v1 }
  0x3c   : > { %998 = vmatmul.bf16.gmra.mxu0 %v1928_v56  ;;  %v2015_v56 = vld [vmem:[%s2586_s8 + $0xc8] sm:$0xf]  ;;  %303 = vst.msk [vmem:[#allocation2 + $0xb0] sm:$0xff] %vm280_vm0, %v2448_v1 }
  0x3d   : > { %1087 = vmatmul.bf16.gmra.mxu1 %v1932_v57  ;;  %v2323_v57 = vld [vmem:[%s2586_s8 + $0xd4] sm:$0xf0]  ;;  %1530 = vperm.xlu2 %2420, %v1420_v15   ;;  %304 = vst.msk [vmem:[#allocation2 + $0xb8] sm:$0xff] %vm280_vm0, %v2448_v1 }
  0x3e   : > { %1176 = vmatmul.bf16.gmra.mxu2 %v1936_v58  ;;  %v2321_v58 = vld [vmem:[%s2586_s8 + $0xcc] sm:$0xf]  ;;  %v2016_v62 = vor.u32 %v2323_v57, %v2015_v56  ;;  %305 = vst.msk [vmem:[#allocation2 + $0xc0] sm:$0xff] %vm280_vm0, %v2448_v1 }
  0x3f   : > { %1265 = vmatmul.bf16.gmra.mxu3 %v1940_v59  ;;  %v2017_v59 = vld [vmem:[%s2586_s8 + $0xd8] sm:$0xf0]  ;;  %306 = vst.msk [vmem:[#allocation2 + $0xc8] sm:$0xff] %vm280_vm0, %v2448_v1 }
  0x40   : > { %v2020_v63 = vor.u32 %v2321_v58, %v2017_v59  ;;  %307 = vst.msk [vmem:[#allocation2 + $0xd0] sm:$0xff] %vm280_vm0, %v2448_v1 }
  0x41   : > { %308 = vst.msk [vmem:[#allocation2 + $0xd8] sm:$0xff] %vm280_vm0, %v2448_v1 }
  0x42   : > { %309 = vst.msk [vmem:[#allocation2 + $0xe0] sm:$0xff] %vm280_vm0, %v2448_v1 }
  0x43   : > { %310 = vst.msk [vmem:[#allocation2 + $0xe8] sm:$0xff] %vm280_vm0, %v2448_v1  ;;  %1555 = vperm.xlu1 %2419, %v1425_v31  }
  0x44   : > { %311 = vst.msk [vmem:[#allocation2 + $0xf0] sm:$0xff] %vm280_vm0, %v2448_v1 }
  0x45   : > { %312 = vst.msk [vmem:[#allocation2 + $0xf8] sm:$0xff] %vm280_vm0, %v2448_v1  ;;  %1545 = vperm.xlu2 %2420, %v1423_v42   ;;  %v1431_v1 = vld [vmem:[%s2561_s19 + $0xb0] sm:$0xff] }
  0x4b   : > { %1570 = vperm.xlu1 %2419, %v1428_v43   ;;  %v316_v43 = vld [vmem:[#allocation2 + $0x18] sm:$0xff] }
  0x4c   : > { %1003 = vmatmul.bf16.gmra.mxu0 %v1944_v5  ;;  %v2324_v5 = vld [vmem:[%s2586_s8 + $0xe4] sm:$0xf] }
  0x4d   : > { %1092 = vmatmul.bf16.gmra.mxu1 %v1948_v6  ;;  %v2025_v6 = vld [vmem:[%s2586_s8 + $0xf0] sm:$0xf0] }
  0x4e   : > { %1181 = vmatmul.bf16.gmra.mxu2 %v1952_v7  ;;  %v2031_v7 = vld [vmem:[%s2586_s8 + $0xe8] sm:$0xf]  ;;  %v2028_v12 = vor.u32 %v2324_v5, %v2025_v6  ;;  %v2774_v5 = vld [vmem:[%s2985_s3] ss:$0 sm:$0xff] }
  0x4f   : > { %1270 = vmatmul.bf16.gmra.mxu3 %v1956_v8  ;;  %v2327_v8 = vld [vmem:[%s2586_s8 + $0xf4] sm:$0xf0] }
  0x50   : > { %v2032_v13 = vor.u32 %v2327_v8, %v2031_v7 }
  0x53   : > { %1585 = vperm.xlu1 %2419, %v1431_v1   ;;  %v2342_v1 = vld [vmem:[%s2586_s8 + $0x16c] sm:$0xf0] }
  0x5c   : > { %1008 = vmatmul.bf16.gmra.mxu0 %v1960_v18  ;;  %v2328_v18 = vld [vmem:[%s2586_s8 + $0x104] sm:$0xf] }
  0x5d   : > { %1097 = vmatmul.bf16.gmra.mxu1 %v1964_v19  ;;  %v2041_v19 = vld [vmem:[%s2586_s8 + $0x110] sm:$0xf0] }
  0x5e   : > { %1186 = vmatmul.bf16.gmra.mxu2 %v1968_v20  ;;  %v1424_v20 = vld [vmem:[%s2561_s19 + $0x78] sm:$0xff]  ;;  %v2044_v26 = vor.u32 %v2328_v18, %v2041_v19  ;;  %v2338_v18 = vld [vmem:[%s2586_s8 + $0x14c] sm:$0xf0] }
  0x5f   : > { %1275 = vmatmul.bf16.gmra.mxu3 %v1972_v21  ;;  %v2047_v21 = vld [vmem:[%s2586_s8 + $0x108] sm:$0xf]  ;;  %1550 = vperm.xlu0 %2418, %v1424_v20   ;;  %v2336_v20 = vld [vmem:[%s2586_s8 + $0x144] sm:$0xf] }
  0x60   : > { %v2048_v29 = vor.u32 %v2331_v22, %v2047_v21  ;;  %v1434_v21 = vld [vmem:[%s2561_s19 + $0xc8] sm:$0xff]  ;;  %v1433_v22 = vld [vmem:[%s2561_s19 + $0xc0] sm:$0xff] }
  0x61   : > { %1600 = vperm.xlu1 %2419, %v1434_v21  }
  0x67   : > { %1565 = vperm.xlu0 %2418, %v1427_v44  }
  0x6c   : > { %1013 = vmatmul.bf16.gmra.mxu0 %v1976_v33 }
  0x6d   : > { %1102 = vmatmul.bf16.gmra.mxu1 %v1980_v34 }
  0x6e   : > { %1191 = vmatmul.bf16.gmra.mxu2 %v1984_v35 }
  0x6f   : > { %1280 = vmatmul.bf16.gmra.mxu3 %v1988_v36  ;;  %1580 = vperm.xlu0 %2418, %v1430_v2   ;;  %v1440_v2 = vld [vmem:[%s2561_s19 + $0xf8] sm:$0xff] }
  0x77   : > { %1595 = vperm.xlu0 %2418, %v1433_v22  }
  0x7c   : > { %1018 = vmatmul.bf16.gmra.mxu0 %v1992_v47  ;;  %v2057_v47 = vld [vmem:[%s2586_s8 + $0x130] sm:$0xf0] }
  0x7d   : > { %1107 = vmatmul.bf16.gmra.mxu1 %v1996_v48  ;;  %v2063_v48 = vld [vmem:[%s2586_s8 + $0x128] sm:$0xf]  ;;  %v2060_v56 = vor.u32 %v2332_v46, %v2057_v47 }
  0x7e   : > { %1196 = vmatmul.bf16.gmra.mxu2 %v2000_v49  ;;  %v2335_v49 = vld [vmem:[%s2586_s8 + $0x134] sm:$0xf0]  ;;  %v1426_v47 = vld [vmem:[%s2561_s19 + $0x88] sm:$0xff] }
  0x7f   : > { %1285 = vmatmul.bf16.gmra.mxu3 %v2004_v50  ;;  %v2333_v50 = vld [vmem:[%s2586_s8 + $0x12c] sm:$0xf]  ;;  %1560 = vperm.xlu2 %2420, %v1426_v47  }
  0x8c   : > { %1023 = vmatmul.bf16.gmra.mxu0 %v2008_v60  ;;  %v2064_v60 = vor.u32 %v2335_v49, %v2063_v48  ;;  %v1437_v48 = vld [vmem:[%s2561_s19 + $0xe0] sm:$0xff]  ;;  %v1436_v49 = vld [vmem:[%s2561_s19 + $0xd8] sm:$0xff] }
  0x8d   : > { %1112 = vmatmul.bf16.gmra.mxu1 %v2012_v61  ;;  %v2068_v61 = vor.u32 %v2333_v50, %v2065_v51  ;;  %v1486_v46 = vpop.permute.xlu1 %1485  ;;  %1615 = vperm.xlu1 %2419, %v1437_v48   ;;  %v2346_v48 = vld [vmem:[%s2586_s8 + $0x18c] sm:$0xf0] }
  0x8e   : > { %1201 = vmatmul.bf16.gmra.mxu2 %v2016_v62  ;;  %v314_v62 = vld [vmem:[#allocation2 + $0x8] sm:$0xff]  ;;  %1610 = vperm.xlu0 %2418, %v1436_v49   ;;  %v2344_v49 = vld [vmem:[%s2586_s8 + $0x184] sm:$0xf] }
  0x8f   : > { %1290 = vmatmul.bf16.gmra.mxu3 %v2020_v63  ;;  %v1476_v63 = vpop.permute.xlu0 %1475 }
  0x95   : > { %1630 = vperm.xlu1 %2419, %v1440_v2  }
  0x97   : > { %v1481_v19 = vpop.permute.xlu0 %1480 }
  0x9c   : > { %1028 = vmatmul.bf16.gmra.mxu0 %v2024_v11 }
  0x9d   : > { %1117 = vmatmul.bf16.gmra.mxu1 %v2028_v12 }
  0x9e   : > { %1206 = vmatmul.bf16.gmra.mxu2 %v2032_v13 }
  0x9f   : > { %1295 = vmatmul.bf16.gmra.mxu3 %v2036_v14  ;;  %v315_v14 = vld [vmem:[#allocation2 + $0x10] sm:$0xff] }
  0xa9   : > { %v994_v27 = vpop.f32.mrf.mxu0 }
  0xaa   : > { %v1083_v28 = vpop.f32.mrf.mxu1 }
  0xab   : > { %v1084_v32 = vadd.f32 %v1083_v28, %v994_v27  ;;  %v2339_v27 = vld [vmem:[%s2586_s8 + $0x154] sm:$0xf0] }
  0xac   : > { %1033 = vmatmul.bf16.gmra.mxu0 %v2040_v25  ;;  %v2073_v25 = vld [vmem:[%s2586_s8 + $0x150] sm:$0xf0] }
  0xad   : > { %1122 = vmatmul.bf16.gmra.mxu1 %v2044_v26  ;;  %v2079_v26 = vld [vmem:[%s2586_s8 + $0x148] sm:$0xf] }
  0xae   : > { %1211 = vmatmul.bf16.gmra.mxu2 %v2048_v29  ;;  %v2337_v29 = vld [vmem:[%s2586_s8 + $0x14c] sm:$0xf]  ;;  %v2080_v41 = vor.u32 %v2339_v27, %v2079_v26 }
  0xaf   : > { %1300 = vmatmul.bf16.gmra.mxu3 %v2052_v30  ;;  %v2081_v30 = vld [vmem:[%s2586_s8 + $0x158] sm:$0xf0]  ;;  %v318_v27 = vld [vmem:[#allocation2 + $0x28] sm:$0xff] }
  0xb0   : > { %v2084_v42 = vor.u32 %v2337_v29, %v2081_v30 }
  0xb1   : > { %v1172_v33 = vpop.f32.mrf.mxu2  ;;  %v996_v36 = vpop.f32.mrf.mxu0 }
  0xb2   : > { %v1261_v34 = vpop.f32.mrf.mxu3  ;;  %v1173_v35 = vadd.f32 %v1172_v33, %v1084_v32  ;;  %v1085_v37 = vpop.f32.mrf.mxu1 }
  0xb3   : > { %v1086_v52 = vadd.f32 %v1085_v37, %v996_v36  ;;  %v2076_v36 = vor.u32 %v2336_v20, %v2073_v25 }
  0xb4   : > { %v1262_v39 = vadd.f32 %v1261_v34, %v1173_v35  ;;  %v2072_v35 = vor.u32 %v2338_v18, %v2071_v17 }
  0xb6   : > { %v1341_v45 = vadd.f32 %v1262_v39, %v313_v38 }
  0xb8   : > { %1374 = vst.msk [vmem:[#allocation2] sm:$0xff] %vm280_vm0, %v1341_v45 }
  0xb9   : > { %v1174_v53 = vpop.f32.mrf.mxu2  ;;  %v999_v58 = vpop.f32.mrf.mxu0 }
  0xba   : > { %v1263_v54 = vpop.f32.mrf.mxu3  ;;  %v1175_v57 = vadd.f32 %v1174_v53, %v1086_v52  ;;  %v1088_v59 = vpop.f32.mrf.mxu1 }
  0xbb   : > { %v1089_v4 = vadd.f32 %v1088_v59, %v999_v58 }
  0xbc   : > { %v1264_v0 = vadd.f32 %v1263_v54, %v1175_v57  ;;  %1038 = vmatmul.bf16.gmra.mxu0 %v2056_v55 }
  0xbd   : > { %1127 = vmatmul.bf16.gmra.mxu1 %v2060_v56 }
  0xbe   : > { %v1342_v3 = vadd.f32 %v1264_v0, %v314_v62  ;;  %1216 = vmatmul.bf16.gmra.mxu2 %v2064_v60 }
  0xbf   : > { %1305 = vmatmul.bf16.gmra.mxu3 %v2068_v61  ;;  %v1441_v6 = vld [vmem:[#allocation2] sm:$0xff] }
  0xc0   : > { %1375 = vst.msk [vmem:[#allocation2 + $0x8] sm:$0xff] %vm280_vm0, %v1342_v3  ;;  %v1633_v7 = vmul.f32 %v1476_v63, %v1441_v6  ;;  %v317_v61 = vld [vmem:[#allocation2 + $0x20] sm:$0xff]  ;;  %v1439_v3 = vld [vmem:[%s2561_s19 + $0xf0] sm:$0xff]  ;;  %v1491_v6 = vpop.permute.xlu1 %1490 }
  0xc1   : > { %v1177_v8 = vpop.f32.mrf.mxu2  ;;  %v1001_v12 = vpop.f32.mrf.mxu0  ;;  %v2087_v63 = vld [vmem:[%s2586_s8 + $0x160] sm:$0xf]  ;;  %1625 = vperm.xlu0 %2418, %v1439_v3  }
  0xc2   : > { %v1266_v9 = vpop.f32.mrf.mxu3  ;;  %v1669_v10 = vadd.f32 %v2774_v5, %v1633_v7  ;;  %v1178_v11 = vadd.f32 %v1177_v8, %v1089_v4  ;;  %v1090_v13 = vpop.f32.mrf.mxu1  ;;  %v2340_v7 = vld [vmem:[%s2586_s8 + $0x164] sm:$0xf]  ;;  %v2089_v8 = vld [vmem:[%s2586_s8 + $0x170] sm:$0xf0] }
  0xc3   : > { %v1091_v31 = vadd.f32 %v1090_v13, %v1001_v12  ;;  %v2341_v12 = vld [vmem:[%s2586_s8 + $0x16c] sm:$0xf]  ;;  %v2097_v13 = vld [vmem:[%s2586_s8 + $0x178] sm:$0xf0]  ;;  %v2092_v20 = vor.u32 %v2340_v7, %v2089_v8 }
  0xc4   : > { %v1701_v15 = vmax.f32 %v1669_v10, 0.0  ;;  %v1267_v16 = vadd.f32 %v1266_v9, %v1178_v11  ;;  %v2095_v9 = vld [vmem:[%s2586_s8 + $0x168] sm:$0xf]  ;;  %v2343_v11 = vld [vmem:[%s2586_s8 + $0x174] sm:$0xf0]  ;;  %v2100_v25 = vor.u32 %v2341_v12, %v2097_v13 }
  0xc5   : > { %v320_v8 = vld [vmem:[#allocation2 + $0x38] sm:$0xff] }
  0xc6   : > { %v1733_v23 = vpack.c.bf16 %v1701_v15, %v1701_v15  ;;  %v1343_v24 = vadd.f32 %v1267_v16, %v315_v14 }
  0xc7   : > { %v1442_v28 = vld [vmem:[#allocation2 + $0x8] sm:$0xff] }
  0xc8   : > { %1766 = vst.msk [vmem:[%s2784_s5] sm:$0xf] %vm1765_vm1, %v1733_v23  ;;  %v1634_v32 = vmul.f32 %v1481_v19, %v1442_v28  ;;  %v2088_v19 = vor.u32 %v2342_v1, %v2087_v63  ;;  %v1496_v28 = vpop.permute.xlu2 %1495 }
  0xc9   : > { %1376 = vst.msk [vmem:[#allocation2 + $0x10] sm:$0xff] %vm280_vm0, %v1343_v24  ;;  %v1179_v33 = vpop.f32.mrf.mxu2  ;;  %v1004_v39 = vpop.f32.mrf.mxu0  ;;  %v2096_v24 = vor.u32 %v2343_v11, %v2095_v9  ;;  %v1435_v11 = vld [vmem:[%s2561_s19 + $0xd0] sm:$0xff] }
  0xca   : > { %v1268_v34 = vpop.f32.mrf.mxu3  ;;  %v1670_v37 = vadd.f32 %v2774_v5, %v1634_v32  ;;  %v1180_v38 = vadd.f32 %v1179_v33, %v1091_v31  ;;  %v1093_v40 = vpop.f32.mrf.mxu1  ;;  %v1429_v31 = vld [vmem:[%s2561_s19 + $0xa0] sm:$0xff] }
  0xcb   : > { %v1094_v52 = vadd.f32 %v1093_v40, %v1004_v39  ;;  %1575 = vperm.xlu2 %2420, %v1429_v31   ;;  %v1511_v31 = vpop.permute.xlu1 %1510 }
  0xcc   : > { %v1702_v44 = vmax.f32 %v1670_v37, 0.0  ;;  %v1269_v45 = vadd.f32 %v1268_v34, %v1180_v38  ;;  %1043 = vmatmul.bf16.gmra.mxu0 %v2072_v35 }
  0xcd   : > { %1132 = vmatmul.bf16.gmra.mxu1 %v2076_v36 }
  0xce   : > { %v1734_v50 = vpack.c.bf16 %v1702_v44, %v1702_v44  ;;  %v1344_v51 = vadd.f32 %v1269_v45, %v316_v43  ;;  %1221 = vmatmul.bf16.gmra.mxu2 %v2080_v41  ;;  %v319_v43 = vld [vmem:[#allocation2 + $0x30] sm:$0xff] }
  0xcf   : > { %1310 = vmatmul.bf16.gmra.mxu3 %v2084_v42 }
  0xd0   : > { %1767 = vst.msk [vmem:[%s2784_s5 + $0x4] sm:$0xf] %vm1765_vm1, %v1734_v50  ;;  %v1443_v53 = vld [vmem:[#allocation2 + $0x10] sm:$0xff]  ;;  %v1501_v47 = vpop.permute.xlu2 %1500  ;;  %v1432_v50 = vld [vmem:[%s2561_s19 + $0xb8] sm:$0xff] }
  0xd1   : > { %1377 = vst.msk [vmem:[#allocation2 + $0x18] sm:$0xff] %vm280_vm0, %v1344_v51  ;;  %v1635_v54 = vmul.f32 %v1486_v46, %v1443_v53  ;;  %v1182_v55 = vpop.f32.mrf.mxu2  ;;  %v1006_v58 = vpop.f32.mrf.mxu0  ;;  %v2103_v46 = vld [vmem:[%s2586_s8 + $0x180] sm:$0xf]  ;;  %v2105_v53 = vld [vmem:[%s2586_s8 + $0x190] sm:$0xf0] }
  0xd2   : > { %v1271_v56 = vpop.f32.mrf.mxu3  ;;  %v1183_v57 = vadd.f32 %v1182_v55, %v1094_v52  ;;  %v1095_v59 = vpop.f32.mrf.mxu1  ;;  %v2347_v55 = vld [vmem:[%s2586_s8 + $0x194] sm:$0xf0]  ;;  %v2104_v63 = vor.u32 %v2346_v48, %v2103_v46 }
  0xd3   : > { %v1671_v60 = vadd.f32 %v2774_v5, %v1635_v54  ;;  %v1096_v14 = vadd.f32 %v1095_v59, %v1006_v58  ;;  %v2111_v54 = vld [vmem:[%s2586_s8 + $0x188] sm:$0xf]  ;;  %v2113_v58 = vld [vmem:[%s2586_s8 + $0x198] sm:$0xf0]  ;;  %1590 = vperm.xlu2 %2420, %v1432_v50  }
  0xd4   : > { %v1272_v62 = vadd.f32 %v1271_v56, %v1183_v57  ;;  %v2345_v57 = vld [vmem:[%s2586_s8 + $0x18c] sm:$0xf] }
  0xd5   : > { %v1703_v0 = vmax.f32 %v1671_v60, 0.0  ;;  %v2116_v7 = vor.u32 %v2345_v57, %v2113_v58 }
  0xd6   : > { %v1345_v4 = vadd.f32 %v1272_v62, %v317_v61 }
  0xd7   : > { %v1735_v10 = vpack.c.bf16 %v1703_v0, %v1703_v0  ;;  %v2108_v0 = vor.u32 %v2344_v49, %v2105_v53 }
  0xd8   : > { %1378 = vst.msk [vmem:[#allocation2 + $0x20] sm:$0xff] %vm280_vm0, %v1345_v4  ;;  %v1444_v15 = vld [vmem:[#allocation2 + $0x18] sm:$0xff] }
  0xd9   : > { %1768 = vst.msk [vmem:[%s2784_s5 + $0x8] sm:$0xf] %vm1765_vm1, %v1735_v10  ;;  %v1636_v16 = vmul.f32 %v1491_v6, %v1444_v15  ;;  %v1184_v17 = vpop.f32.mrf.mxu2  ;;  %v1009_v22 = vpop.f32.mrf.mxu0  ;;  %v2112_v6 = vor.u32 %v2347_v55, %v2111_v54 }
  0xda   : > { %v1273_v18 = vpop.f32.mrf.mxu3  ;;  %v1185_v21 = vadd.f32 %v1184_v17, %v1096_v14  ;;  %v1098_v23 = vpop.f32.mrf.mxu1 }
  0xdb   : > { %v1672_v26 = vadd.f32 %v2774_v5, %v1636_v16  ;;  %v1099_v33 = vadd.f32 %v1098_v23, %v1009_v22  ;;  %v1506_v15 = vpop.permute.xlu0 %1505  ;;  %1605 = vperm.xlu2 %2420, %v1435_v11   ;;  %v1516_v55 = vpop.permute.xlu2 %1515 }
  0xdc   : > { %v1274_v29 = vadd.f32 %v1273_v18, %v1185_v21  ;;  %1048 = vmatmul.bf16.gmra.mxu0 %v2088_v19 }
  0xdd   : > { %v1704_v30 = vmax.f32 %v1672_v26, 0.0  ;;  %1137 = vmatmul.bf16.gmra.mxu1 %v2092_v20 }
  0xde   : > { %v1346_v32 = vadd.f32 %v1274_v29, %v318_v27  ;;  %1226 = vmatmul.bf16.gmra.mxu2 %v2096_v24  ;;  %v321_v24 = vld [vmem:[#allocation2 + $0x40] sm:$0xff]  ;;  %v1438_v29 = vld [vmem:[%s2561_s19 + $0xe8] sm:$0xff] }
  0xdf   : > { %1315 = vmatmul.bf16.gmra.mxu3 %v2100_v25  ;;  %v1736_v34 = vpack.c.bf16 %v1704_v30, %v1704_v30  ;;  %v1445_v35 = vld [vmem:[#allocation2 + $0x20] sm:$0xff] }
  0xe0   : > { %1379 = vst.msk [vmem:[#allocation2 + $0x28] sm:$0xff] %vm280_vm0, %v1346_v32  ;;  %v1637_v36 = vmul.f32 %v1496_v28, %v1445_v35  ;;  %v2119_v27 = vld [vmem:[%s2586_s8 + $0x1a0] sm:$0xf]  ;;  %v2350_v28 = vld [vmem:[%s2586_s8 + $0x1ac] sm:$0xf0] }
  0xe1   : > { %1769 = vst.msk [vmem:[%s2784_s5 + $0xc] sm:$0xf] %vm1765_vm1, %v1736_v34  ;;  %v1187_v37 = vpop.f32.mrf.mxu2  ;;  %v1011_v41 = vpop.f32.mrf.mxu0  ;;  %v2348_v32 = vld [vmem:[%s2586_s8 + $0x1a4] sm:$0xf]  ;;  %v2127_v34 = vld [vmem:[%s2586_s8 + $0x1a8] sm:$0xf] }
  0xe2   : > { %v1276_v38 = vpop.f32.mrf.mxu3  ;;  %v1673_v39 = vadd.f32 %v2774_v5, %v1637_v36  ;;  %v1188_v40 = vadd.f32 %v1187_v37, %v1099_v33  ;;  %v1100_v42 = vpop.f32.mrf.mxu1  ;;  %v2121_v33 = vld [vmem:[%s2586_s8 + $0x1b0] sm:$0xf0]  ;;  %v2351_v36 = vld [vmem:[%s2586_s8 + $0x1b4] sm:$0xf0]  ;;  %v2349_v37 = vld [vmem:[%s2586_s8 + $0x1ac] sm:$0xf] }
  0xe3   : > { %v1101_v59 = vadd.f32 %v1100_v42, %v1011_v41  ;;  %1620 = vperm.xlu2 %2420, %v1438_v29   ;;  %v2128_v49 = vor.u32 %v2351_v36, %v2127_v34 }
  0xe4   : > { %v1705_v44 = vmax.f32 %v1673_v39, 0.0  ;;  %v1277_v45 = vadd.f32 %v1276_v38, %v1188_v40  ;;  %v2129_v38 = vld [vmem:[%s2586_s8 + $0x1b8] sm:$0xf0] }
  0xe5   : > { %v2132_v50 = vor.u32 %v2349_v37, %v2129_v38  ;;  %v1526_v37 = vpop.permute.xlu1 %1525 }
  0xe6   : > { %v1737_v51 = vpack.c.bf16 %v1705_v44, %v1705_v44  ;;  %v1347_v52 = vadd.f32 %v1277_v45, %v319_v43  ;;  %v2120_v44 = vor.u32 %v2350_v28, %v2119_v27  ;;  %v2124_v45 = vor.u32 %v2348_v32, %v2121_v33 }
  0xe7   : > { %v1446_v56 = vld [vmem:[#allocation2 + $0x28] sm:$0xff] }
  0xe8   : > { %1770 = vst.msk [vmem:[%s2784_s5 + $0x10] sm:$0xf] %vm1765_vm1, %v1737_v51  ;;  %v1638_v60 = vmul.f32 %v1501_v47, %v1446_v56 }
  0xe9   : > { %1380 = vst.msk [vmem:[#allocation2 + $0x30] sm:$0xff] %vm280_vm0, %v1347_v52  ;;  %v1189_v61 = vpop.f32.mrf.mxu2  ;;  %v1014_v3 = vpop.f32.mrf.mxu0  ;;  %v322_v52 = vld [vmem:[#allocation2 + $0x48] sm:$0xff] }
  0xea   : > { %v1278_v62 = vpop.f32.mrf.mxu3  ;;  %v1674_v1 = vadd.f32 %v2774_v5, %v1638_v60  ;;  %v1190_v2 = vadd.f32 %v1189_v61, %v1101_v59  ;;  %v1103_v4 = vpop.f32.mrf.mxu1 }
  0xeb   : > { %v1104_v14 = vadd.f32 %v1103_v4, %v1014_v3  ;;  %v323_v3 = vld [vmem:[#allocation2 + $0x50] sm:$0xff] }
  0xec   : > { %v1706_v9 = vmax.f32 %v1674_v1, 0.0  ;;  %v1279_v10 = vadd.f32 %v1278_v62, %v1190_v2  ;;  %1053 = vmatmul.bf16.gmra.mxu0 %v2104_v63 }
  0xed   : > { %1142 = vmatmul.bf16.gmra.mxu1 %v2108_v0 }
  0xee   : > { %v1738_v12 = vpack.c.bf16 %v1706_v9, %v1706_v9  ;;  %v1348_v13 = vadd.f32 %v1279_v10, %v320_v8  ;;  %1231 = vmatmul.bf16.gmra.mxu2 %v2112_v6  ;;  %v2135_v8 = vld [vmem:[%s2586_s8 + $0x1c0] sm:$0xf]  ;;  %v2354_v9 = vld [vmem:[%s2586_s8 + $0x1cc] sm:$0xf0]  ;;  %v2352_v10 = vld [vmem:[%s2586_s8 + $0x1c4] sm:$0xf] }
  0xef   : > { %1320 = vmatmul.bf16.gmra.mxu3 %v2116_v7  ;;  %v1521_v7 = vpop.permute.xlu0 %1520 }
  0xf0   : > { %1771 = vst.msk [vmem:[%s2784_s5 + $0x14] sm:$0xf] %vm1765_vm1, %v1738_v12  ;;  %v1447_v16 = vld [vmem:[#allocation2 + $0x30] sm:$0xff] }
  0xf1   : > { %1381 = vst.msk [vmem:[#allocation2 + $0x38] sm:$0xff] %vm280_vm0, %v1348_v13  ;;  %v1639_v17 = vmul.f32 %v1506_v15, %v1447_v16  ;;  %v1192_v18 = vpop.f32.mrf.mxu2  ;;  %v1016_v21 = vpop.f32.mrf.mxu0  ;;  %v2137_v13 = vld [vmem:[%s2586_s8 + $0x1d0] sm:$0xf0]  ;;  %v2355_v15 = vld [vmem:[%s2586_s8 + $0x1d4] sm:$0xf0] }
  0xf2   : > { %v1281_v19 = vpop.f32.mrf.mxu3  ;;  %v1193_v20 = vadd.f32 %v1192_v18, %v1104_v14  ;;  %v1105_v22 = vpop.f32.mrf.mxu1  ;;  %v2143_v14 = vld [vmem:[%s2586_s8 + $0x1c8] sm:$0xf]  ;;  %v2145_v18 = vld [vmem:[%s2586_s8 + $0x1d8] sm:$0xf0] }
  0xf3   : > { %v1675_v23 = vadd.f32 %v2774_v5, %v1639_v17  ;;  %v1106_v39 = vadd.f32 %v1105_v22, %v1016_v21  ;;  %v2353_v17 = vld [vmem:[%s2586_s8 + $0x1cc] sm:$0xf]  ;;  %v2144_v29 = vor.u32 %v2355_v15, %v2143_v14 }
  0xf4   : > { %v1282_v25 = vadd.f32 %v1281_v19, %v1193_v20 }
  0xf5   : > { %v1707_v26 = vmax.f32 %v1675_v23, 0.0  ;;  %v2136_v23 = vor.u32 %v2354_v9, %v2135_v8 }
  0xf6   : > { %v1349_v30 = vadd.f32 %v1282_v25, %v321_v24  ;;  %v2140_v24 = vor.u32 %v2352_v10, %v2137_v13  ;;  %v326_v10 = vld [vmem:[#allocation2 + $0x68] sm:$0xff] }
  0xf7   : > { %v1739_v35 = vpack.c.bf16 %v1707_v26, %v1707_v26  ;;  %v1536_v13 = vpop.permute.xlu0 %1535 }
  0xf8   : > { %1382 = vst.msk [vmem:[#allocation2 + $0x40] sm:$0xff] %vm280_vm0, %v1349_v30  ;;  %v1448_v40 = vld [vmem:[#allocation2 + $0x38] sm:$0xff]  ;;  %v2148_v30 = vor.u32 %v2353_v17, %v2145_v18 }
  0xf9   : > { %1772 = vst.msk [vmem:[%s2784_s5 + $0x18] sm:$0xf] %vm1765_vm1, %v1739_v35  ;;  %v1640_v41 = vmul.f32 %v1511_v31, %v1448_v40  ;;  %v1194_v42 = vpop.f32.mrf.mxu2  ;;  %v1019_v47 = vpop.f32.mrf.mxu0  ;;  %v324_v31 = vld [vmem:[#allocation2 + $0x58] sm:$0xff] }
  0xfa   : > { %v1283_v43 = vpop.f32.mrf.mxu3  ;;  %v1195_v46 = vadd.f32 %v1194_v42, %v1106_v39  ;;  %v1108_v48 = vpop.f32.mrf.mxu1 }
  0xfb   : > { %v1676_v51 = vadd.f32 %v2774_v5, %v1640_v41  ;;  %v1109_v57 = vadd.f32 %v1108_v48, %v1019_v47 }
  0xfc   : > { %v1284_v53 = vadd.f32 %v1283_v43, %v1195_v46  ;;  %1058 = vmatmul.bf16.gmra.mxu0 %v2120_v44  ;;  %v325_v46 = vld [vmem:[#allocation2 + $0x60] sm:$0xff] }
  0xfd   : > { %v1708_v54 = vmax.f32 %v1676_v51, 0.0  ;;  %1147 = vmatmul.bf16.gmra.mxu1 %v2124_v45 }
  0xfe   : > { %v1350_v56 = vadd.f32 %v1284_v53, %v322_v52  ;;  %1236 = vmatmul.bf16.gmra.mxu2 %v2128_v49  ;;  %v2151_v49 = vld [vmem:[%s2586_s8 + $0x1e0] sm:$0xf]  ;;  %v1531_v52 = vpop.permute.xlu2 %1530  ;;  %v2356_v53 = vld [vmem:[%s2586_s8 + $0x1e4] sm:$0xf] }
  0xff   : > { %1325 = vmatmul.bf16.gmra.mxu3 %v2132_v50  ;;  %v1740_v58 = vpack.c.bf16 %v1708_v54, %v1708_v54  ;;  %v1449_v59 = vld [vmem:[#allocation2 + $0x40] sm:$0xff]  ;;  %v2358_v50 = vld [vmem:[%s2586_s8 + $0x1ec] sm:$0xf0]  ;;  %v2153_v54 = vld [vmem:[%s2586_s8 + $0x1f0] sm:$0xf0] }
 0x100   : > { %1383 = vst.msk [vmem:[#allocation2 + $0x48] sm:$0xff] %vm280_vm0, %v1350_v56  ;;  %v1641_v60 = vmul.f32 %v1516_v55, %v1449_v59  ;;  %v2159_v55 = vld [vmem:[%s2586_s8 + $0x1e8] sm:$0xf]  ;;  %v2161_v59 = vld [vmem:[%s2586_s8 + $0x1f8] sm:$0xf0] }
 0x101   : > { %1773 = vst.msk [vmem:[%s2784_s5 + $0x1c] sm:$0xf] %vm1765_vm1, %v1740_v58  ;;  %v1197_v61 = vpop.f32.mrf.mxu2  ;;  %v1021_v1 = vpop.f32.mrf.mxu0  ;;  %v2357_v58 = vld [vmem:[%s2586_s8 + $0x1ec] sm:$0xf] }
 0x102   : > { %v1286_v62 = vpop.f32.mrf.mxu3  ;;  %v1677_v63 = vadd.f32 %v2774_v5, %v1641_v60  ;;  %v1198_v0 = vadd.f32 %v1197_v61, %v1109_v57  ;;  %v1110_v2 = vpop.f32.mrf.mxu1  ;;  %v2359_v57 = vld [vmem:[%s2586_s8 + $0x1f4] sm:$0xf0]  ;;  %v2164_v8 = vor.u32 %v2357_v58, %v2161_v59 }
 0x103   : > { %v1111_v19 = vadd.f32 %v1110_v2, %v1021_v1  ;;  %v2152_v1 = vor.u32 %v2358_v50, %v2151_v49  ;;  %v2156_v2 = vor.u32 %v2356_v53, %v2153_v54  ;;  %v1551_v59 = vpop.permute.xlu0 %1550 }
 0x104   : > { %v1709_v4 = vmax.f32 %v1677_v63, 0.0  ;;  %v1287_v6 = vadd.f32 %v1286_v62, %v1198_v0 }
 0x106   : > { %v1741_v11 = vpack.c.bf16 %v1709_v4, %v1709_v4  ;;  %v1351_v12 = vadd.f32 %v1287_v6, %v323_v3 }
 0x107   : > { %v1450_v16 = vld [vmem:[#allocation2 + $0x48] sm:$0xff] }
 0x108   : > { %1774 = vst.msk [vmem:[%s2784_s5 + $0x20] sm:$0xf] %vm1765_vm1, %v1741_v11  ;;  %v1642_v20 = vmul.f32 %v1521_v7, %v1450_v16  ;;  %v2160_v7 = vor.u32 %v2359_v57, %v2159_v55  ;;  %v329_v55 = vld [vmem:[#allocation2 + $0x80] sm:$0xff] }
 0x109   : > { %1384 = vst.msk [vmem:[#allocation2 + $0x50] sm:$0xff] %vm280_vm0, %v1351_v12  ;;  %v1199_v21 = vpop.f32.mrf.mxu2  ;;  %v1024_v27 = vpop.f32.mrf.mxu0 }
 0x10a   : > { %v1288_v22 = vpop.f32.mrf.mxu3  ;;  %v1678_v25 = vadd.f32 %v2774_v5, %v1642_v20  ;;  %v1200_v26 = vadd.f32 %v1199_v21, %v1111_v19  ;;  %v1113_v28 = vpop.f32.mrf.mxu1 }
 0x10b   : > { %v1114_v36 = vadd.f32 %v1113_v28, %v1024_v27  ;;  %v1541_v28 = vpop.permute.xlu1 %1540 }
 0x10c   : > { %v1710_v32 = vmax.f32 %v1678_v25, 0.0  ;;  %v1289_v33 = vadd.f32 %v1288_v22, %v1200_v26  ;;  %1063 = vmatmul.bf16.gmra.mxu0 %v2136_v23  ;;  %v327_v25 = vld [vmem:[#allocation2 + $0x70] sm:$0xff] }
 0x10d   : > { %1152 = vmatmul.bf16.gmra.mxu1 %v2140_v24 }
 0x10e   : > { %v1742_v34 = vpack.c.bf16 %v1710_v32, %v1710_v32  ;;  %v1352_v35 = vadd.f32 %v1289_v33, %v324_v31  ;;  %1241 = vmatmul.bf16.gmra.mxu2 %v2144_v29 }
 0x10f   : > { %1330 = vmatmul.bf16.gmra.mxu3 %v2148_v30 }
 0x110   : > { %1775 = vst.msk [vmem:[%s2784_s5 + $0x24] sm:$0xf] %vm1765_vm1, %v1742_v34  ;;  %v1451_v38 = vld [vmem:[#allocation2 + $0x50] sm:$0xff] }
 0x111   : > { %1385 = vst.msk [vmem:[#allocation2 + $0x58] sm:$0xff] %vm280_vm0, %v1352_v35  ;;  %v1643_v39 = vmul.f32 %v1526_v37, %v1451_v38  ;;  %v1202_v40 = vpop.f32.mrf.mxu2  ;;  %v1026_v43 = vpop.f32.mrf.mxu0 }
 0x112   : > { %v1291_v41 = vpop.f32.mrf.mxu3  ;;  %v1203_v42 = vadd.f32 %v1202_v40, %v1114_v36  ;;  %v1115_v44 = vpop.f32.mrf.mxu1  ;;  %v328_v40 = vld [vmem:[#allocation2 + $0x78] sm:$0xff] }
 0x113   : > { %v1679_v45 = vadd.f32 %v2774_v5, %v1643_v39  ;;  %v1116_v60 = vadd.f32 %v1115_v44, %v1026_v43 }
 0x114   : > { %v1292_v47 = vadd.f32 %v1291_v41, %v1203_v42 }
 0x115   : > { %v1711_v48 = vmax.f32 %v1679_v45, 0.0 }
 0x116   : > { %v1353_v51 = vadd.f32 %v1292_v47, %v325_v46  ;;  %v1546_v46 = vpop.permute.xlu2 %1545 }
 0x117   : > { %v1743_v56 = vpack.c.bf16 %v1711_v48, %v1711_v48 }
 0x118   : > { %1386 = vst.msk [vmem:[#allocation2 + $0x60] sm:$0xff] %vm280_vm0, %v1353_v51  ;;  %v1452_v61 = vld [vmem:[#allocation2 + $0x58] sm:$0xff] }
 0x119   : > { %1776 = vst.msk [vmem:[%s2784_s5 + $0x28] sm:$0xf] %vm1765_vm1, %v1743_v56  ;;  %v1644_v62 = vmul.f32 %v1531_v52, %v1452_v61  ;;  %v1204_v63 = vpop.f32.mrf.mxu2  ;;  %v1029_v4 = vpop.f32.mrf.mxu0 }
 0x11a   : > { %v1293_v0 = vpop.f32.mrf.mxu3  ;;  %v1205_v3 = vadd.f32 %v1204_v63, %v1116_v60  ;;  %v1118_v6 = vpop.f32.mrf.mxu1 }
 0x11b   : > { %v1680_v9 = vadd.f32 %v2774_v5, %v1644_v62  ;;  %v1119_v15 = vadd.f32 %v1118_v6, %v1029_v4 }
 0x11c   : > { %v1294_v11 = vadd.f32 %v1293_v0, %v1205_v3  ;;  %1068 = vmatmul.bf16.gmra.mxu0 %v2152_v1 }
 0x11d   : > { %v1712_v12 = vmax.f32 %v1680_v9, 0.0  ;;  %1157 = vmatmul.bf16.gmra.mxu1 %v2156_v2 }
 0x11e   : > { %v1354_v14 = vadd.f32 %v1294_v11, %v326_v10  ;;  %1246 = vmatmul.bf16.gmra.mxu2 %v2160_v7  ;;  %v330_v7 = vld [vmem:[#allocation2 + $0x88] sm:$0xff]  ;;  %v1556_v10 = vpop.permute.xlu1 %1555 }
 0x11f   : > { %1335 = vmatmul.bf16.gmra.mxu3 %v2164_v8  ;;  %v1744_v16 = vpack.c.bf16 %v1712_v12, %v1712_v12  ;;  %v1453_v17 = vld [vmem:[#allocation2 + $0x60] sm:$0xff] }
 0x120   : > { %1387 = vst.msk [vmem:[#allocation2 + $0x68] sm:$0xff] %vm280_vm0, %v1354_v14  ;;  %v1645_v18 = vmul.f32 %v1536_v13, %v1453_v17 }
 0x121   : > { %1777 = vst.msk [vmem:[%s2784_s5 + $0x2c] sm:$0xf] %vm1765_vm1, %v1744_v16  ;;  %v1207_v19 = vpop.f32.mrf.mxu2  ;;  %v1031_v23 = vpop.f32.mrf.mxu0 }
 0x122   : > { %v1296_v20 = vpop.f32.mrf.mxu3  ;;  %v1681_v21 = vadd.f32 %v2774_v5, %v1645_v18  ;;  %v1208_v22 = vadd.f32 %v1207_v19, %v1119_v15  ;;  %v1120_v24 = vpop.f32.mrf.mxu1 }
 0x123   : > { %v1121_v32 = vadd.f32 %v1120_v24, %v1031_v23 }
 0x124   : > { %v1713_v26 = vmax.f32 %v1681_v21, 0.0  ;;  %v1297_v27 = vadd.f32 %v1296_v20, %v1208_v22  ;;  %v331_v22 = vld [vmem:[#allocation2 + $0x90] sm:$0xff] }
 0x126   : > { %v1745_v29 = vpack.c.bf16 %v1713_v26, %v1713_v26  ;;  %v1355_v30 = vadd.f32 %v1297_v27, %v327_v25  ;;  %v1561_v25 = vpop.permute.xlu2 %1560 }
 0x127   : > { %v1454_v31 = vld [vmem:[#allocation2 + $0x68] sm:$0xff] }
 0x128   : > { %1778 = vst.msk [vmem:[%s2784_s5 + $0x30] sm:$0xf] %vm1765_vm1, %v1745_v29  ;;  %v1646_v33 = vmul.f32 %v1541_v28, %v1454_v31 }
 0x129   : > { %1388 = vst.msk [vmem:[#allocation2 + $0x70] sm:$0xff] %vm280_vm0, %v1355_v30  ;;  %v1209_v34 = vpop.f32.mrf.mxu2  ;;  %v1034_v38 = vpop.f32.mrf.mxu0 }
 0x12a   : > { %v1298_v35 = vpop.f32.mrf.mxu3  ;;  %v1682_v36 = vadd.f32 %v2774_v5, %v1646_v33  ;;  %v1210_v37 = vadd.f32 %v1209_v34, %v1121_v32  ;;  %v1123_v39 = vpop.f32.mrf.mxu1 }
 0x12b   : > { %v1124_v45 = vadd.f32 %v1123_v39, %v1034_v38 }
 0x12c   : > { %v1714_v41 = vmax.f32 %v1682_v36, 0.0  ;;  %v1299_v42 = vadd.f32 %v1298_v35, %v1210_v37  ;;  %v332_v37 = vld [vmem:[#allocation2 + $0x98] sm:$0xff] }
 0x12e   : > { %v1746_v43 = vpack.c.bf16 %v1714_v41, %v1714_v41  ;;  %v1356_v44 = vadd.f32 %v1299_v42, %v328_v40 }
 0x130   : > { %1779 = vst.msk [vmem:[%s2784_s5 + $0x34] sm:$0xf] %vm1765_vm1, %v1746_v43  ;;  %v1455_v47 = vld [vmem:[#allocation2 + $0x70] sm:$0xff]  ;;  %v1566_v43 = vpop.permute.xlu0 %1565 }
 0x131   : > { %1389 = vst.msk [vmem:[#allocation2 + $0x78] sm:$0xff] %vm280_vm0, %v1356_v44  ;;  %v1647_v48 = vmul.f32 %v1546_v46, %v1455_v47  ;;  %v1212_v49 = vpop.f32.mrf.mxu2  ;;  %v1036_v52 = vpop.f32.mrf.mxu0 }
 0x132   : > { %v1301_v50 = vpop.f32.mrf.mxu3  ;;  %v1213_v51 = vadd.f32 %v1212_v49, %v1124_v45  ;;  %v1125_v53 = vpop.f32.mrf.mxu1 }
 0x133   : > { %v1683_v54 = vadd.f32 %v2774_v5, %v1647_v48  ;;  %v1126_v61 = vadd.f32 %v1125_v53, %v1036_v52  ;;  %v333_v52 = vld [vmem:[#allocation2 + $0xa0] sm:$0xff] }
 0x134   : > { %v1302_v56 = vadd.f32 %v1301_v50, %v1213_v51 }
 0x135   : > { %v1715_v57 = vmax.f32 %v1683_v54, 0.0 }
 0x136   : > { %v1357_v58 = vadd.f32 %v1302_v56, %v329_v55 }
 0x137   : > { %v1747_v60 = vpack.c.bf16 %v1715_v57, %v1715_v57  ;;  %v1571_v57 = vpop.permute.xlu1 %1570 }
 0x138   : > { %1390 = vst.msk [vmem:[#allocation2 + $0x80] sm:$0xff] %vm280_vm0, %v1357_v58  ;;  %v1456_v62 = vld [vmem:[#allocation2 + $0x78] sm:$0xff] }
 0x139   : > { %1780 = vst.msk [vmem:[%s2784_s5 + $0x38] sm:$0xf] %vm1765_vm1, %v1747_v60  ;;  %v1648_v63 = vmul.f32 %v1551_v59, %v1456_v62  ;;  %v1214_v0 = vpop.f32.mrf.mxu2  ;;  %v1039_v3 = vpop.f32.mrf.mxu0 }
 0x13a   : > { %v1303_v1 = vpop.f32.mrf.mxu3  ;;  %v1215_v2 = vadd.f32 %v1214_v0, %v1126_v61  ;;  %v1128_v4 = vpop.f32.mrf.mxu1 }
 0x13b   : > { %v1684_v6 = vadd.f32 %v2774_v5, %v1648_v63  ;;  %v1129_v12 = vadd.f32 %v1128_v4, %v1039_v3  ;;  %v334_v3 = vld [vmem:[#allocation2 + $0xa8] sm:$0xff] }
 0x13c   : > { %v1304_v8 = vadd.f32 %v1303_v1, %v1215_v2 }
 0x13d   : > { %v1716_v9 = vmax.f32 %v1684_v6, 0.0 }
 0x13e   : > { %v1358_v11 = vadd.f32 %v1304_v8, %v330_v7 }
 0x13f   : > { %v1748_v13 = vpack.c.bf16 %v1716_v9, %v1716_v9  ;;  %v1457_v14 = vld [vmem:[#allocation2 + $0x80] sm:$0xff] }
 0x140   : > { %1391 = vst.msk [vmem:[#allocation2 + $0x88] sm:$0xff] %vm280_vm0, %v1358_v11  ;;  %v1649_v15 = vmul.f32 %v1556_v10, %v1457_v14  ;;  %v1576_v10 = vpop.permute.xlu2 %1575 }
 0x141   : > { %1781 = vst.msk [vmem:[%s2784_s5 + $0x3c] sm:$0xf] %vm1765_vm1, %v1748_v13  ;;  %v1217_v16 = vpop.f32.mrf.mxu2  ;;  %v1041_v20 = vpop.f32.mrf.mxu0 }
 0x142   : > { %v1306_v17 = vpop.f32.mrf.mxu3  ;;  %v1685_v18 = vadd.f32 %v2774_v5, %v1649_v15  ;;  %v1218_v19 = vadd.f32 %v1217_v16, %v1129_v12  ;;  %v1130_v21 = vpop.f32.mrf.mxu1 }
 0x143   : > { %v1131_v29 = vadd.f32 %v1130_v21, %v1041_v20 }
 0x144   : > { %v1717_v23 = vmax.f32 %v1685_v18, 0.0  ;;  %v1307_v24 = vadd.f32 %v1306_v17, %v1218_v19  ;;  %v335_v19 = vld [vmem:[#allocation2 + $0xb0] sm:$0xff] }
 0x146   : > { %v1749_v26 = vpack.c.bf16 %v1717_v23, %v1717_v23  ;;  %v1359_v27 = vadd.f32 %v1307_v24, %v331_v22  ;;  %v1581_v24 = vpop.permute.xlu0 %1580 }
 0x147   : > { %v1458_v28 = vld [vmem:[#allocation2 + $0x88] sm:$0xff] }
 0x148   : > { %1782 = vst.msk [vmem:[%s2784_s5 + $0x40] sm:$0xf] %vm1765_vm1, %v1749_v26  ;;  %v1650_v30 = vmul.f32 %v1561_v25, %v1458_v28 }
 0x149   : > { %1392 = vst.msk [vmem:[#allocation2 + $0x90] sm:$0xff] %vm280_vm0, %v1359_v27  ;;  %v1219_v31 = vpop.f32.mrf.mxu2  ;;  %v1044_v35 = vpop.f32.mrf.mxu0 }
 0x14a   : > { %v1308_v32 = vpop.f32.mrf.mxu3  ;;  %v1686_v33 = vadd.f32 %v2774_v5, %v1650_v30  ;;  %v1220_v34 = vadd.f32 %v1219_v31, %v1131_v29  ;;  %v1133_v36 = vpop.f32.mrf.mxu1 }
 0x14b   : > { %v1134_v42 = vadd.f32 %v1133_v36, %v1044_v35 }
 0x14c   : > { %v1718_v38 = vmax.f32 %v1686_v33, 0.0  ;;  %v1309_v39 = vadd.f32 %v1308_v32, %v1220_v34  ;;  %v336_v34 = vld [vmem:[#allocation2 + $0xb8] sm:$0xff] }
 0x14e   : > { %v1750_v40 = vpack.c.bf16 %v1718_v38, %v1718_v38  ;;  %v1360_v41 = vadd.f32 %v1309_v39, %v332_v37 }
 0x150   : > { %1783 = vst.msk [vmem:[%s2784_s5 + $0x44] sm:$0xf] %vm1765_vm1, %v1750_v40  ;;  %v1459_v44 = vld [vmem:[#allocation2 + $0x90] sm:$0xff]  ;;  %v1586_v40 = vpop.permute.xlu1 %1585 }
 0x151   : > { %v1651_v45 = vmul.f32 %v1566_v43, %v1459_v44  ;;  %1393 = vst.msk [vmem:[#allocation2 + $0x98] sm:$0xff] %vm280_vm0, %v1360_v41  ;;  %v1222_v46 = vpop.f32.mrf.mxu2  ;;  %v1046_v49 = vpop.f32.mrf.mxu0 }
 0x152   : > { %v1311_v47 = vpop.f32.mrf.mxu3  ;;  %v1223_v48 = vadd.f32 %v1222_v46, %v1134_v42  ;;  %v1135_v50 = vpop.f32.mrf.mxu1 }
 0x153   : > { %v1687_v51 = vadd.f32 %v2774_v5, %v1651_v45  ;;  %v1136_v59 = vadd.f32 %v1135_v50, %v1046_v49  ;;  %v337_v49 = vld [vmem:[#allocation2 + $0xc0] sm:$0xff] }
 0x154   : > { %v1312_v53 = vadd.f32 %v1311_v47, %v1223_v48 }
 0x155   : > { %v1719_v54 = vmax.f32 %v1687_v51, 0.0 }
 0x156   : > { %v1361_v55 = vadd.f32 %v1312_v53, %v333_v52 }
 0x157   : > { %v1751_v56 = vpack.c.bf16 %v1719_v54, %v1719_v54  ;;  %v1591_v54 = vpop.permute.xlu2 %1590 }
 0x158   : > { %v1460_v58 = vld [vmem:[#allocation2 + $0x98] sm:$0xff]  ;;  %1394 = vst.msk [vmem:[#allocation2 + $0xa0] sm:$0xff] %vm280_vm0, %v1361_v55 }
 0x159   : > { %1784 = vst.msk [vmem:[%s2784_s5 + $0x48] sm:$0xf] %vm1765_vm1, %v1751_v56  ;;  %v1652_v60 = vmul.f32 %v1571_v57, %v1460_v58  ;;  %v1224_v61 = vpop.f32.mrf.mxu2  ;;  %v1049_v0 = vpop.f32.mrf.mxu0 }
 0x15a   : > { %v1313_v62 = vpop.f32.mrf.mxu3  ;;  %v1225_v63 = vadd.f32 %v1224_v61, %v1136_v59  ;;  %v1138_v1 = vpop.f32.mrf.mxu1 }
 0x15b   : > { %v1688_v2 = vadd.f32 %v2774_v5, %v1652_v60  ;;  %v1139_v8 = vadd.f32 %v1138_v1, %v1049_v0  ;;  %v338_v0 = vld [vmem:[#allocation2 + $0xc8] sm:$0xff] }
 0x15c   : > { %v1314_v4 = vadd.f32 %v1313_v62, %v1225_v63 }
 0x15d   : > { %v1720_v6 = vmax.f32 %v1688_v2, 0.0 }
 0x15e   : > { %v1362_v7 = vadd.f32 %v1314_v4, %v334_v3 }
 0x15f   : > { %v1752_v9 = vpack.c.bf16 %v1720_v6, %v1720_v6  ;;  %v1461_v11 = vld [vmem:[#allocation2 + $0xa0] sm:$0xff]  ;;  %v1596_v6 = vpop.permute.xlu0 %1595 }
 0x160   : > { %v1653_v12 = vmul.f32 %v1576_v10, %v1461_v11  ;;  %1395 = vst.msk [vmem:[#allocation2 + $0xa8] sm:$0xff] %vm280_vm0, %v1362_v7 }
 0x161   : > { %1785 = vst.msk [vmem:[%s2784_s5 + $0x4c] sm:$0xf] %vm1765_vm1, %v1752_v9  ;;  %v1227_v13 = vpop.f32.mrf.mxu2  ;;  %v1051_v17 = vpop.f32.mrf.mxu0 }
 0x162   : > { %v1316_v14 = vpop.f32.mrf.mxu3  ;;  %v1689_v15 = vadd.f32 %v2774_v5, %v1653_v12  ;;  %v1228_v16 = vadd.f32 %v1227_v13, %v1139_v8  ;;  %v1140_v18 = vpop.f32.mrf.mxu1 }
 0x163   : > { %v1141_v27 = vadd.f32 %v1140_v18, %v1051_v17 }
 0x164   : > { %v1721_v20 = vmax.f32 %v1689_v15, 0.0  ;;  %v1317_v21 = vadd.f32 %v1316_v14, %v1228_v16  ;;  %v339_v16 = vld [vmem:[#allocation2 + $0xd0] sm:$0xff] }
 0x166   : > { %v1753_v22 = vpack.c.bf16 %v1721_v20, %v1721_v20  ;;  %v1363_v23 = vadd.f32 %v1317_v21, %v335_v19  ;;  %v1601_v21 = vpop.permute.xlu1 %1600 }
 0x167   : > { %v1462_v25 = vld [vmem:[#allocation2 + $0xa8] sm:$0xff] }
 0x168   : > { %1786 = vst.msk [vmem:[%s2784_s5 + $0x50] sm:$0xf] %vm1765_vm1, %v1753_v22  ;;  %v1654_v26 = vmul.f32 %v1581_v24, %v1462_v25 }
 0x169   : > { %1396 = vst.msk [vmem:[#allocation2 + $0xb0] sm:$0xff] %vm280_vm0, %v1363_v23  ;;  %v1229_v28 = vpop.f32.mrf.mxu2  ;;  %v1054_v32 = vpop.f32.mrf.mxu0 }
 0x16a   : > { %v1318_v29 = vpop.f32.mrf.mxu3  ;;  %v1690_v30 = vadd.f32 %v2774_v5, %v1654_v26  ;;  %v1230_v31 = vadd.f32 %v1229_v28, %v1141_v27  ;;  %v1143_v33 = vpop.f32.mrf.mxu1 }
 0x16b   : > { %v1144_v39 = vadd.f32 %v1143_v33, %v1054_v32 }
 0x16c   : > { %v1722_v35 = vmax.f32 %v1690_v30, 0.0  ;;  %v1319_v36 = vadd.f32 %v1318_v29, %v1230_v31  ;;  %v340_v31 = vld [vmem:[#allocation2 + $0xd8] sm:$0xff] }
 0x16e   : > { %v1754_v37 = vpack.c.bf16 %v1722_v35, %v1722_v35  ;;  %v1364_v38 = vadd.f32 %v1319_v36, %v336_v34 }
 0x170   : > { %1787 = vst.msk [vmem:[%s2784_s5 + $0x54] sm:$0xf] %vm1765_vm1, %v1754_v37  ;;  %v1463_v41 = vld [vmem:[#allocation2 + $0xb0] sm:$0xff]  ;;  %v1606_v37 = vpop.permute.xlu2 %1605 }
 0x171   : > { %v1655_v42 = vmul.f32 %v1586_v40, %v1463_v41  ;;  %1397 = vst.msk [vmem:[#allocation2 + $0xb8] sm:$0xff] %vm280_vm0, %v1364_v38  ;;  %v1232_v43 = vpop.f32.mrf.mxu2  ;;  %v1056_v46 = vpop.f32.mrf.mxu0 }
 0x172   : > { %v1321_v44 = vpop.f32.mrf.mxu3  ;;  %v1233_v45 = vadd.f32 %v1232_v43, %v1144_v39  ;;  %v1145_v47 = vpop.f32.mrf.mxu1 }
 0x173   : > { %v1691_v48 = vadd.f32 %v2774_v5, %v1655_v42  ;;  %v1146_v56 = vadd.f32 %v1145_v47, %v1056_v46  ;;  %v2937_v5 = vld [vmem:[%s2985_s3] ss:$0 sm:$0xff] }
 0x174   : > { %v1322_v50 = vadd.f32 %v1321_v44, %v1233_v45  ;;  %v341_v46 = vld [vmem:[#allocation2 + $0xe0] sm:$0xff] }
 0x175   : > { %v1723_v51 = vmax.f32 %v1691_v48, 0.0 }
 0x176   : > { %v1365_v52 = vadd.f32 %v1322_v50, %v337_v49 }
 0x177   : > { %v1755_v53 = vpack.c.bf16 %v1723_v51, %v1723_v51  ;;  %v1611_v51 = vpop.permute.xlu0 %1610 }
 0x178   : > { %v1464_v55 = vld [vmem:[#allocation2 + $0xb8] sm:$0xff]  ;;  %1398 = vst.msk [vmem:[#allocation2 + $0xc0] sm:$0xff] %vm280_vm0, %v1365_v52 }
 0x179   : > { %1788 = vst.msk [vmem:[%s2784_s5 + $0x58] sm:$0xf] %vm1765_vm1, %v1755_v53  ;;  %v1656_v57 = vmul.f32 %v1591_v54, %v1464_v55  ;;  %v1234_v58 = vpop.f32.mrf.mxu2  ;;  %v1059_v61 = vpop.f32.mrf.mxu0 }
 0x17a   : > { %v1323_v59 = vpop.f32.mrf.mxu3  ;;  %v1235_v60 = vadd.f32 %v1234_v58, %v1146_v56  ;;  %v1148_v62 = vpop.f32.mrf.mxu1 }
 0x17b   : > { %v1692_v63 = vadd.f32 %v2937_v5, %v1656_v57  ;;  %v1149_v4 = vadd.f32 %v1148_v62, %v1059_v61 }
 0x17c   : > { %v1324_v1 = vadd.f32 %v1323_v59, %v1235_v60  ;;  %v342_v59 = vld [vmem:[#allocation2 + $0xe8] sm:$0xff] }
 0x17d   : > { %v1724_v2 = vmax.f32 %v1692_v63, 0.0 }
 0x17e   : > { %v1366_v3 = vadd.f32 %v1324_v1, %v338_v0 }
 0x17f   : > { %v1756_v7 = vpack.c.bf16 %v1724_v2, %v1724_v2  ;;  %v1465_v8 = vld [vmem:[#allocation2 + $0xc0] sm:$0xff]  ;;  %v1616_v2 = vpop.permute.xlu1 %1615 }
 0x180   : > { %v1657_v9 = vmul.f32 %v1596_v6, %v1465_v8  ;;  %1399 = vst.msk [vmem:[#allocation2 + $0xc8] sm:$0xff] %vm280_vm0, %v1366_v3 }
 0x181   : > { %1789 = vst.msk [vmem:[%s2784_s5 + $0x5c] sm:$0xf] %vm1765_vm1, %v1756_v7  ;;  %v1237_v10 = vpop.f32.mrf.mxu2  ;;  %v1061_v14 = vpop.f32.mrf.mxu0 }
 0x182   : > { %v1326_v11 = vpop.f32.mrf.mxu3  ;;  %v1693_v12 = vadd.f32 %v2937_v5, %v1657_v9  ;;  %v1238_v13 = vadd.f32 %v1237_v10, %v1149_v4  ;;  %v1150_v15 = vpop.f32.mrf.mxu1 }
 0x183   : > { %v1151_v24 = vadd.f32 %v1150_v15, %v1061_v14 }
 0x184   : > { %v1725_v17 = vmax.f32 %v1693_v12, 0.0  ;;  %v1327_v18 = vadd.f32 %v1326_v11, %v1238_v13  ;;  %v343_v11 = vld [vmem:[#allocation2 + $0xf0] sm:$0xff] }
 0x186   : > { %v1757_v19 = vpack.c.bf16 %v1725_v17, %v1725_v17  ;;  %v1367_v20 = vadd.f32 %v1327_v18, %v339_v16  ;;  %v1621_v18 = vpop.permute.xlu2 %1620 }
 0x187   : > { %v1466_v22 = vld [vmem:[#allocation2 + $0xc8] sm:$0xff] }
 0x188   : > { %1790 = vst.msk [vmem:[%s2784_s5 + $0x60] sm:$0xf] %vm1765_vm1, %v1757_v19  ;;  %v1658_v23 = vmul.f32 %v1601_v21, %v1466_v22 }
 0x189   : > { %1400 = vst.msk [vmem:[#allocation2 + $0xd0] sm:$0xff] %vm280_vm0, %v1367_v20  ;;  %v1239_v25 = vpop.f32.mrf.mxu2  ;;  %v1064_v29 = vpop.f32.mrf.mxu0 }
 0x18a   : > { %v1328_v26 = vpop.f32.mrf.mxu3  ;;  %v1694_v27 = vadd.f32 %v2937_v5, %v1658_v23  ;;  %v1240_v28 = vadd.f32 %v1239_v25, %v1151_v24  ;;  %v1153_v30 = vpop.f32.mrf.mxu1  ;;  %v344_v25 = vld [vmem:[#allocation2 + $0xf8] sm:$0xff] }
 0x18b   : > { %v1154_v36 = vadd.f32 %v1153_v30, %v1064_v29 }
 0x18c   : > { %v1726_v32 = vmax.f32 %v1694_v27, 0.0  ;;  %v1329_v33 = vadd.f32 %v1328_v26, %v1240_v28 }
 0x18e   : > { %v1758_v34 = vpack.c.bf16 %v1726_v32, %v1726_v32  ;;  %v1368_v35 = vadd.f32 %v1329_v33, %v340_v31  ;;  %v1626_v31 = vpop.permute.xlu0 %1625 }
 0x190   : > { %1791 = vst.msk [vmem:[%s2784_s5 + $0x64] sm:$0xf] %vm1765_vm1, %v1758_v34  ;;  %v1467_v38 = vld [vmem:[#allocation2 + $0xd0] sm:$0xff] }
 0x191   : > { %v1659_v39 = vmul.f32 %v1606_v37, %v1467_v38  ;;  %1401 = vst.msk [vmem:[#allocation2 + $0xd8] sm:$0xff] %vm280_vm0, %v1368_v35  ;;  %v1242_v40 = vpop.f32.mrf.mxu2  ;;  %v1066_v43 = vpop.f32.mrf.mxu0 }
 0x192   : > { %v1331_v41 = vpop.f32.mrf.mxu3  ;;  %v1243_v42 = vadd.f32 %v1242_v40, %v1154_v36  ;;  %v1155_v44 = vpop.f32.mrf.mxu1 }
 0x193   : > { %v1695_v45 = vadd.f32 %v2937_v5, %v1659_v39  ;;  %v1156_v53 = vadd.f32 %v1155_v44, %v1066_v43  ;;  %v1631_v37 = vpop.permute.xlu1 %1630 }
 0x194   : > { %v1332_v47 = vadd.f32 %v1331_v41, %v1243_v42 }
 0x195   : > { %v1727_v48 = vmax.f32 %v1695_v45, 0.0 }
 0x196   : > { %v1369_v49 = vadd.f32 %v1332_v47, %v341_v46 }
 0x197   : > { %v1759_v50 = vpack.c.bf16 %v1727_v48, %v1727_v48 }
 0x198   : > { %v1468_v52 = vld [vmem:[#allocation2 + $0xd8] sm:$0xff]  ;;  %1402 = vst.msk [vmem:[#allocation2 + $0xe0] sm:$0xff] %vm280_vm0, %v1369_v49 }
 0x199   : > { %1792 = vst.msk [vmem:[%s2784_s5 + $0x68] sm:$0xf] %vm1765_vm1, %v1759_v50  ;;  %v1660_v54 = vmul.f32 %v1611_v51, %v1468_v52  ;;  %v1244_v55 = vpop.f32.mrf.mxu2  ;;  %v1069_v60 = vpop.f32.mrf.mxu0 }
 0x19a   : > { %v1333_v56 = vpop.f32.mrf.mxu3  ;;  %v1245_v57 = vadd.f32 %v1244_v55, %v1156_v53  ;;  %v1158_v61 = vpop.f32.mrf.mxu1 }
 0x19b   : > { %v1696_v58 = vadd.f32 %v2937_v5, %v1660_v54  ;;  %v1159_v1 = vadd.f32 %v1158_v61, %v1069_v60 }
 0x19c   : > { %v1334_v62 = vadd.f32 %v1333_v56, %v1245_v57 }
 0x19d   : > { %v1728_v63 = vmax.f32 %v1696_v58, 0.0 }
 0x19e   : > { %v1370_v0 = vadd.f32 %v1334_v62, %v342_v59 }
 0x19f   : > { %v1760_v3 = vpack.c.bf16 %v1728_v63, %v1728_v63  ;;  %v1469_v4 = vld [vmem:[#allocation2 + $0xe0] sm:$0xff] }
 0x1a0   : > { %v1661_v6 = vmul.f32 %v1616_v2, %v1469_v4  ;;  %1403 = vst.msk [vmem:[#allocation2 + $0xe8] sm:$0xff] %vm280_vm0, %v1370_v0 }
 0x1a1   : > { %1793 = vst.msk [vmem:[%s2784_s5 + $0x6c] sm:$0xf] %vm1765_vm1, %v1760_v3  ;;  %v1247_v7 = vpop.f32.mrf.mxu2  ;;  %v1071_v14 = vpop.f32.mrf.mxu0 }
 0x1a2   : > { %v1336_v8 = vpop.f32.mrf.mxu3  ;;  %v1697_v9 = vadd.f32 %v2937_v5, %v1661_v6  ;;  %v1248_v10 = vadd.f32 %v1247_v7, %v1159_v1  ;;  %v1160_v15 = vpop.f32.mrf.mxu1 }
 0x1a3   : > { %v1161_v21 = vadd.f32 %v1160_v15, %v1071_v14 }
 0x1a4   : > { %v1729_v12 = vmax.f32 %v1697_v9, 0.0  ;;  %v1337_v13 = vadd.f32 %v1336_v8, %v1248_v10 }
 0x1a6   : > { %v1761_v16 = vpack.c.bf16 %v1729_v12, %v1729_v12  ;;  %v1371_v17 = vadd.f32 %v1337_v13, %v343_v11 }
 0x1a7   : > { %v1470_v19 = vld [vmem:[#allocation2 + $0xe8] sm:$0xff] }
 0x1a8   : > { %1794 = vst.msk [vmem:[%s2784_s5 + $0x70] sm:$0xf] %vm1765_vm1, %v1761_v16  ;;  %v1662_v20 = vmul.f32 %v1621_v18, %v1470_v19 }
 0x1a9   : > { %1404 = vst.msk [vmem:[#allocation2 + $0xf0] sm:$0xff] %vm280_vm0, %v1371_v17  ;;  %v1249_v22 = vpop.f32.mrf.mxu2 }
 0x1aa   : > { %v1698_v23 = vadd.f32 %v2937_v5, %v1662_v20  ;;  %v1250_v24 = vadd.f32 %v1249_v22, %v1161_v21  ;;  %v1338_v26 = vpop.f32.mrf.mxu3 }
 0x1ac   : > { %v1730_v27 = vmax.f32 %v1698_v23, 0.0  ;;  %v1339_v28 = vadd.f32 %v1338_v26, %v1250_v24 }
 0x1ae   : > { %v1762_v29 = vpack.c.bf16 %v1730_v27, %v1730_v27  ;;  %v1372_v30 = vadd.f32 %v1339_v28, %v344_v25 }
 0x1b0   : > { %1795 = vst.msk [vmem:[%s2784_s5 + $0x74] sm:$0xf] %vm1765_vm1, %v1762_v29  ;;  %v1471_v32 = vld [vmem:[#allocation2 + $0xf0] sm:$0xff] }
 0x1b1   : > { %v1663_v33 = vmul.f32 %v1626_v31, %v1471_v32  ;;  %1405 = vst.msk [vmem:[#allocation2 + $0xf8] sm:$0xff] %vm280_vm0, %v1372_v30 }
 0x1b3   : > { %v1699_v34 = vadd.f32 %v2937_v5, %v1663_v33 }
 0x1b5   : > { %v1731_v35 = vmax.f32 %v1699_v34, 0.0 }
 0x1b7   : > { %v1763_v36 = vpack.c.bf16 %v1731_v35, %v1731_v35 }
 0x1b8   : > { %v1472_v38 = vld [vmem:[#allocation2 + $0xf8] sm:$0xff] }
 0x1b9   : > { %1796 = vst.msk [vmem:[%s2784_s5 + $0x78] sm:$0xf] %vm1765_vm1, %v1763_v36  ;;  %v1664_v39 = vmul.f32 %v1631_v37, %v1472_v38 }
 0x1bb   : > { %v1700_v40 = vadd.f32 %v2937_v5, %v1664_v39 }
 0x1bd   : > { %v1732_v41 = vmax.f32 %v1700_v40, 0.0 }
 0x1bf   : > { %v1764_v42 = vpack.c.bf16 %v1732_v41, %v1732_v41 }
 0x1c1   : > { %1797 = vst.msk [vmem:[%s2784_s5 + $0x7c] sm:$0xf] %vm1765_vm1, %v1764_v42 }
 0x1c2 PF: > { %s14_s17 = sadd.s32 1, %s2445_s17   ;;  %s2987_s15 = smov %s2441_s16 }
 0x1c3   : > { %p11_p5 = scmp.ge.s32.totalorder %s14_s17, 4   ;;  %s2988_s16 = smov %s2990_s18 }
 0x1c5   :  { %13 = sbr.rel (!%p11_p5) target bundleno = 2 (0x2), region = 80 }

// kernel: gnn_forward.3
= control target key start
LH: loop header
LB: loop body
LE: loop exit
PB: predicated region body
PF: predicated region fallthrough
CT: control target
= control target key end

     0   :  { %s3533_s15 = smov 0   ;;  %s3535_s16 = smov 0   ;;  %s4593_s0 = inlined_call_operand.vmem [shape: bf16[512,512], index: 0, kind: input, shape index: {}]   ;;  %s4594_s1 = inlined_call_operand.vmem [shape: f32[512,1], index: 1, kind: input, shape index: {}]   ;;  %s4595_s2 = inlined_call_operand.vmem [shape: bf16[512,2], index: 2, kind: input, shape index: {}]   ;;  %s4596_s3 = inlined_call_operand.vmem [shape: f32[1,2], index: 3, kind: input, shape index: {}]   ;;  %s4597_s4 = inlined_call_operand.vmem [shape: f32[512,2], index: 4, kind: output, shape index: {}]  }
   0x1   :  { %s3537_s17 = smov 0  }
   0x2 LB: > { %s26_s18 = sadd.s32 1, %s3498_s16  ;;  %p2764_p0 = scmp.ge.s32.totalorder %s3502_s17, 1  ;;  %s3502_s17 = sphi %s3537_s17, %s14_s17   ;;  %s3498_s16 = sphi %s3535_s16, %s4661_s16   ;;  %s3494_s15 = sphi %s3533_s15, %s4660_s15  }
   0x3   : > { %p28_p1 = scmp.ge.s32.totalorder %s26_s18, 2  ;;  %p205_p2 = scmp.lt.s32.totalorder %s3502_s17, 3 }
   0x5   : > { %s4663_s18 = smov (%p28_p1, %s26_s18), 0  ;;  %p206_p3 = pnand %p2764_p0, %p205_p2 }
   0x7   : > { %209 = sbr.rel (%p206_p3) target bundleno = 915 (0x393), region = 36 }
   0xc   : > { %v3230_v0 = vld [vmem:[%s4595_s2 + $0x38] sm:$0xff]  ;;  %s2765_s25 = sshll.u32 %s3494_s15, 5  ;;  %v3504_v4 = vmov 0   ;;  %v3229_v5 = vld [vmem:[%s4595_s2 + $0x30] sm:$0xff]  ;;  %v3228_v9 = vld [vmem:[%s4595_s2 + $0x28] sm:$0xff]  ;;  %vm280_vm0 = vcmask 15360  }
   0xd   : > { %v3238_v1 = vld [vmem:[%s4595_s2 + $0x78] sm:$0xff]  ;;  %3283 = vset.pattern.permute.xlu0 %v3504_v4  ;;  %p248_p4 = scmp.lt.s32.totalorder %s2765_s25, 63  ;;  %3284 = vset.pattern.permute.xlu1 %v3504_v4  ;;  %v3237_v6 = vld [vmem:[%s4595_s2 + $0x70] sm:$0xff]  ;;  %v3236_v10 = vld [vmem:[%s4595_s2 + $0x68] sm:$0xff]  ;;  %s3506_s5 = smov 127  }
   0xe   : > { %v3246_v2 = vld [vmem:[%s4595_s2 + $0xb8] sm:$0xff]  ;;  %985 = vmatpush.bf16.msra.mxu0 %v3230_v0  ;;  %1074 = vmatpush.bf16.msra.mxu1 %v3238_v1  ;;  %v3245_v7 = vld [vmem:[%s4595_s2 + $0xb0] sm:$0xff]  ;;  %v3244_v11 = vld [vmem:[%s4595_s2 + $0xa8] sm:$0xff]  ;;  %s3507_s6 = smov 1  }
   0xf   : > { %v3254_v3 = vld [vmem:[%s4595_s2 + $0xf8] sm:$0xff]  ;;  %1163 = vmatpush.bf16.msra.mxu2 %v3246_v2  ;;  %v3253_v8 = vld [vmem:[%s4595_s2 + $0xf0] sm:$0xff]  ;;  %s4665_s25 = smov (!%p248_p4, %s2765_s25), 63  ;;  %3285 = vset.pattern.permute.xlu2 %v3504_v4  ;;  %v3252_v12 = vld [vmem:[%s4595_s2 + $0xe8] sm:$0xff] }
  0x10   : > { %1252 = vmatpush.bf16.msra.mxu3 %v3254_v3  ;;  %s2769_s10 = sshll.u32 %s4665_s25, 3  ;;  %v3227_v14 = vld [vmem:[%s4595_s2 + $0x20] sm:$0xff]  ;;  %v3226_v19 = vld [vmem:[%s4595_s2 + $0x18] sm:$0xff]  ;;  %v3225_v24 = vld [vmem:[%s4595_s2 + $0x10] sm:$0xff]  ;;  %s3158_s28 = sshll.u32 %s4665_s25, 4 }
  0x11   : > { %s3589_s20 = scalar_lea.vmem %s4594_s1, %s2769_s10  ;;  %v3235_v15 = vld [vmem:[%s4595_s2 + $0x60] sm:$0xff]  ;;  %v3234_v20 = vld [vmem:[%s4595_s2 + $0x58] sm:$0xff]  ;;  %v3233_v25 = vld [vmem:[%s4595_s2 + $0x50] sm:$0xff]  ;;  %s3643_s7 = scalar_lea.vmem %s4593_s0, %s3158_s28 }
  0x12   : > { %986 = vmatpush.bf16.msra.mxu0 %v3229_v5  ;;  %1075 = vmatpush.bf16.msra.mxu1 %v3237_v6  ;;  %v1409_v13 = vld [vmem:[%s3589_s20] sm:$0xff]  ;;  %v1410_v18 = vld [vmem:[%s3589_s20 + $0x8] sm:$0xff]  ;;  %v1411_v21 = vld [vmem:[%s3589_s20 + $0x10] sm:$0xff]  ;;  %s4436_s12 = scalar_lea.vmem %s4597_s4, %s2769_s10 }
  0x13   : > { %1164 = vmatpush.bf16.msra.mxu2 %v3245_v7  ;;  %1475 = vperm.xlu0 %3283, %v1409_v13   ;;  %v3243_v16 = vld [vmem:[%s4595_s2 + $0xa0] sm:$0xff]  ;;  %v3242_v22 = vld [vmem:[%s4595_s2 + $0x98] sm:$0xff]  ;;  %v3241_v26 = vld [vmem:[%s4595_s2 + $0x90] sm:$0xff] }
  0x14   : > { %1253 = vmatpush.bf16.msra.mxu3 %v3253_v8  ;;  %v3251_v17 = vld [vmem:[%s4595_s2 + $0xe0] sm:$0xff]  ;;  %v3250_v23 = vld [vmem:[%s4595_s2 + $0xd8] sm:$0xff]  ;;  %1485 = vperm.xlu1 %3284, %v1411_v21   ;;  %v3249_v27 = vld [vmem:[%s4595_s2 + $0xd0] sm:$0xff] }
  0x15   : > { %v1413_v28 = vld [vmem:[%s3589_s20 + $0x20] sm:$0xff]  ;;  %v1415_v29 = vld [vmem:[%s3589_s20 + $0x30] sm:$0xff]  ;;  %v1412_v30 = vld [vmem:[%s3589_s20 + $0x18] sm:$0xff] }
  0x16   : > { %987 = vmatpush.bf16.msra.mxu0 %v3228_v9  ;;  %1076 = vmatpush.bf16.msra.mxu1 %v3236_v10  ;;  %v3224_v31 = vld [vmem:[%s4595_s2 + $0x8] sm:$0xff]  ;;  %v3223_v35 = vld [vmem:[%s4595_s2] sm:$0xff]  ;;  %v3161_v40 = vld [vmem:[%s3643_s7 + $0xc] sm:$0xf0] }
  0x17   : > { %1165 = vmatpush.bf16.msra.mxu2 %v3244_v11  ;;  %1495 = vperm.xlu2 %3285, %v1413_v28   ;;  %v3232_v32 = vld [vmem:[%s4595_s2 + $0x48] sm:$0xff]  ;;  %v3231_v36 = vld [vmem:[%s4595_s2 + $0x40] sm:$0xff]  ;;  %v2776_v42 = vld [vmem:[%s3643_s7 + $0x10] sm:$0xf0] }
  0x18   : > { %1254 = vmatpush.bf16.msra.mxu3 %v3252_v12  ;;  %v3240_v33 = vld [vmem:[%s4595_s2 + $0x88] sm:$0xff]  ;;  %v3239_v37 = vld [vmem:[%s4595_s2 + $0x80] sm:$0xff]  ;;  %v3162_v44 = vld [vmem:[%s3643_s7 + $0x14] sm:$0xf0] }
  0x19   : > { %v3248_v34 = vld [vmem:[%s4595_s2 + $0xc8] sm:$0xff]  ;;  %v3247_v38 = vld [vmem:[%s4595_s2 + $0xc0] sm:$0xff]  ;;  %v2784_v46 = vld [vmem:[%s3643_s7 + $0x18] sm:$0xf0] }
  0x1a   : > { %988 = vmatpush.bf16.msra.mxu0 %v3227_v14  ;;  %1077 = vmatpush.bf16.msra.mxu1 %v3235_v15  ;;  %v2774_v39 = vld [vmem:[%s3643_s7] sm:$0xf]  ;;  %v3159_v41 = vld [vmem:[%s3643_s7 + $0x4] sm:$0xf]  ;;  %v2782_v43 = vld [vmem:[%s3643_s7 + $0x8] sm:$0xf] }
  0x1b   : > { %1166 = vmatpush.bf16.msra.mxu2 %v3243_v16  ;;  %1480 = vperm.xlu0 %3283, %v1410_v18   ;;  %v3160_v45 = vld [vmem:[%s3643_s7 + $0xc] sm:$0xf]  ;;  %v2775_v47 = vor.u32 %v3161_v40, %v2774_v39  ;;  %v2779_v48 = vor.u32 %v3159_v41, %v2776_v42  ;;  %v1416_v50 = vld [vmem:[%s3589_s20 + $0x38] sm:$0xff]  ;;  %v2783_v51 = vor.u32 %v3162_v44, %v2782_v43  ;;  %v1421_v54 = vld [vmem:[%s3589_s20 + $0x60] sm:$0xff] }
  0x1c   : > { %1255 = vmatpush.bf16.msra.mxu3 %v3251_v17  ;;  %1490 = vperm.xlu1 %3284, %v1412_v30   ;;  %v1418_v49 = vld [vmem:[%s3589_s20 + $0x48] sm:$0xff]  ;;  %v2787_v52 = vor.u32 %v3160_v45, %v2784_v46  ;;  %v1419_v55 = vld [vmem:[%s3589_s20 + $0x50] sm:$0xff]  ;;  %v1417_v56 = vld [vmem:[%s3589_s20 + $0x40] sm:$0xff] }
  0x1d   : > { %v1414_v53 = vld [vmem:[%s3589_s20 + $0x28] sm:$0xff]  ;;  %v2790_v57 = vld [vmem:[%s3643_s7 + $0x20] sm:$0xf]  ;;  %v3165_v58 = vld [vmem:[%s3643_s7 + $0x2c] sm:$0xf0] }
  0x1e   : > { %989 = vmatpush.bf16.msra.mxu0 %v3226_v19  ;;  %1078 = vmatpush.bf16.msra.mxu1 %v3234_v20  ;;  %v3163_v59 = vld [vmem:[%s3643_s7 + $0x24] sm:$0xf]  ;;  %v2792_v60 = vld [vmem:[%s3643_s7 + $0x30] sm:$0xf0]  ;;  %v2798_v61 = vld [vmem:[%s3643_s7 + $0x28] sm:$0xf]  ;;  %v2791_v1 = vor.u32 %v3165_v58, %v2790_v57 }
  0x1f   : > { %1167 = vmatpush.bf16.msra.mxu2 %v3242_v22  ;;  %1500 = vperm.xlu2 %3285, %v1414_v53   ;;  %v3166_v62 = vld [vmem:[%s3643_s7 + $0x34] sm:$0xf0]  ;;  %v3164_v63 = vld [vmem:[%s3643_s7 + $0x2c] sm:$0xf]  ;;  %v2800_v0 = vld [vmem:[%s3643_s7 + $0x38] sm:$0xf0]  ;;  %v2795_v2 = vor.u32 %v3163_v59, %v2792_v60 }
  0x20   : > { %1256 = vmatpush.bf16.msra.mxu3 %v3250_v23  ;;  %v1424_v3 = vld [vmem:[%s3589_s20 + $0x78] sm:$0xff]  ;;  %v1422_v4 = vld [vmem:[%s3589_s20 + $0x68] sm:$0xff]  ;;  %v2799_v5 = vor.u32 %v3166_v62, %v2798_v61  ;;  %v2803_v6 = vor.u32 %v3164_v63, %v2800_v0  ;;  %v1427_v8 = vld [vmem:[%s3589_s20 + $0x90] sm:$0xff] }
  0x21   : > { %v1420_v7 = vld [vmem:[%s3589_s20 + $0x58] sm:$0xff]  ;;  %v1425_v9 = vld [vmem:[%s3589_s20 + $0x80] sm:$0xff]  ;;  %v1423_v10 = vld [vmem:[%s3589_s20 + $0x70] sm:$0xff] }
  0x22   : > { %990 = vmatpush.bf16.msra.mxu0 %v3225_v24  ;;  %1079 = vmatpush.bf16.msra.mxu1 %v3233_v25  ;;  %v2806_v11 = vld [vmem:[%s3643_s7 + $0x40] sm:$0xf]  ;;  %v3169_v12 = vld [vmem:[%s3643_s7 + $0x4c] sm:$0xf0]  ;;  %v3167_v13 = vld [vmem:[%s3643_s7 + $0x44] sm:$0xf] }
  0x23   : > { %1168 = vmatpush.bf16.msra.mxu2 %v3241_v26  ;;  %1505 = vperm.xlu0 %3283, %v1415_v29   ;;  %v2808_v14 = vld [vmem:[%s3643_s7 + $0x50] sm:$0xf0]  ;;  %v2814_v15 = vld [vmem:[%s3643_s7 + $0x48] sm:$0xf]  ;;  %v3170_v16 = vld [vmem:[%s3643_s7 + $0x54] sm:$0xf0]  ;;  %v2807_v19 = vor.u32 %v3169_v12, %v2806_v11 }
  0x24   : > { %1257 = vmatpush.bf16.msra.mxu3 %v3249_v27  ;;  %1510 = vperm.xlu1 %3284, %v1416_v50   ;;  %v3168_v17 = vld [vmem:[%s3643_s7 + $0x4c] sm:$0xf]  ;;  %v2816_v18 = vld [vmem:[%s3643_s7 + $0x58] sm:$0xf0]  ;;  %v2811_v20 = vor.u32 %v3167_v13, %v2808_v14  ;;  %v2815_v23 = vor.u32 %v3170_v16, %v2814_v15  ;;  %v1433_v26 = vld [vmem:[%s3589_s20 + $0xc0] sm:$0xff] }
  0x25   : > { %v1430_v21 = vld [vmem:[%s3589_s20 + $0xa8] sm:$0xff]  ;;  %v1428_v22 = vld [vmem:[%s3589_s20 + $0x98] sm:$0xff]  ;;  %v2819_v24 = vor.u32 %v3168_v17, %v2816_v18  ;;  %v1431_v27 = vld [vmem:[%s3589_s20 + $0xb0] sm:$0xff] }
  0x26   : > { %991 = vmatpush.bf16.msra.mxu0 %v3224_v31  ;;  %1080 = vmatpush.bf16.msra.mxu1 %v3232_v32  ;;  %v1426_v25 = vld [vmem:[%s3589_s20 + $0x88] sm:$0xff]  ;;  %v1429_v28 = vld [vmem:[%s3589_s20 + $0xa0] sm:$0xff]  ;;  %v3173_v30 = vld [vmem:[%s3643_s7 + $0x6c] sm:$0xf0] }
  0x27   : > { %1169 = vmatpush.bf16.msra.mxu2 %v3240_v33  ;;  %1515 = vperm.xlu2 %3285, %v1417_v56   ;;  %v2822_v29 = vld [vmem:[%s3643_s7 + $0x60] sm:$0xf]  ;;  %v3171_v31 = vld [vmem:[%s3643_s7 + $0x64] sm:$0xf]  ;;  %v2824_v32 = vld [vmem:[%s3643_s7 + $0x70] sm:$0xf0] }
  0x28   : > { %1258 = vmatpush.bf16.msra.mxu3 %v3248_v34  ;;  %v2830_v33 = vld [vmem:[%s3643_s7 + $0x68] sm:$0xf]  ;;  %v3174_v34 = vld [vmem:[%s3643_s7 + $0x74] sm:$0xf0]  ;;  %v1439_v44 = vld [vmem:[%s3589_s20 + $0xf0] sm:$0xff] }
  0x29   : > { %v1436_v39 = vld [vmem:[%s3589_s20 + $0xd8] sm:$0xff]  ;;  %v1434_v40 = vld [vmem:[%s3589_s20 + $0xc8] sm:$0xff]  ;;  %v2831_v41 = vor.u32 %v3174_v34, %v2830_v33  ;;  %v1437_v45 = vld [vmem:[%s3589_s20 + $0xe0] sm:$0xff] }
  0x2a   : > { %992 = vmatpush.bf16.msra.mxu0 %v3223_v35  ;;  %1081 = vmatpush.bf16.msra.mxu1 %v3231_v36  ;;  %v3172_v35 = vld [vmem:[%s3643_s7 + $0x6c] sm:$0xf]  ;;  %v2832_v36 = vld [vmem:[%s3643_s7 + $0x78] sm:$0xf0]  ;;  %v1435_v46 = vld [vmem:[%s3589_s20 + $0xd0] sm:$0xff] }
  0x2b   : > { %1170 = vmatpush.bf16.msra.mxu2 %v3239_v37  ;;  %1520 = vperm.xlu0 %3283, %v1418_v49   ;;  %v2823_v37 = vor.u32 %v3173_v30, %v2822_v29  ;;  %v2835_v42 = vor.u32 %v3172_v35, %v2832_v36  ;;  %v1432_v43 = vld [vmem:[%s3589_s20 + $0xb8] sm:$0xff]  ;;  %v3175_v49 = vld [vmem:[%s3643_s7 + $0x84] sm:$0xf]  ;;  %v2840_v50 = vld [vmem:[%s3643_s7 + $0x90] sm:$0xf0] }
  0x2c   : > { %1259 = vmatpush.bf16.msra.mxu3 %v3247_v38  ;;  %1525 = vperm.xlu1 %3284, %v1419_v55   ;;  %v2827_v38 = vor.u32 %v3171_v31, %v2824_v32  ;;  %v3176_v53 = vld [vmem:[%s3643_s7 + $0x8c] sm:$0xf]  ;;  %v2843_v56 = vor.u32 %v3175_v49, %v2840_v50  ;;  %v1440_v57 = vld [vmem:[%s3589_s20 + $0xf8] sm:$0xff]  ;;  %v2854_v61 = vld [vmem:[%s3643_s7 + $0xa0] sm:$0xf] }
  0x2d   : > { %993 = vmatmul.bf16.vlgmr.msra.gmra.mxu0 %v2775_v47  ;;  %1082 = vmatmul.bf16.vlgmr.msra.gmra.mxu1 %v2779_v48  ;;  %v2838_v47 = vld [vmem:[%s3643_s7 + $0x80] sm:$0xf]  ;;  %v3177_v48 = vld [vmem:[%s3643_s7 + $0x8c] sm:$0xf0]  ;;  %v1438_v60 = vld [vmem:[%s3589_s20 + $0xe8] sm:$0xff] }
  0x2e   : > { %1171 = vmatmul.bf16.vlgmr.msra.gmra.mxu2 %v2783_v51  ;;  %v2846_v51 = vld [vmem:[%s3643_s7 + $0x88] sm:$0xf]  ;;  %v2839_v55 = vor.u32 %v3177_v48, %v2838_v47  ;;  %v3181_v62 = vld [vmem:[%s3643_s7 + $0xac] sm:$0xf0]  ;;  %v3179_v63 = vld [vmem:[%s3643_s7 + $0xa4] sm:$0xf] }
  0x2f   : > { %1260 = vmatmul.bf16.vlgmr.msra.gmra.mxu3 %v2787_v52  ;;  %1530 = vperm.xlu2 %3285, %v1420_v7   ;;  %v3178_v52 = vld [vmem:[%s3643_s7 + $0x94] sm:$0xf0]  ;;  %v2856_v0 = vld [vmem:[%s3643_s7 + $0xb0] sm:$0xf0]  ;;  %v3183_v11 = vld [vmem:[%s3643_s7 + $0xc4] sm:$0xf] }
  0x30   : > { %v2847_v58 = vor.u32 %v3178_v52, %v2846_v51  ;;  %v2872_v12 = vld [vmem:[%s3643_s7 + $0xd0] sm:$0xf0]  ;;  %v2878_v13 = vld [vmem:[%s3643_s7 + $0xc8] sm:$0xf]  ;;  %v3186_v14 = vld [vmem:[%s3643_s7 + $0xd4] sm:$0xf0] }
  0x31   : > { %v3184_v15 = vld [vmem:[%s3643_s7 + $0xcc] sm:$0xf]  ;;  %v2880_v16 = vld [vmem:[%s3643_s7 + $0xd8] sm:$0xf0]  ;;  %v2875_v18 = vor.u32 %v3183_v11, %v2872_v12  ;;  %v2910_v34 = vld [vmem:[%s3643_s7 + $0x108] sm:$0xf] }
  0x32   : > { %v2896_v29 = vld [vmem:[%s3643_s7 + $0xf8] sm:$0xf0]  ;;  %v3194_v35 = vld [vmem:[%s3643_s7 + $0x114] sm:$0xf0]  ;;  %v2902_v36 = vld [vmem:[%s3643_s7 + $0x100] sm:$0xf] }
  0x33   : > { %1535 = vperm.xlu0 %3283, %v1421_v54   ;;  %v2848_v54 = vld [vmem:[%s3643_s7 + $0x98] sm:$0xf0] }
  0x34   : > { %1540 = vperm.xlu1 %3284, %v1422_v4   ;;  %v2851_v59 = vor.u32 %v3176_v53, %v2848_v54  ;;  %v2864_v4 = vld [vmem:[%s3643_s7 + $0xb8] sm:$0xf0] }
  0x37   : > { %1545 = vperm.xlu2 %3285, %v1423_v10   ;;  %v3185_v10 = vld [vmem:[%s3643_s7 + $0xcc] sm:$0xf0] }
  0x3b   : > { %1550 = vperm.xlu0 %3283, %v1424_v3   ;;  %v3180_v3 = vld [vmem:[%s3643_s7 + $0xac] sm:$0xf] }
  0x3c   : > { %1555 = vperm.xlu1 %3284, %v1425_v9   ;;  %v2870_v9 = vld [vmem:[%s3643_s7 + $0xc0] sm:$0xf] }
  0x3d   : > { %998 = vmatmul.bf16.gmra.mxu0 %v2791_v1  ;;  %1087 = vmatmul.bf16.gmra.mxu1 %v2795_v2  ;;  %v2862_v1 = vld [vmem:[%s3643_s7 + $0xa8] sm:$0xf]  ;;  %v3182_v2 = vld [vmem:[%s3643_s7 + $0xb4] sm:$0xf0]  ;;  %v2871_v17 = vor.u32 %v3185_v10, %v2870_v9 }
  0x3e   : > { %1176 = vmatmul.bf16.gmra.mxu2 %v2799_v5  ;;  %v2855_v5 = vor.u32 %v3181_v62, %v2854_v61  ;;  %v2863_v7 = vor.u32 %v3182_v2, %v2862_v1  ;;  %v2920_v61 = vld [vmem:[%s3643_s7 + $0x130] sm:$0xf0]  ;;  %v3198_v62 = vld [vmem:[%s3643_s7 + $0x134] sm:$0xf0] }
  0x3f   : > { %1265 = vmatmul.bf16.gmra.mxu3 %v2803_v6  ;;  %1560 = vperm.xlu2 %3285, %v1426_v25   ;;  %v2859_v6 = vor.u32 %v3179_v63, %v2856_v0  ;;  %v2888_v25 = vld [vmem:[%s3643_s7 + $0xf0] sm:$0xf0]  ;;  %v3196_v63 = vld [vmem:[%s3643_s7 + $0x12c] sm:$0xf]  ;;  %v2928_v0 = vld [vmem:[%s3643_s7 + $0x138] sm:$0xf0] }
  0x40   : > { %v2931_v10 = vor.u32 %v3196_v63, %v2928_v0 }
  0x43   : > { %1565 = vperm.xlu0 %3283, %v1427_v8   ;;  %v2867_v8 = vor.u32 %v3180_v3, %v2864_v4 }
  0x44   : > { %1570 = vperm.xlu1 %3284, %v1428_v22   ;;  %v2886_v22 = vld [vmem:[%s3643_s7 + $0xe0] sm:$0xf] }
  0x47   : > { %1575 = vperm.xlu2 %3285, %v1429_v28   ;;  %v3188_v28 = vld [vmem:[%s3643_s7 + $0xec] sm:$0xf] }
  0x48   : > { %v2899_v33 = vor.u32 %v3188_v28, %v2896_v29  ;;  %v3202_v28 = vld [vmem:[%s3643_s7 + $0x154] sm:$0xf0]  ;;  %v2934_v29 = vld [vmem:[%s3643_s7 + $0x140] sm:$0xf] }
  0x4b   : > { %1580 = vperm.xlu0 %3283, %v1430_v21   ;;  %v3505_v21 = vmov 0.0  }
  0x4c   : > { %1585 = vperm.xlu1 %3284, %v1431_v27   ;;  %281 = vst.msk [vmem:[#allocation2] sm:$0xff] %vm280_vm0, %v3505_v21  ;;  %v3190_v27 = vld [vmem:[%s3643_s7 + $0xf4] sm:$0xf0] }
  0x4d   : > { %1003 = vmatmul.bf16.gmra.mxu0 %v2807_v19  ;;  %1092 = vmatmul.bf16.gmra.mxu1 %v2811_v20  ;;  %v2879_v19 = vor.u32 %v3186_v14, %v2878_v13  ;;  %v2883_v20 = vor.u32 %v3184_v15, %v2880_v16  ;;  %282 = vst.msk [vmem:[#allocation2 + $0x8] sm:$0xff] %vm280_vm0, %v3505_v21  ;;  %v3843_v16 = vld [vmem:[%s4596_s3] ss:$0 sm:$0xff] }
  0x4e   : > { %1181 = vmatmul.bf16.gmra.mxu2 %v2815_v23  ;;  %283 = vst.msk [vmem:[#allocation2 + $0x10] sm:$0xff] %vm280_vm0, %v3505_v21  ;;  %v3189_v23 = vld [vmem:[%s3643_s7 + $0xec] sm:$0xf0] }
  0x4f   : > { %1270 = vmatmul.bf16.gmra.mxu3 %v2819_v24  ;;  %1590 = vperm.xlu2 %3285, %v1432_v43   ;;  %284 = vst.msk [vmem:[#allocation2 + $0x18] sm:$0xff] %vm280_vm0, %v3505_v21  ;;  %v3187_v24 = vld [vmem:[%s3643_s7 + $0xe4] sm:$0xf]  ;;  %v2887_v30 = vor.u32 %v3189_v23, %v2886_v22 }
  0x50   : > { %285 = vst.msk [vmem:[#allocation2 + $0x20] sm:$0xff] %vm280_vm0, %v3505_v21  ;;  %v2891_v31 = vor.u32 %v3187_v24, %v2888_v25 }
  0x51   : > { %286 = vst.msk [vmem:[#allocation2 + $0x28] sm:$0xff] %vm280_vm0, %v3505_v21 }
  0x52   : > { %287 = vst.msk [vmem:[#allocation2 + $0x30] sm:$0xff] %vm280_vm0, %v3505_v21 }
  0x53   : > { %1595 = vperm.xlu0 %3283, %v1433_v26   ;;  %288 = vst.msk [vmem:[#allocation2 + $0x38] sm:$0xff] %vm280_vm0, %v3505_v21  ;;  %v2894_v26 = vld [vmem:[%s3643_s7 + $0xe8] sm:$0xf]  ;;  %v313_v54 = vld [vmem:[#allocation2] sm:$0xff] }
  0x54   : > { %1600 = vperm.xlu1 %3284, %v1434_v40   ;;  %289 = vst.msk [vmem:[#allocation2 + $0x40] sm:$0xff] %vm280_vm0, %v3505_v21  ;;  %v2895_v32 = vor.u32 %v3190_v27, %v2894_v26  ;;  %v3192_v40 = vld [vmem:[%s3643_s7 + $0x10c] sm:$0xf]  ;;  %v2942_v27 = vld [vmem:[%s3643_s7 + $0x148] sm:$0xf] }
  0x55   : > { %290 = vst.msk [vmem:[#allocation2 + $0x48] sm:$0xff] %vm280_vm0, %v3505_v21  ;;  %v314_v11 = vld [vmem:[#allocation2 + $0x8] sm:$0xff]  ;;  %v315_v25 = vld [vmem:[#allocation2 + $0x10] sm:$0xff] }
  0x56   : > { %291 = vst.msk [vmem:[#allocation2 + $0x50] sm:$0xff] %vm280_vm0, %v3505_v21 }
  0x57   : > { %1605 = vperm.xlu2 %3285, %v1435_v46   ;;  %292 = vst.msk [vmem:[#allocation2 + $0x58] sm:$0xff] %vm280_vm0, %v3505_v21  ;;  %v2911_v46 = vor.u32 %v3194_v35, %v2910_v34  ;;  %v317_v0 = vld [vmem:[#allocation2 + $0x20] sm:$0xff] }
  0x58   : > { %293 = vst.msk [vmem:[#allocation2 + $0x60] sm:$0xff] %vm280_vm0, %v3505_v21 }
  0x59   : > { %294 = vst.msk [vmem:[#allocation2 + $0x68] sm:$0xff] %vm280_vm0, %v3505_v21 }
  0x5a   : > { %295 = vst.msk [vmem:[#allocation2 + $0x70] sm:$0xff] %vm280_vm0, %v3505_v21 }
  0x5b   : > { %1610 = vperm.xlu0 %3283, %v1436_v39   ;;  %296 = vst.msk [vmem:[#allocation2 + $0x78] sm:$0xff] %vm280_vm0, %v3505_v21  ;;  %v2904_v39 = vld [vmem:[%s3643_s7 + $0x110] sm:$0xf0] }
  0x5c   : > { %1615 = vperm.xlu1 %3284, %v1437_v45   ;;  %297 = vst.msk [vmem:[#allocation2 + $0x80] sm:$0xff] %vm280_vm0, %v3505_v21 }
  0x5d   : > { %1008 = vmatmul.bf16.gmra.mxu0 %v2823_v37  ;;  %1097 = vmatmul.bf16.gmra.mxu1 %v2827_v38  ;;  %298 = vst.msk [vmem:[#allocation2 + $0x88] sm:$0xff] %vm280_vm0, %v3505_v21  ;;  %v3193_v37 = vld [vmem:[%s3643_s7 + $0x10c] sm:$0xf0]  ;;  %v3191_v38 = vld [vmem:[%s3643_s7 + $0x104] sm:$0xf] }
  0x5e   : > { %1186 = vmatmul.bf16.gmra.mxu2 %v2831_v41  ;;  %299 = vst.msk [vmem:[#allocation2 + $0x90] sm:$0xff] %vm280_vm0, %v3505_v21  ;;  %v2912_v41 = vld [vmem:[%s3643_s7 + $0x118] sm:$0xf0]  ;;  %v2907_v43 = vor.u32 %v3191_v38, %v2904_v39 }
  0x5f   : > { %1275 = vmatmul.bf16.gmra.mxu3 %v2835_v42  ;;  %1620 = vperm.xlu2 %3285, %v1438_v60   ;;  %300 = vst.msk [vmem:[#allocation2 + $0x98] sm:$0xff] %vm280_vm0, %v3505_v21  ;;  %v2903_v42 = vor.u32 %v3193_v37, %v2902_v36  ;;  %v2915_v47 = vor.u32 %v3192_v40, %v2912_v41  ;;  %v3195_v60 = vld [vmem:[%s3643_s7 + $0x124] sm:$0xf]  ;;  %v3200_v36 = vld [vmem:[%s3643_s7 + $0x14c] sm:$0xf] }
  0x60   : > { %301 = vst.msk [vmem:[#allocation2 + $0xa0] sm:$0xff] %vm280_vm0, %v3505_v21  ;;  %v2944_v37 = vld [vmem:[%s3643_s7 + $0x158] sm:$0xf0] }
  0x61   : > { %302 = vst.msk [vmem:[#allocation2 + $0xa8] sm:$0xff] %vm280_vm0, %v3505_v21 }
  0x62   : > { %303 = vst.msk [vmem:[#allocation2 + $0xb0] sm:$0xff] %vm280_vm0, %v3505_v21 }
  0x63   : > { %1625 = vperm.xlu0 %3283, %v1439_v44   ;;  %304 = vst.msk [vmem:[#allocation2 + $0xb8] sm:$0xff] %vm280_vm0, %v3505_v21 }
  0x64   : > { %1630 = vperm.xlu1 %3284, %v1440_v57   ;;  %305 = vst.msk [vmem:[#allocation2 + $0xc0] sm:$0xff] %vm280_vm0, %v3505_v21  ;;  %v2918_v57 = vld [vmem:[%s3643_s7 + $0x120] sm:$0xf] }
  0x65   : > { %306 = vst.msk [vmem:[#allocation2 + $0xc8] sm:$0xff] %vm280_vm0, %v3505_v21 }
  0x66   : > { %307 = vst.msk [vmem:[#allocation2 + $0xd0] sm:$0xff] %vm280_vm0, %v3505_v21 }
  0x67   : > { %308 = vst.msk [vmem:[#allocation2 + $0xd8] sm:$0xff] %vm280_vm0, %v3505_v21 }
  0x68   : > { %309 = vst.msk [vmem:[#allocation2 + $0xe0] sm:$0xff] %vm280_vm0, %v3505_v21 }
  0x69   : > { %310 = vst.msk [vmem:[#allocation2 + $0xe8] sm:$0xff] %vm280_vm0, %v3505_v21 }
  0x6a   : > { %311 = vst.msk [vmem:[#allocation2 + $0xf0] sm:$0xff] %vm280_vm0, %v3505_v21 }
  0x6b   : > { %312 = vst.msk [vmem:[#allocation2 + $0xf8] sm:$0xff] %vm280_vm0, %v3505_v21 }
  0x6d   : > { %1013 = vmatmul.bf16.gmra.mxu0 %v2839_v55  ;;  %1102 = vmatmul.bf16.gmra.mxu1 %v2843_v56  ;;  %v2926_v56 = vld [vmem:[%s3643_s7 + $0x128] sm:$0xf] }
  0x6e   : > { %1191 = vmatmul.bf16.gmra.mxu2 %v2847_v58  ;;  %v2927_v9 = vor.u32 %v3198_v62, %v2926_v56 }
  0x6f   : > { %1280 = vmatmul.bf16.gmra.mxu3 %v2851_v59  ;;  %v3197_v59 = vld [vmem:[%s3643_s7 + $0x12c] sm:$0xf0] }
  0x70   : > { %v2919_v4 = vor.u32 %v3197_v59, %v2918_v57 }
  0x71   : > { %v1496_v56 = vpop.permute.xlu2 %1495 }
  0x7d   : > { %1018 = vmatmul.bf16.gmra.mxu0 %v2855_v5  ;;  %1107 = vmatmul.bf16.gmra.mxu1 %v2859_v6  ;;  %v2923_v5 = vor.u32 %v3195_v60, %v2920_v61 }
  0x7e   : > { %1196 = vmatmul.bf16.gmra.mxu2 %v2863_v7 }
  0x7f   : > { %1285 = vmatmul.bf16.gmra.mxu3 %v2867_v8 }
  0x85   : > { %v1476_v13 = vpop.permute.xlu0 %1475 }
  0x8d   : > { %1023 = vmatmul.bf16.gmra.mxu0 %v2871_v17  ;;  %1112 = vmatmul.bf16.gmra.mxu1 %v2875_v18  ;;  %v1481_v34 = vpop.permute.xlu0 %1480 }
  0x8e   : > { %1201 = vmatmul.bf16.gmra.mxu2 %v2879_v19 }
  0x8f   : > { %1290 = vmatmul.bf16.gmra.mxu3 %v2883_v20 }
  0x9d   : > { %1028 = vmatmul.bf16.gmra.mxu0 %v2887_v30  ;;  %1117 = vmatmul.bf16.gmra.mxu1 %v2891_v31  ;;  %v3201_v31 = vld [vmem:[%s3643_s7 + $0x14c] sm:$0xf0] }
  0x9e   : > { %1206 = vmatmul.bf16.gmra.mxu2 %v2895_v32  ;;  %v3199_v32 = vld [vmem:[%s3643_s7 + $0x144] sm:$0xf] }
  0x9f   : > { %1295 = vmatmul.bf16.gmra.mxu3 %v2899_v33  ;;  %v2936_v33 = vld [vmem:[%s3643_s7 + $0x150] sm:$0xf0] }
  0xaa   : > { %v994_v44 = vpop.f32.mrf.mxu0  ;;  %v1083_v45 = vpop.f32.mrf.mxu1 }
  0xab   : > { %v1084_v48 = vadd.f32 %v1083_v45, %v994_v44 }
  0xad   : > { %1033 = vmatmul.bf16.gmra.mxu0 %v2903_v42  ;;  %1122 = vmatmul.bf16.gmra.mxu1 %v2907_v43  ;;  %v2935_v42 = vor.u32 %v3201_v31, %v2934_v29  ;;  %v2939_v43 = vor.u32 %v3199_v32, %v2936_v33 }
  0xae   : > { %1211 = vmatmul.bf16.gmra.mxu2 %v2911_v46 }
  0xaf   : > { %1300 = vmatmul.bf16.gmra.mxu3 %v2915_v47 }
  0xb1   : > { %v1172_v49 = vpop.f32.mrf.mxu2 }
  0xb2   : > { %v1261_v50 = vpop.f32.mrf.mxu3  ;;  %v1173_v51 = vadd.f32 %v1172_v49, %v1084_v48  ;;  %v996_v52 = vpop.f32.mrf.mxu0  ;;  %v2943_v48 = vor.u32 %v3202_v28, %v2942_v27  ;;  %v2947_v49 = vor.u32 %v3200_v36, %v2944_v37  ;;  %v318_v27 = vld [vmem:[#allocation2 + $0x28] sm:$0xff] }
  0xb3   : > { %v1085_v53 = vpop.f32.mrf.mxu1  ;;  %v1501_v28 = vpop.permute.xlu2 %1500 }
  0xb4   : > { %v1262_v55 = vadd.f32 %v1261_v50, %v1173_v51  ;;  %v1086_v1 = vadd.f32 %v1085_v53, %v996_v52  ;;  %v316_v50 = vld [vmem:[#allocation2 + $0x18] sm:$0xff]  ;;  %v1486_v52 = vpop.permute.xlu1 %1485 }
  0xb6   : > { %v1341_v58 = vadd.f32 %v1262_v55, %v313_v54 }
  0xb8   : > { %1374 = vst.msk [vmem:[#allocation2] sm:$0xff] %vm280_vm0, %v1341_v58 }
  0xb9   : > { %v1174_v2 = vpop.f32.mrf.mxu2 }
  0xba   : > { %v1263_v3 = vpop.f32.mrf.mxu3  ;;  %v1175_v6 = vadd.f32 %v1174_v2, %v1086_v1  ;;  %v999_v7 = vpop.f32.mrf.mxu0  ;;  %v2958_v2 = vld [vmem:[%s3643_s7 + $0x168] sm:$0xf] }
  0xbb   : > { %v1088_v8 = vpop.f32.mrf.mxu1 }
  0xbc   : > { %v1264_v12 = vadd.f32 %v1263_v3, %v1175_v6  ;;  %v1089_v15 = vadd.f32 %v1088_v8, %v999_v7  ;;  %v3206_v3 = vld [vmem:[%s3643_s7 + $0x174] sm:$0xf0]  ;;  %v3205_v6 = vld [vmem:[%s3643_s7 + $0x16c] sm:$0xf0]  ;;  %v3203_v7 = vld [vmem:[%s3643_s7 + $0x164] sm:$0xf] }
  0xbd   : > { %1038 = vmatmul.bf16.gmra.mxu0 %v2919_v4  ;;  %1127 = vmatmul.bf16.gmra.mxu1 %v2923_v5  ;;  %v2950_v4 = vld [vmem:[%s3643_s7 + $0x160] sm:$0xf]  ;;  %v2952_v8 = vld [vmem:[%s3643_s7 + $0x170] sm:$0xf0] }
  0xbe   : > { %v1342_v14 = vadd.f32 %v1264_v12, %v314_v11  ;;  %1216 = vmatmul.bf16.gmra.mxu2 %v2927_v9  ;;  %v1491_v9 = vpop.permute.xlu1 %1490  ;;  %v3204_v11 = vld [vmem:[%s3643_s7 + $0x16c] sm:$0xf]  ;;  %v2960_v12 = vld [vmem:[%s3643_s7 + $0x178] sm:$0xf0] }
  0xbf   : > { %1305 = vmatmul.bf16.gmra.mxu3 %v2931_v10  ;;  %v1441_v17 = vld [vmem:[#allocation2] sm:$0xff] }
  0xc0   : > { %1375 = vst.msk [vmem:[#allocation2 + $0x8] sm:$0xff] %vm280_vm0, %v1342_v14  ;;  %v1633_v18 = vmul.f32 %v1476_v13, %v1441_v17 }
  0xc1   : > { %v1177_v19 = vpop.f32.mrf.mxu2 }
  0xc2   : > { %v1266_v20 = vpop.f32.mrf.mxu3  ;;  %v1178_v21 = vadd.f32 %v1177_v19, %v1089_v15  ;;  %v1001_v22 = vpop.f32.mrf.mxu0  ;;  %v3847_v24 = vadd.f32 %v3843_v16, %v1633_v18  ;;  %v2951_v18 = vor.u32 %v3205_v6, %v2950_v4  ;;  %v2955_v19 = vor.u32 %v3203_v7, %v2952_v8  ;;  %v320_v4 = vld [vmem:[#allocation2 + $0x38] sm:$0xff] }
  0xc3   : > { %v1090_v23 = vpop.f32.mrf.mxu1 }
  0xc4   : > { %v1267_v26 = vadd.f32 %v1266_v20, %v1178_v21  ;;  %1733 = vrot.lane.b32.xlu2 %v3847_v24, %s3506_s5  ;;  %v1091_v38 = vadd.f32 %v1090_v23, %v1001_v22 }
  0xc6   : > { %v1343_v30 = vadd.f32 %v1267_v26, %v315_v25  ;;  %v2959_v25 = vor.u32 %v3206_v3, %v2958_v2  ;;  %v2963_v26 = vor.u32 %v3204_v11, %v2960_v12 }
  0xc7   : > { %v1442_v35 = vld [vmem:[#allocation2 + $0x8] sm:$0xff] }
  0xc8   : > { %1376 = vst.msk [vmem:[#allocation2 + $0x10] sm:$0xff] %vm280_vm0, %v1343_v30  ;;  %v1634_v39 = vmul.f32 %v1481_v34, %v1442_v35 }
  0xc9   : > { %v1179_v40 = vpop.f32.mrf.mxu2 }
  0xca   : > { %v1268_v41 = vpop.f32.mrf.mxu3  ;;  %v1180_v44 = vadd.f32 %v1179_v40, %v1091_v38  ;;  %v1004_v45 = vpop.f32.mrf.mxu0  ;;  %v3861_v47 = vadd.f32 %v3843_v16, %v1634_v39  ;;  %v319_v40 = vld [vmem:[#allocation2 + $0x30] sm:$0xff] }
  0xcb   : > { %v1093_v46 = vpop.f32.mrf.mxu1 }
  0xcc   : > { %4628 = vst [vmem:[#allocation3_spill] sm:$0xff] %v3861_v47  ;;  %v1269_v51 = vadd.f32 %v1268_v41, %v1180_v44  ;;  %1735 = vrot.lane.b32.xlu0 %v3861_v47, %s3506_s5  ;;  %v1094_v54 = vadd.f32 %v1093_v46, %v1004_v45  ;;  %v1506_v41 = vpop.permute.xlu0 %1505  ;;  %v3210_v44 = vld [vmem:[%s3643_s7 + $0x194] sm:$0xf0]  ;;  %v2966_v45 = vld [vmem:[%s3643_s7 + $0x180] sm:$0xf]  ;;  %v3894_v46 = vpop.permute.xlu2 %1515 }
  0xcd   : > { %1043 = vmatmul.bf16.gmra.mxu0 %v2935_v42  ;;  %1132 = vmatmul.bf16.gmra.mxu1 %v2939_v43  ;;  %v2974_v43 = vld [vmem:[%s3643_s7 + $0x188] sm:$0xf] }
  0xce   : > { %v1344_v53 = vadd.f32 %v1269_v51, %v316_v50  ;;  %1221 = vmatmul.bf16.gmra.mxu2 %v2943_v48  ;;  %v3207_v50 = vld [vmem:[%s3643_s7 + $0x184] sm:$0xf]  ;;  %v2968_v51 = vld [vmem:[%s3643_s7 + $0x190] sm:$0xf0]  ;;  %v2975_v2 = vor.u32 %v3210_v44, %v2974_v43 }
  0xcf   : > { %1310 = vmatmul.bf16.gmra.mxu3 %v2947_v49  ;;  %v1443_v55 = vld [vmem:[#allocation2 + $0x10] sm:$0xff] }
  0xd0   : > { %1377 = vst.msk [vmem:[#allocation2 + $0x18] sm:$0xff] %vm280_vm0, %v1344_v53  ;;  %v1635_v57 = vmul.f32 %v1486_v52, %v1443_v55  ;;  %v3209_v49 = vld [vmem:[%s3643_s7 + $0x18c] sm:$0xf0]  ;;  %v3208_v53 = vld [vmem:[%s3643_s7 + $0x18c] sm:$0xf] }
  0xd1   : > { %v1182_v58 = vpop.f32.mrf.mxu2 }
  0xd2   : > { %v1271_v59 = vpop.f32.mrf.mxu3  ;;  %v1183_v60 = vadd.f32 %v1182_v58, %v1094_v54  ;;  %v1006_v61 = vpop.f32.mrf.mxu0  ;;  %v3867_v63 = vadd.f32 %v3843_v16, %v1635_v57  ;;  %v2976_v54 = vld [vmem:[%s3643_s7 + $0x198] sm:$0xf0] }
  0xd3   : > { %v1095_v62 = vpop.f32.mrf.mxu1  ;;  %v2979_v3 = vor.u32 %v3208_v53, %v2976_v54 }
  0xd4   : > { %4629 = vst [vmem:[#allocation4_spill] sm:$0xff] %v3867_v63  ;;  %v1272_v1 = vadd.f32 %v1271_v59, %v1183_v60  ;;  %1737 = vrot.lane.b32.xlu1 %v3867_v63, %s3506_s5  ;;  %v1096_v13 = vadd.f32 %v1095_v62, %v1006_v61  ;;  %v2967_v59 = vor.u32 %v3209_v49, %v2966_v45  ;;  %v3907_v7 = vpop.permute.xlu0 %1520  ;;  %v3909_v11 = vpop.permute.xlu2 %1530 }
  0xd5   : > { %v2971_v60 = vor.u32 %v3207_v50, %v2968_v51  ;;  %v322_v51 = vld [vmem:[#allocation2 + $0x48] sm:$0xff] }
  0xd6   : > { %v1345_v5 = vadd.f32 %v1272_v1, %v317_v0 }
  0xd7   : > { %v1444_v10 = vld [vmem:[#allocation2 + $0x18] sm:$0xff] }
  0xd8   : > { %1378 = vst.msk [vmem:[#allocation2 + $0x20] sm:$0xff] %vm280_vm0, %v1345_v5  ;;  %v1636_v14 = vmul.f32 %v1491_v9, %v1444_v10  ;;  %v1511_v5 = vpop.permute.xlu1 %1510 }
  0xd9   : > { %v1184_v15 = vpop.f32.mrf.mxu2 }
  0xda   : > { %v1273_v17 = vpop.f32.mrf.mxu3  ;;  %v1185_v20 = vadd.f32 %v1184_v15, %v1096_v13  ;;  %v1009_v21 = vpop.f32.mrf.mxu0  ;;  %v3881_v23 = vadd.f32 %v3843_v16, %v1636_v14 }
  0xdb   : > { %v1098_v22 = vpop.f32.mrf.mxu1 }
  0xdc   : > { %v1274_v29 = vadd.f32 %v1273_v17, %v1185_v20  ;;  %1739 = vrot.lane.b32.xlu2 %v3881_v23, %s3506_s5  ;;  %v1099_v31 = vadd.f32 %v1098_v22, %v1009_v21  ;;  %v321_v20 = vld [vmem:[#allocation2 + $0x40] sm:$0xff]  ;;  %v2990_v22 = vld [vmem:[%s3643_s7 + $0x1a8] sm:$0xf] }
  0xdd   : > { %1048 = vmatmul.bf16.gmra.mxu0 %v2951_v18  ;;  %1137 = vmatmul.bf16.gmra.mxu1 %v2955_v19 }
  0xde   : > { %v1346_v30 = vadd.f32 %v1274_v29, %v318_v27  ;;  %1226 = vmatmul.bf16.gmra.mxu2 %v2959_v25  ;;  %v3214_v25 = vld [vmem:[%s3643_s7 + $0x1b4] sm:$0xf0]  ;;  %v3213_v29 = vld [vmem:[%s3643_s7 + $0x1ac] sm:$0xf0] }
  0xdf   : > { %1315 = vmatmul.bf16.gmra.mxu3 %v2963_v26  ;;  %v1445_v32 = vld [vmem:[#allocation2 + $0x20] sm:$0xff]  ;;  %v2991_v49 = vor.u32 %v3214_v25, %v2990_v22 }
  0xe0   : > { %1379 = vst.msk [vmem:[#allocation2 + $0x28] sm:$0xff] %vm280_vm0, %v1346_v30  ;;  %v1637_v33 = vmul.f32 %v1496_v56, %v1445_v32  ;;  %v2982_v26 = vld [vmem:[%s3643_s7 + $0x1a0] sm:$0xf]  ;;  %v3920_v27 = vpop.permute.xlu1 %1525  ;;  %v3211_v30 = vld [vmem:[%s3643_s7 + $0x1a4] sm:$0xf] }
  0xe1   : > { %v1187_v34 = vpop.f32.mrf.mxu2 }
  0xe2   : > { %v1276_v35 = vpop.f32.mrf.mxu3  ;;  %v1188_v36 = vadd.f32 %v1187_v34, %v1099_v31  ;;  %v1011_v37 = vpop.f32.mrf.mxu0  ;;  %v3887_v39 = vadd.f32 %v3843_v16, %v1637_v33  ;;  %v2984_v31 = vld [vmem:[%s3643_s7 + $0x1b0] sm:$0xf0]  ;;  %v3212_v33 = vld [vmem:[%s3643_s7 + $0x1ac] sm:$0xf]  ;;  %v2992_v34 = vld [vmem:[%s3643_s7 + $0x1b8] sm:$0xf0] }
  0xe3   : > { %v1100_v38 = vpop.f32.mrf.mxu1  ;;  %v2995_v50 = vor.u32 %v3212_v33, %v2992_v34 }
  0xe4   : > { %v1277_v42 = vadd.f32 %v1276_v35, %v1188_v36  ;;  %1741 = vrot.lane.b32.xlu0 %v3887_v39, %s3506_s5  ;;  %v1101_v55 = vadd.f32 %v1100_v38, %v1011_v37  ;;  %v3927_v35 = vpop.permute.xlu0 %1535 }
  0xe6   : > { %v1347_v48 = vadd.f32 %v1277_v42, %v319_v40  ;;  %v2987_v42 = vor.u32 %v3211_v30, %v2984_v31 }
  0xe7   : > { %v1446_v52 = vld [vmem:[#allocation2 + $0x28] sm:$0xff] }
  0xe8   : > { %1380 = vst.msk [vmem:[#allocation2 + $0x30] sm:$0xff] %vm280_vm0, %v1347_v48  ;;  %v1638_v56 = vmul.f32 %v1501_v28, %v1446_v52  ;;  %v3933_v52 = vpop.permute.xlu2 %1545 }
  0xe9   : > { %v1189_v57 = vpop.f32.mrf.mxu2 }
  0xea   : > { %v1278_v58 = vpop.f32.mrf.mxu3  ;;  %v1190_v61 = vadd.f32 %v1189_v57, %v1101_v55  ;;  %v1014_v62 = vpop.f32.mrf.mxu0  ;;  %v3903_v1 = vadd.f32 %v3843_v16, %v1638_v56 }
  0xeb   : > { %v1103_v0 = vpop.f32.mrf.mxu1  ;;  %v3937_v57 = vpop.permute.xlu1 %1540 }
  0xec   : > { %v1279_v6 = vadd.f32 %v1278_v58, %v1190_v61  ;;  %1743 = vrot.lane.b32.xlu1 %v3903_v1, %s3506_s5  ;;  %v1104_v9 = vadd.f32 %v1103_v0, %v1014_v62 }
  0xed   : > { %1053 = vmatmul.bf16.gmra.mxu0 %v2967_v59  ;;  %1142 = vmatmul.bf16.gmra.mxu1 %v2971_v60 }
  0xee   : > { %v1348_v8 = vadd.f32 %v1279_v6, %v320_v4  ;;  %1231 = vmatmul.bf16.gmra.mxu2 %v2975_v2  ;;  %v3944_v4 = vpop.permute.xlu0 %1550  ;;  %v3218_v6 = vld [vmem:[%s3643_s7 + $0x1d4] sm:$0xf0] }
  0xef   : > { %1320 = vmatmul.bf16.gmra.mxu3 %v2979_v3  ;;  %v1447_v10 = vld [vmem:[#allocation2 + $0x30] sm:$0xff] }
  0xf0   : > { %1381 = vst.msk [vmem:[#allocation2 + $0x38] sm:$0xff] %vm280_vm0, %v1348_v8  ;;  %v1639_v12 = vmul.f32 %v1506_v41, %v1447_v10  ;;  %v2983_v41 = vor.u32 %v3213_v29, %v2982_v26  ;;  %v323_v3 = vld [vmem:[#allocation2 + $0x50] sm:$0xff]  ;;  %v2998_v8 = vld [vmem:[%s3643_s7 + $0x1c0] sm:$0xf] }
  0xf1   : > { %v1192_v13 = vpop.f32.mrf.mxu2 }
  0xf2   : > { %v1281_v14 = vpop.f32.mrf.mxu3  ;;  %v1193_v15 = vadd.f32 %v1192_v13, %v1104_v9  ;;  %v1016_v17 = vpop.f32.mrf.mxu0  ;;  %v3913_v19 = vadd.f32 %v3843_v16, %v1639_v12  ;;  %v3217_v12 = vld [vmem:[%s3643_s7 + $0x1cc] sm:$0xf0]  ;;  %v3215_v13 = vld [vmem:[%s3643_s7 + $0x1c4] sm:$0xf] }
  0xf3   : > { %v1105_v18 = vpop.f32.mrf.mxu1  ;;  %v3951_v9 = vpop.permute.xlu2 %1560  ;;  %v2999_v26 = vor.u32 %v3217_v12, %v2998_v8 }
  0xf4   : > { %v1282_v21 = vadd.f32 %v1281_v14, %v1193_v15  ;;  %1745 = vrot.lane.b32.xlu2 %v3913_v19, %s3506_s5  ;;  %v1106_v36 = vadd.f32 %v1105_v18, %v1016_v17  ;;  %v3000_v14 = vld [vmem:[%s3643_s7 + $0x1d0] sm:$0xf0]  ;;  %v3216_v17 = vld [vmem:[%s3643_s7 + $0x1cc] sm:$0xf]  ;;  %v3008_v18 = vld [vmem:[%s3643_s7 + $0x1d8] sm:$0xf0] }
  0xf5   : > { %v3011_v34 = vor.u32 %v3216_v17, %v3008_v18 }
  0xf6   : > { %v1349_v28 = vadd.f32 %v1282_v21, %v321_v20 }
  0xf7   : > { %v1448_v32 = vld [vmem:[#allocation2 + $0x38] sm:$0xff] }
  0xf8   : > { %1382 = vst.msk [vmem:[#allocation2 + $0x40] sm:$0xff] %vm280_vm0, %v1349_v28  ;;  %v1640_v37 = vmul.f32 %v1511_v5, %v1448_v32  ;;  %v3003_v28 = vor.u32 %v3215_v13, %v3000_v14 }
  0xf9   : > { %v1194_v38 = vpop.f32.mrf.mxu2 }
  0xfa   : > { %v1283_v40 = vpop.f32.mrf.mxu3  ;;  %v1195_v43 = vadd.f32 %v1194_v38, %v1106_v36  ;;  %v1019_v44 = vpop.f32.mrf.mxu0  ;;  %v3931_v48 = vadd.f32 %v3843_v16, %v1640_v37  ;;  %v324_v36 = vld [vmem:[#allocation2 + $0x58] sm:$0xff] }
  0xfb   : > { %v1108_v45 = vpop.f32.mrf.mxu1  ;;  %v3963_v37 = vpop.permute.xlu1 %1555 }
  0xfc   : > { %v1284_v53 = vadd.f32 %v1283_v40, %v1195_v43  ;;  %1747 = vrot.lane.b32.xlu0 %v3931_v48, %s3506_s5  ;;  %v1109_v55 = vadd.f32 %v1108_v45, %v1019_v44  ;;  %v3969_v43 = vpop.permute.xlu2 %1575 }
  0xfd   : > { %1058 = vmatmul.bf16.gmra.mxu0 %v2983_v41  ;;  %1147 = vmatmul.bf16.gmra.mxu1 %v2987_v42 }
  0xfe   : > { %v1350_v54 = vadd.f32 %v1284_v53, %v322_v51  ;;  %1236 = vmatmul.bf16.gmra.mxu2 %v2991_v49 }
  0xff   : > { %1325 = vmatmul.bf16.gmra.mxu3 %v2995_v50  ;;  %v1449_v56 = vld [vmem:[#allocation2 + $0x40] sm:$0xff] }
 0x100   : > { %1383 = vst.msk [vmem:[#allocation2 + $0x48] sm:$0xff] %vm280_vm0, %v1350_v54  ;;  %v1641_v58 = vmul.f32 %v3894_v46, %v1449_v56  ;;  %v3006_v46 = vld [vmem:[%s3643_s7 + $0x1c8] sm:$0xf] }
 0x101   : > { %v1197_v59 = vpop.f32.mrf.mxu2  ;;  %v3007_v33 = vor.u32 %v3218_v6, %v3006_v46  ;;  %v3220_v46 = vld [vmem:[%s3643_s7 + $0x1ec] sm:$0xf]  ;;  %v3024_v6 = vld [vmem:[%s3643_s7 + $0x1f8] sm:$0xf0] }
 0x102   : > { %v1286_v60 = vpop.f32.mrf.mxu3  ;;  %v1198_v61 = vadd.f32 %v1197_v59, %v1109_v55  ;;  %v1021_v62 = vpop.f32.mrf.mxu0  ;;  %v3942_v2 = vadd.f32 %v3843_v16, %v1641_v58  ;;  %v325_v55 = vld [vmem:[#allocation2 + $0x60] sm:$0xff]  ;;  %v3022_v58 = vld [vmem:[%s3643_s7 + $0x1e8] sm:$0xf]  ;;  %v3222_v59 = vld [vmem:[%s3643_s7 + $0x1f4] sm:$0xf0] }
 0x103   : > { %v1110_v0 = vpop.f32.mrf.mxu1 }
 0x104   : > { %v1287_v5 = vadd.f32 %v1286_v60, %v1198_v61  ;;  %1749 = vrot.lane.b32.xlu1 %v3942_v2, %s3506_s5  ;;  %v1111_v20 = vadd.f32 %v1110_v0, %v1021_v62  ;;  %v3981_v60 = vpop.permute.xlu1 %1570  ;;  %v3221_v62 = vld [vmem:[%s3643_s7 + $0x1ec] sm:$0xf0]  ;;  %v3219_v0 = vld [vmem:[%s3643_s7 + $0x1e4] sm:$0xf] }
 0x106   : > { %v1351_v10 = vadd.f32 %v1287_v5, %v323_v3  ;;  %v3016_v3 = vld [vmem:[%s3643_s7 + $0x1f0] sm:$0xf0] }
 0x107   : > { %v1450_v15 = vld [vmem:[#allocation2 + $0x48] sm:$0xff]  ;;  %v3019_v17 = vor.u32 %v3219_v0, %v3016_v3 }
 0x108   : > { %1384 = vst.msk [vmem:[#allocation2 + $0x50] sm:$0xff] %vm280_vm0, %v1351_v10  ;;  %v1642_v21 = vmul.f32 %v3907_v7, %v1450_v15  ;;  %v3967_v7 = vpop.permute.xlu0 %1565 }
 0x109   : > { %v1199_v22 = vpop.f32.mrf.mxu2 }
 0x10a   : > { %v1288_v25 = vpop.f32.mrf.mxu3  ;;  %v1200_v29 = vadd.f32 %v1199_v22, %v1111_v20  ;;  %v1024_v30 = vpop.f32.mrf.mxu0  ;;  %v3961_v32 = vadd.f32 %v3843_v16, %v1642_v21 }
 0x10b   : > { %v1113_v31 = vpop.f32.mrf.mxu1 }
 0x10c   : > { %v1289_v38 = vadd.f32 %v1288_v25, %v1200_v29  ;;  %1751 = vrot.lane.b32.xlu2 %v3961_v32, %s3506_s5  ;;  %v1114_v41 = vadd.f32 %v1113_v31, %v1024_v30  ;;  %v3023_v25 = vor.u32 %v3222_v59, %v3022_v58  ;;  %v326_v29 = vld [vmem:[#allocation2 + $0x68] sm:$0xff] }
 0x10d   : > { %1063 = vmatmul.bf16.gmra.mxu0 %v2999_v26  ;;  %1152 = vmatmul.bf16.gmra.mxu1 %v3003_v28  ;;  %v3027_v26 = vor.u32 %v3220_v46, %v3024_v6  ;;  %v3995_v28 = vpop.permute.xlu2 %1590  ;;  %v328_v46 = vld [vmem:[#allocation2 + $0x78] sm:$0xff] }
 0x10e   : > { %v1352_v40 = vadd.f32 %v1289_v38, %v324_v36  ;;  %1241 = vmatmul.bf16.gmra.mxu2 %v3007_v33 }
 0x10f   : > { %1330 = vmatmul.bf16.gmra.mxu3 %v3011_v34  ;;  %v1451_v42 = vld [vmem:[#allocation2 + $0x50] sm:$0xff]  ;;  %v3999_v34 = vpop.permute.xlu1 %1585 }
 0x110   : > { %1385 = vst.msk [vmem:[#allocation2 + $0x58] sm:$0xff] %vm280_vm0, %v1352_v40  ;;  %v1643_v44 = vmul.f32 %v3920_v27, %v1451_v42  ;;  %v3014_v27 = vld [vmem:[%s3643_s7 + $0x1e0] sm:$0xf]  ;;  %v3988_v8 = vpop.permute.xlu0 %1580 }
 0x111   : > { %v1202_v45 = vpop.f32.mrf.mxu2  ;;  %v3015_v15 = vor.u32 %v3221_v62, %v3014_v27 }
 0x112   : > { %v1291_v49 = vpop.f32.mrf.mxu3  ;;  %v1203_v50 = vadd.f32 %v1202_v45, %v1114_v41  ;;  %v1026_v51 = vpop.f32.mrf.mxu0  ;;  %v3974_v54 = vadd.f32 %v3843_v16, %v1643_v44 }
 0x113   : > { %v1115_v53 = vpop.f32.mrf.mxu1 }
 0x114   : > { %v1292_v56 = vadd.f32 %v1291_v49, %v1203_v50  ;;  %1753 = vrot.lane.b32.xlu0 %v3974_v54, %s3506_s5  ;;  %v1116_v10 = vadd.f32 %v1115_v53, %v1026_v51  ;;  %v327_v50 = vld [vmem:[#allocation2 + $0x70] sm:$0xff] }
 0x115   : > { %v4010_v53 = vpop.permute.xlu2 %1605 }
 0x116   : > { %v1353_v61 = vadd.f32 %v1292_v56, %v325_v55 }
 0x117   : > { %v1452_v5 = vld [vmem:[#allocation2 + $0x58] sm:$0xff] }
 0x118   : > { %1386 = vst.msk [vmem:[#allocation2 + $0x60] sm:$0xff] %vm280_vm0, %v1353_v61  ;;  %v1644_v12 = vmul.f32 %v3909_v11, %v1452_v5  ;;  %v4006_v49 = vpop.permute.xlu0 %1595  ;;  %v4017_v5 = vpop.permute.xlu1 %1600 }
 0x119   : > { %v1204_v13 = vpop.f32.mrf.mxu2 }
 0x11a   : > { %v1293_v14 = vpop.f32.mrf.mxu3  ;;  %v1205_v18 = vadd.f32 %v1204_v13, %v1116_v10  ;;  %v1029_v20 = vpop.f32.mrf.mxu0  ;;  %v3993_v22 = vadd.f32 %v3843_v16, %v1644_v12 }
 0x11b   : > { %v1118_v21 = vpop.f32.mrf.mxu1 }
 0x11c   : > { %v1294_v30 = vadd.f32 %v1293_v14, %v1205_v18  ;;  %1755 = vrot.lane.b32.xlu1 %v3993_v22, %s3506_s5  ;;  %v1119_v31 = vadd.f32 %v1118_v21, %v1029_v20 }
 0x11d   : > { %1068 = vmatmul.bf16.gmra.mxu0 %v3015_v15  ;;  %1157 = vmatmul.bf16.gmra.mxu1 %v3019_v17 }
 0x11e   : > { %v1354_v11 = vadd.f32 %v1294_v30, %v326_v29  ;;  %1246 = vmatmul.bf16.gmra.mxu2 %v3023_v25  ;;  %v329_v29 = vld [vmem:[#allocation2 + $0x80] sm:$0xff] }
 0x11f   : > { %1335 = vmatmul.bf16.gmra.mxu3 %v3027_v26  ;;  %v1453_v33 = vld [vmem:[#allocation2 + $0x60] sm:$0xff] }
 0x120   : > { %1387 = vst.msk [vmem:[#allocation2 + $0x68] sm:$0xff] %vm280_vm0, %v1354_v11  ;;  %v1645_v36 = vmul.f32 %v3927_v35, %v1453_v33  ;;  %v4021_v10 = vpop.permute.xlu0 %1610  ;;  %v4032_v11 = vpop.permute.xlu1 %1615 }
 0x121   : > { %v1207_v38 = vpop.f32.mrf.mxu2 }
 0x122   : > { %v1296_v40 = vpop.f32.mrf.mxu3  ;;  %v1208_v41 = vadd.f32 %v1207_v38, %v1119_v31  ;;  %v1031_v42 = vpop.f32.mrf.mxu0  ;;  %v4004_v45 = vadd.f32 %v3843_v16, %v1645_v36 }
 0x123   : > { %v1120_v44 = vpop.f32.mrf.mxu1 }
 0x124   : > { %v1297_v51 = vadd.f32 %v1296_v40, %v1208_v41  ;;  %1757 = vrot.lane.b32.xlu2 %v4004_v45, %s3506_s5  ;;  %v1121_v35 = vadd.f32 %v1120_v44, %v1031_v42 }
 0x126   : > { %v1355_v55 = vadd.f32 %v1297_v51, %v327_v50 }
 0x127   : > { %v1454_v56 = vld [vmem:[#allocation2 + $0x68] sm:$0xff] }
 0x128   : > { %1388 = vst.msk [vmem:[#allocation2 + $0x70] sm:$0xff] %vm280_vm0, %v1355_v55  ;;  %v1646_v58 = vmul.f32 %v3937_v57, %v1454_v56  ;;  %v4023_v57 = vpop.permute.xlu2 %1620  ;;  %v4034_v33 = vpop.permute.xlu0 %1625 }
 0x129   : > { %v1209_v59 = vpop.f32.mrf.mxu2 }
 0x12a   : > { %v1298_v27 = vpop.f32.mrf.mxu3  ;;  %v1210_v61 = vadd.f32 %v1209_v59, %v1121_v35  ;;  %v1034_v62 = vpop.f32.mrf.mxu0  ;;  %v4015_v3 = vadd.f32 %v3843_v16, %v1646_v58  ;;  %v330_v35 = vld [vmem:[#allocation2 + $0x88] sm:$0xff] }
 0x12b   : > { %v1123_v0 = vpop.f32.mrf.mxu1 }
 0x12c   : > { %v1299_v6 = vadd.f32 %v1298_v27, %v1210_v61  ;;  %1759 = vrot.lane.b32.xlu0 %v4015_v3, %s3506_s5  ;;  %v1124_v13 = vadd.f32 %v1123_v0, %v1034_v62  ;;  %v4048_v27 = vpop.permute.xlu1 %1630 }
 0x12e   : > { %v1356_v12 = vadd.f32 %v1299_v6, %v328_v46 }
 0x12f   : > { %v1455_v14 = vld [vmem:[#allocation2 + $0x70] sm:$0xff] }
 0x130   : > { %1389 = vst.msk [vmem:[#allocation2 + $0x78] sm:$0xff] %vm280_vm0, %v1356_v12  ;;  %v1647_v15 = vmul.f32 %v3933_v52, %v1455_v14  ;;  %v1734_v36 = vpop.permute.xlu2 %1733 }
 0x131   : > { %v1212_v17 = vpop.f32.mrf.mxu2  ;;  %v4039_v44 = vmax.f32 %v3847_v24, %v1734_v36 }
 0x132   : > { %v1301_v18 = vpop.f32.mrf.mxu3  ;;  %v1213_v20 = vadd.f32 %v1212_v17, %v1124_v13  ;;  %v1036_v21 = vpop.f32.mrf.mxu0  ;;  %v4028_v26 = vadd.f32 %v3843_v16, %v1647_v15 }
 0x133   : > { %v1125_v25 = vpop.f32.mrf.mxu1 }
 0x134   : > { %v1302_v30 = vadd.f32 %v1301_v18, %v1213_v20  ;;  %1761 = vrot.lane.b32.xlu1 %v4028_v26, %s3506_s5  ;;  %v1126_v38 = vadd.f32 %v1125_v25, %v1036_v21  ;;  %v331_v18 = vld [vmem:[#allocation2 + $0x90] sm:$0xff] }
 0x136   : > { %v1357_v31 = vadd.f32 %v1302_v30, %v329_v29 }
 0x137   : > { %v1456_v52 = vld [vmem:[#allocation2 + $0x78] sm:$0xff] }
 0x138   : > { %1390 = vst.msk [vmem:[#allocation2 + $0x80] sm:$0xff] %vm280_vm0, %v1357_v31  ;;  %v1648_v40 = vmul.f32 %v3944_v4, %v1456_v52 }
 0x139   : > { %v1214_v41 = vpop.f32.mrf.mxu2 }
 0x13a   : > { %v1303_v42 = vpop.f32.mrf.mxu3  ;;  %v1215_v50 = vadd.f32 %v1214_v41, %v1126_v38  ;;  %v1039_v51 = vpop.f32.mrf.mxu0  ;;  %v4042_v56 = vadd.f32 %v3843_v16, %v1648_v40 }
 0x13b   : > { %v1128_v55 = vpop.f32.mrf.mxu1 }
 0x13c   : > { %v1304_v58 = vadd.f32 %v1303_v42, %v1215_v50  ;;  %1763 = vrot.lane.b32.xlu2 %v4042_v56, %s3506_s5  ;;  %1989 = vrot.lane.b32.xlu1 %v4039_v44, %s3507_s6  ;;  %v1129_v59 = vadd.f32 %v1128_v55, %v1039_v51  ;;  %v332_v50 = vld [vmem:[#allocation2 + $0x98] sm:$0xff] }
 0x13e   : > { %v1358_v4 = vadd.f32 %v1304_v58, %v330_v35  ;;  %v1736_v61 = vpop.permute.xlu0 %1735  ;;  %v1740_v35 = vpop.permute.xlu2 %1739 }
 0x13f   : > { %v1457_v62 = vld [vmem:[#allocation2 + $0x80] sm:$0xff]  ;;  %v4053_v12 = vmax.f32 %v3861_v47, %v1736_v61 }
 0x140   : > { %1391 = vst.msk [vmem:[#allocation2 + $0x88] sm:$0xff] %vm280_vm0, %v1358_v4  ;;  %v1649_v0 = vmul.f32 %v3963_v37, %v1457_v62  ;;  %v4077_v62 = vmax.f32 %v3881_v23, %v1740_v35 }
 0x141   : > { %v1217_v46 = vpop.f32.mrf.mxu2 }
 0x142   : > { %v1306_v6 = vpop.f32.mrf.mxu3  ;;  %v1218_v13 = vadd.f32 %v1217_v46, %v1129_v59  ;;  %v1041_v14 = vpop.f32.mrf.mxu0  ;;  %v4056_v17 = vadd.f32 %v3843_v16, %v1649_v0 }
 0x143   : > { %v1130_v15 = vpop.f32.mrf.mxu1 }
 0x144   : > { %v1307_v20 = vadd.f32 %v1306_v6, %v1218_v13  ;;  %1765 = vrot.lane.b32.xlu0 %v4056_v17, %s3506_s5  ;;  %1991 = vrot.lane.b32.xlu2 %v4053_v12, %s3507_s6  ;;  %v1131_v29 = vadd.f32 %v1130_v15, %v1041_v14  ;;  %v333_v14 = vld [vmem:[#allocation2 + $0xa0] sm:$0xff] }
 0x146   : > { %v1359_v37 = vadd.f32 %v1307_v20, %v331_v18  ;;  %v1738_v21 = vpop.permute.xlu1 %1737 }
 0x147   : > { %v1458_v25 = vld [vmem:[#allocation2 + $0x88] sm:$0xff]  ;;  %v4065_v52 = vmax.f32 %v3867_v63, %v1738_v21 }
 0x148   : > { %1392 = vst.msk [vmem:[#allocation2 + $0x90] sm:$0xff] %vm280_vm0, %v1359_v37  ;;  %v1650_v30 = vmul.f32 %v3951_v9, %v1458_v25 }
 0x149   : > { %v1219_v31 = vpop.f32.mrf.mxu2 }
 0x14a   : > { %v1308_v36 = vpop.f32.mrf.mxu3  ;;  %v1220_v38 = vadd.f32 %v1219_v31, %v1131_v29  ;;  %v1044_v40 = vpop.f32.mrf.mxu0  ;;  %v4068_v42 = vadd.f32 %v3843_v16, %v1650_v30 }
 0x14b   : > { %v1133_v41 = vpop.f32.mrf.mxu1 }
 0x14c   : > { %v1309_v51 = vadd.f32 %v1308_v36, %v1220_v38  ;;  %1993 = vrot.lane.b32.xlu0 %v4065_v52, %s3507_s6  ;;  %1767 = vrot.lane.b32.xlu1 %v4068_v42, %s3506_s5  ;;  %v1134_v55 = vadd.f32 %v1133_v41, %v1044_v40  ;;  %v334_v41 = vld [vmem:[#allocation2 + $0xa8] sm:$0xff] }
 0x14e   : > { %v1360_v9 = vadd.f32 %v1309_v51, %v332_v50 }
 0x14f   : > { %v1459_v58 = vld [vmem:[#allocation2 + $0x90] sm:$0xff] }
 0x150   : > { %1393 = vst.msk [vmem:[#allocation2 + $0x98] sm:$0xff] %vm280_vm0, %v1360_v9  ;;  %v1651_v4 = vmul.f32 %v3967_v7, %v1459_v58 }
 0x151   : > { %v1222_v59 = vpop.f32.mrf.mxu2 }
 0x152   : > { %v1311_v61 = vpop.f32.mrf.mxu3  ;;  %v1223_v0 = vadd.f32 %v1222_v59, %v1134_v55  ;;  %v1046_v46 = vpop.f32.mrf.mxu0  ;;  %v4080_v13 = vadd.f32 %v3843_v16, %v1651_v4 }
 0x153   : > { %v1135_v6 = vpop.f32.mrf.mxu1 }
 0x154   : > { %v1312_v15 = vadd.f32 %v1311_v61, %v1223_v0  ;;  %1769 = vrot.lane.b32.xlu2 %v4080_v13, %s3506_s5  ;;  %1995 = vrot.lane.b32.xlu1 %v4077_v62, %s3507_s6  ;;  %v1136_v37 = vadd.f32 %v1135_v6, %v1046_v46 }
 0x156   : > { %v1361_v7 = vadd.f32 %v1312_v15, %v333_v14  ;;  %v1742_v18 = vpop.permute.xlu0 %1741  ;;  %v335_v14 = vld [vmem:[#allocation2 + $0xb0] sm:$0xff] }
 0x157   : > { %v1460_v20 = vld [vmem:[#allocation2 + $0x98] sm:$0xff]  ;;  %v4089_v30 = vmax.f32 %v3887_v39, %v1742_v18 }
 0x158   : > { %1394 = vst.msk [vmem:[#allocation2 + $0xa0] sm:$0xff] %vm280_vm0, %v1361_v7  ;;  %v1652_v21 = vmul.f32 %v3981_v60, %v1460_v20  ;;  %v1746_v7 = vpop.permute.xlu2 %1745 }
 0x159   : > { %v1224_v25 = vpop.f32.mrf.mxu2 }
 0x15a   : > { %v1313_v29 = vpop.f32.mrf.mxu3  ;;  %v1225_v31 = vadd.f32 %v1224_v25, %v1136_v37  ;;  %v1049_v36 = vpop.f32.mrf.mxu0  ;;  %v4092_v40 = vadd.f32 %v3843_v16, %v1652_v21 }
 0x15b   : > { %v1138_v38 = vpop.f32.mrf.mxu1 }
 0x15c   : > { %v1314_v50 = vadd.f32 %v1313_v29, %v1225_v31  ;;  %1771 = vrot.lane.b32.xlu0 %v4092_v40, %s3506_s5  ;;  %1997 = vrot.lane.b32.xlu2 %v4089_v30, %s3507_s6  ;;  %v1139_v51 = vadd.f32 %v1138_v38, %v1049_v36  ;;  %v4113_v29 = vmax.f32 %v3913_v19, %v1746_v7 }
 0x15e   : > { %v1362_v60 = vadd.f32 %v1314_v50, %v334_v41  ;;  %v1744_v9 = vpop.permute.xlu1 %1743  ;;  %v336_v50 = vld [vmem:[#allocation2 + $0xb8] sm:$0xff] }
 0x15f   : > { %v1461_v55 = vld [vmem:[#allocation2 + $0xa0] sm:$0xff]  ;;  %v4101_v59 = vmax.f32 %v3903_v1, %v1744_v9 }
 0x160   : > { %1395 = vst.msk [vmem:[#allocation2 + $0xa8] sm:$0xff] %vm280_vm0, %v1362_v60  ;;  %v1653_v35 = vmul.f32 %v3969_v43, %v1461_v55 }
 0x161   : > { %v1227_v58 = vpop.f32.mrf.mxu2 }
 0x162   : > { %v1316_v4 = vpop.f32.mrf.mxu3  ;;  %v1228_v61 = vadd.f32 %v1227_v58, %v1139_v51  ;;  %v1051_v0 = vpop.f32.mrf.mxu0  ;;  %v4104_v6 = vadd.f32 %v3843_v16, %v1653_v35 }
 0x163   : > { %v1140_v46 = vpop.f32.mrf.mxu1 }
 0x164   : > { %v1317_v15 = vadd.f32 %v1316_v4, %v1228_v61  ;;  %1999 = vrot.lane.b32.xlu0 %v4101_v59, %s3507_s6  ;;  %1773 = vrot.lane.b32.xlu1 %v4104_v6, %s3506_s5  ;;  %v1141_v20 = vadd.f32 %v1140_v46, %v1051_v0 }
 0x166   : > { %v1363_v43 = vadd.f32 %v1317_v15, %v335_v14 }
 0x167   : > { %v1462_v18 = vld [vmem:[#allocation2 + $0xa8] sm:$0xff] }
 0x168   : > { %1396 = vst.msk [vmem:[#allocation2 + $0xb0] sm:$0xff] %vm280_vm0, %v1363_v43  ;;  %v1654_v37 = vmul.f32 %v3988_v8, %v1462_v18  ;;  %v337_v43 = vld [vmem:[#allocation2 + $0xc0] sm:$0xff] }
 0x169   : > { %v1229_v21 = vpop.f32.mrf.mxu2 }
 0x16a   : > { %v1318_v25 = vpop.f32.mrf.mxu3  ;;  %v1230_v31 = vadd.f32 %v1229_v21, %v1141_v20  ;;  %v1054_v36 = vpop.f32.mrf.mxu0  ;;  %v4116_v41 = vadd.f32 %v3843_v16, %v1654_v37 }
 0x16b   : > { %v1143_v38 = vpop.f32.mrf.mxu1 }
 0x16c   : > { %v1319_v60 = vadd.f32 %v1318_v25, %v1230_v31  ;;  %1775 = vrot.lane.b32.xlu2 %v4116_v41, %s3506_s5  ;;  %2001 = vrot.lane.b32.xlu1 %v4113_v29, %s3507_s6  ;;  %v1144_v51 = vadd.f32 %v1143_v38, %v1054_v36 }
 0x16e   : > { %v1364_v8 = vadd.f32 %v1319_v60, %v336_v50  ;;  %v1748_v9 = vpop.permute.xlu0 %1747 }
 0x16f   : > { %v1463_v55 = vld [vmem:[#allocation2 + $0xb0] sm:$0xff]  ;;  %v4125_v61 = vmax.f32 %v3931_v48, %v1748_v9 }
 0x170   : > { %1397 = vst.msk [vmem:[#allocation2 + $0xb8] sm:$0xff] %vm280_vm0, %v1364_v8  ;;  %v1655_v35 = vmul.f32 %v3999_v34, %v1463_v55 }
 0x171   : > { %v1232_v58 = vpop.f32.mrf.mxu2 }
 0x172   : > { %v1321_v4 = vpop.f32.mrf.mxu3  ;;  %v1233_v0 = vadd.f32 %v1232_v58, %v1144_v51  ;;  %v1056_v46 = vpop.f32.mrf.mxu0  ;;  %v4128_v15 = vadd.f32 %v3843_v16, %v1655_v35  ;;  %v338_v51 = vld [vmem:[#allocation2 + $0xc8] sm:$0xff] }
 0x173   : > { %v1145_v14 = vpop.f32.mrf.mxu1  ;;  %v1752_v35 = vpop.permute.xlu2 %1751 }
 0x174   : > { %v1322_v7 = vadd.f32 %v1321_v4, %v1233_v0  ;;  %1777 = vrot.lane.b32.xlu0 %v4128_v15, %s3506_s5  ;;  %2003 = vrot.lane.b32.xlu2 %v4125_v61, %s3507_s6  ;;  %v1146_v37 = vadd.f32 %v1145_v14, %v1056_v46  ;;  %v4149_v14 = vmax.f32 %v3961_v32, %v1752_v35 }
 0x176   : > { %v1365_v34 = vadd.f32 %v1322_v7, %v337_v43  ;;  %v1750_v18 = vpop.permute.xlu1 %1749 }
 0x177   : > { %v1464_v20 = vld [vmem:[#allocation2 + $0xb8] sm:$0xff]  ;;  %v4137_v36 = vmax.f32 %v3942_v2, %v1750_v18 }
 0x178   : > { %1398 = vst.msk [vmem:[#allocation2 + $0xc0] sm:$0xff] %vm280_vm0, %v1365_v34  ;;  %v1656_v21 = vmul.f32 %v3995_v28, %v1464_v20  ;;  %v339_v20 = vld [vmem:[#allocation2 + $0xd0] sm:$0xff] }
 0x179   : > { %v1234_v25 = vpop.f32.mrf.mxu2 }
 0x17a   : > { %v1323_v31 = vpop.f32.mrf.mxu3  ;;  %v1235_v38 = vadd.f32 %v1234_v25, %v1146_v37  ;;  %v1059_v50 = vpop.f32.mrf.mxu0  ;;  %v4140_v8 = vadd.f32 %v3843_v16, %v1656_v21 }
 0x17b   : > { %v1148_v60 = vpop.f32.mrf.mxu1 }
 0x17c   : > { %v1324_v9 = vadd.f32 %v1323_v31, %v1235_v38  ;;  %2005 = vrot.lane.b32.xlu0 %v4137_v36, %s3507_s6  ;;  %1779 = vrot.lane.b32.xlu1 %v4140_v8, %s3506_s5  ;;  %v1149_v55 = vadd.f32 %v1148_v60, %v1059_v50 }
 0x17e   : > { %v1366_v28 = vadd.f32 %v1324_v9, %v338_v51 }
 0x17f   : > { %v1465_v58 = vld [vmem:[#allocation2 + $0xc0] sm:$0xff] }
 0x180   : > { %1399 = vst.msk [vmem:[#allocation2 + $0xc8] sm:$0xff] %vm280_vm0, %v1366_v28  ;;  %v1657_v4 = vmul.f32 %v4006_v49, %v1465_v58  ;;  %v340_v58 = vld [vmem:[#allocation2 + $0xd8] sm:$0xff] }
 0x181   : > { %v1237_v0 = vpop.f32.mrf.mxu2 }
 0x182   : > { %v1326_v46 = vpop.f32.mrf.mxu3  ;;  %v1238_v43 = vadd.f32 %v1237_v0, %v1149_v55  ;;  %v1061_v7 = vpop.f32.mrf.mxu0  ;;  %v4152_v18 = vadd.f32 %v3843_v16, %v1657_v4  ;;  %v4166_v55 = vld [vmem:[%s4596_s3] ss:$0 sm:$0xff] }
 0x183   : > { %v1150_v34 = vpop.f32.mrf.mxu1 }
 0x184   : > { %v1327_v37 = vadd.f32 %v1326_v46, %v1238_v43  ;;  %1781 = vrot.lane.b32.xlu2 %v4152_v18, %s3506_s5  ;;  %2007 = vrot.lane.b32.xlu1 %v4149_v14, %s3507_s6  ;;  %v1151_v31 = vadd.f32 %v1150_v34, %v1061_v7 }
 0x186   : > { %v1367_v49 = vadd.f32 %v1327_v37, %v339_v20  ;;  %v1754_v21 = vpop.permute.xlu0 %1753 }
 0x187   : > { %v1466_v25 = vld [vmem:[#allocation2 + $0xc8] sm:$0xff]  ;;  %v4161_v16 = vmax.f32 %v3974_v54, %v1754_v21 }
 0x188   : > { %1400 = vst.msk [vmem:[#allocation2 + $0xd0] sm:$0xff] %vm280_vm0, %v1367_v49  ;;  %v1658_v38 = vmul.f32 %v4017_v5, %v1466_v25 }
 0x189   : > { %v1239_v50 = vpop.f32.mrf.mxu2 }
 0x18a   : > { %v1328_v60 = vpop.f32.mrf.mxu3  ;;  %v1240_v51 = vadd.f32 %v1239_v50, %v1151_v31  ;;  %v1064_v9 = vpop.f32.mrf.mxu0  ;;  %v4169_v35 = vadd.f32 %v4166_v55, %v1658_v38  ;;  %v341_v38 = vld [vmem:[#allocation2 + $0xe0] sm:$0xff] }
 0x18b   : > { %v1153_v28 = vpop.f32.mrf.mxu1 }
 0x18c   : > { %v1329_v4 = vadd.f32 %v1328_v60, %v1240_v51  ;;  %1783 = vrot.lane.b32.xlu0 %v4169_v35, %s3506_s5  ;;  %2009 = vrot.lane.b32.xlu2 %v4161_v16, %s3507_s6  ;;  %v1154_v0 = vadd.f32 %v1153_v28, %v1064_v9 }
 0x18e   : > { %v1368_v5 = vadd.f32 %v1329_v4, %v340_v58  ;;  %v1756_v46 = vpop.permute.xlu1 %1755 }
 0x18f   : > { %v1467_v43 = vld [vmem:[#allocation2 + $0xd0] sm:$0xff]  ;;  %v4178_v37 = vmax.f32 %v3993_v22, %v1756_v46 }
 0x190   : > { %1401 = vst.msk [vmem:[#allocation2 + $0xd8] sm:$0xff] %vm280_vm0, %v1368_v5  ;;  %v1659_v7 = vmul.f32 %v4010_v53, %v1467_v43  ;;  %v1758_v53 = vpop.permute.xlu2 %1757  ;;  %v342_v43 = vld [vmem:[#allocation2 + $0xe8] sm:$0xff] }
 0x191   : > { %v1242_v34 = vpop.f32.mrf.mxu2  ;;  %v4190_v5 = vmax.f32 %v4004_v45, %v1758_v53 }
 0x192   : > { %v1331_v20 = vpop.f32.mrf.mxu3  ;;  %v1243_v49 = vadd.f32 %v1242_v34, %v1154_v0  ;;  %v1066_v21 = vpop.f32.mrf.mxu0  ;;  %v4181_v31 = vadd.f32 %v4166_v55, %v1659_v7 }
 0x193   : > { %v1155_v25 = vpop.f32.mrf.mxu1  ;;  %4630 = vst [vmem:[#allocation5_spill] sm:$0xff] %v4190_v5 }
 0x194   : > { %v1332_v50 = vadd.f32 %v1331_v20, %v1243_v49  ;;  %2011 = vrot.lane.b32.xlu0 %v4178_v37, %s3507_s6  ;;  %1785 = vrot.lane.b32.xlu1 %v4181_v31, %s3506_s5  ;;  %v1156_v9 = vadd.f32 %v1155_v25, %v1066_v21 }
 0x196   : > { %v1369_v60 = vadd.f32 %v1332_v50, %v341_v38 }
 0x197   : > { %v1468_v51 = vld [vmem:[#allocation2 + $0xd8] sm:$0xff] }
 0x198   : > { %1402 = vst.msk [vmem:[#allocation2 + $0xe0] sm:$0xff] %vm280_vm0, %v1369_v60  ;;  %v1660_v28 = vmul.f32 %v4021_v10, %v1468_v51  ;;  %v1764_v10 = vpop.permute.xlu2 %1763 }
 0x199   : > { %v1244_v58 = vpop.f32.mrf.mxu2 }
 0x19a   : > { %v1333_v4 = vpop.f32.mrf.mxu3  ;;  %v1245_v0 = vadd.f32 %v1244_v58, %v1156_v9  ;;  %v4193_v46 = vadd.f32 %v4166_v55, %v1660_v28  ;;  %v1069_v7 = vpop.f32.mrf.mxu0  ;;  %v343_v58 = vld [vmem:[#allocation2 + $0xf0] sm:$0xff] }
 0x19b   : > { %v1158_v34 = vpop.f32.mrf.mxu1 }
 0x19c   : > { %v1334_v20 = vadd.f32 %v1333_v4, %v1245_v0  ;;  %1787 = vrot.lane.b32.xlu2 %v4193_v46, %s3506_s5  ;;  %2013 = vrot.lane.b32.xlu1 %v4190_v5, %s3507_s6  ;;  %v1159_v21 = vadd.f32 %v1158_v34, %v1069_v7 }
 0x19e   : > { %v1370_v49 = vadd.f32 %v1334_v20, %v342_v43  ;;  %v1760_v25 = vpop.permute.xlu0 %1759 }
 0x19f   : > { %v1469_v38 = vld [vmem:[#allocation2 + $0xe0] sm:$0xff]  ;;  %v4202_v51 = vmax.f32 %v4015_v3, %v1760_v25 }
 0x1a0   : > { %1403 = vst.msk [vmem:[#allocation2 + $0xe8] sm:$0xff] %vm280_vm0, %v1370_v49  ;;  %v1661_v50 = vmul.f32 %v4032_v11, %v1469_v38  ;;  %v1992_v20 = vpop.permute.xlu2 %1991 }
 0x1a1   : > { %v1247_v53 = vpop.f32.mrf.mxu2 }
 0x1a2   : > { %v1336_v60 = vpop.f32.mrf.mxu3  ;;  %v1248_v9 = vadd.f32 %v1247_v53, %v1159_v21  ;;  %v4205_v28 = vadd.f32 %v4166_v55, %v1661_v50  ;;  %v1071_v0 = vpop.f32.mrf.mxu0 }
 0x1a3   : > { %v1160_v43 = vpop.f32.mrf.mxu1 }
 0x1a4   : > { %v1337_v4 = vadd.f32 %v1336_v60, %v1248_v9  ;;  %1789 = vrot.lane.b32.xlu0 %v4205_v28, %s3506_s5  ;;  %2015 = vrot.lane.b32.xlu2 %v4202_v51, %s3507_s6  ;;  %v1161_v49 = vadd.f32 %v1160_v43, %v1071_v0  ;;  %v344_v60 = vld [vmem:[#allocation2 + $0xf8] sm:$0xff] }
 0x1a6   : > { %v1371_v11 = vadd.f32 %v1337_v4, %v343_v58  ;;  %v1762_v7 = vpop.permute.xlu1 %1761  ;;  %v2086_v58 = vsub.f32 %v3861_v47, %v1992_v20 }
 0x1a7   : > { %v1470_v34 = vld [vmem:[#allocation2 + $0xe8] sm:$0xff]  ;;  %v4214_v38 = vmax.f32 %v4028_v26, %v1762_v7 }
 0x1a8   : > { %1404 = vst.msk [vmem:[#allocation2 + $0xf0] sm:$0xff] %vm280_vm0, %v1371_v11  ;;  %v1662_v21 = vmul.f32 %v4023_v57, %v1470_v34  ;;  %v2119_v34 = vmul.f32 1.442695, %v2086_v58 }
 0x1a9   : > { %v1249_v25 = vpop.f32.mrf.mxu2 }
 0x1aa   : > { %v1250_v50 = vadd.f32 %v1249_v25, %v1161_v49  ;;  %v4217_v53 = vadd.f32 %v4166_v55, %v1662_v21  ;;  %v1338_v9 = vpop.f32.mrf.mxu3  ;;  %v4228_v21 = vmax.f32 %v4042_v56, %v1764_v10 }
 0x1ac   : > { %v1339_v5 = vadd.f32 %v1338_v9, %v1250_v50  ;;  %2017 = vrot.lane.b32.xlu0 %v4214_v38, %s3507_s6  ;;  %1791 = vrot.lane.b32.xlu1 %v4217_v53, %s3506_s5 }
 0x1ae   : > { %v1372_v57 = vadd.f32 %v1339_v5, %v344_v60  ;;  %v1990_v4 = vpop.permute.xlu1 %1989  ;;  %v1770_v11 = vpop.permute.xlu2 %1769 }
 0x1af   : > { %v2085_v0 = vsub.f32 %v3847_v24, %v1990_v4  ;;  %v1471_v43 = vld [vmem:[#allocation2 + $0xf0] sm:$0xff] }
 0x1b0   : > { %1405 = vst.msk [vmem:[#allocation2 + $0xf8] sm:$0xff] %vm280_vm0, %v1372_v57  ;;  %v1663_v7 = vmul.f32 %v4034_v33, %v1471_v43 }
 0x1b1   : > { %v2117_v49 = vmul.f32 1.442695, %v2085_v0 }
 0x1b2   : > { %v4231_v25 = vadd.f32 %v4166_v55, %v1663_v7 }
 0x1b3   : > { %3287 = vpow2.f32 %v2117_v49  ;;  %v4251_v49 = vmax.f32 %v4080_v13, %v1770_v11 }
 0x1b4   : > { %1793 = vrot.lane.b32.xlu2 %v4231_v25, %s3506_s5  ;;  %2019 = vrot.lane.b32.xlu1 %v4228_v21, %s3507_s6  ;;  %3289 = vpow2.f32 %v2119_v34 }
 0x1b5   : > { %4631 = vst [vmem:[#allocation6_spill] sm:$0xff] %v4251_v49 }
 0x1b6   : > { %v1766_v5 = vpop.permute.xlu0 %1765  ;;  %v1998_v60 = vpop.permute.xlu2 %1997 }
 0x1b7   : > { %v1472_v50 = vld [vmem:[#allocation2 + $0xf8] sm:$0xff]  ;;  %v4238_v33 = vmax.f32 %v4056_v17, %v1766_v5  ;;  %v2089_v58 = vsub.f32 %v3887_v39, %v1998_v60 }
 0x1b8   : > { %v1664_v9 = vmul.f32 %v4048_v27, %v1472_v50 }
 0x1b9   : > { %v3288_v20 = vpop.eup %3287  ;;  %v2125_v7 = vmul.f32 1.442695, %v2089_v58 }
 0x1ba   : > { %2213 = vrot.lane.b32.xlu0 %v3288_v20, %s3506_s5  ;;  %v3290_v10 = vpop.eup %3289  ;;  %v4248_v43 = vadd.f32 %v4166_v55, %v1664_v9 }
 0x1bc   : > { %2021 = vrot.lane.b32.xlu2 %v4238_v33, %s3507_s6  ;;  %2215 = vrot.lane.b32.xlu1 %v3290_v10, %s3506_s5 }
 0x1be   : > { %v1994_v57 = vpop.permute.xlu0 %1993  ;;  %v1768_v4 = vpop.permute.xlu1 %1767 }
 0x1bf   : > { %v2087_v0 = vsub.f32 %v3867_v63, %v1994_v57  ;;  %v4259_v55 = vmax.f32 %v4068_v42, %v1768_v4 }
 0x1c1   : > { %v2121_v34 = vmul.f32 1.442695, %v2087_v0 }
 0x1c2   : > { %1795 = vrot.lane.b32.xlu0 %v4248_v43, %s3506_s5 }
 0x1c3   : > { %3291 = vpow2.f32 %v2121_v34 }
 0x1c4   : > { %2025 = vrot.lane.b32.xlu1 %v4251_v49, %s3507_s6  ;;  %3293 = vpow2.f32 %v2125_v7 }
 0x1c6   : > { %v1996_v27 = vpop.permute.xlu1 %1995  ;;  %v1776_v5 = vpop.permute.xlu2 %1775 }
 0x1c7   : > { %v2088_v20 = vsub.f32 %v3881_v23, %v1996_v27  ;;  %v4270_v7 = vmax.f32 %v4116_v41, %v1776_v5 }
 0x1c9   : > { %v3292_v50 = vpop.eup %3291  ;;  %v2123_v60 = vmul.f32 1.442695, %v2088_v20  ;;  %4632 = vst [vmem:[#allocation7_spill] sm:$0xff] %v4270_v7 }
 0x1ca   : > { %2217 = vrot.lane.b32.xlu2 %v3292_v50, %s3506_s5  ;;  %2023 = vrot.lane.b32.xlu0 %v4259_v55, %s3507_s6  ;;  %v3294_v11 = vpop.eup %3293 }
 0x1cb   : > { %3295 = vpow2.f32 %v2123_v60 }
 0x1cc   : > { %2221 = vrot.lane.b32.xlu1 %v3294_v11, %s3506_s5 }
 0x1ce   : > { %v1772_v10 = vpop.permute.xlu0 %1771  ;;  %v2004_v9 = vpop.permute.xlu2 %2003 }
 0x1cf   : > { %v4266_v58 = vmax.f32 %v4092_v40, %v1772_v10  ;;  %v2092_v57 = vsub.f32 %v3931_v48, %v2004_v9 }
 0x1d1   : > { %v3296_v4 = vpop.eup %3295  ;;  %v2131_v0 = vmul.f32 1.442695, %v2092_v57 }
 0x1d2   : > { %2027 = vrot.lane.b32.xlu2 %v4266_v58, %s3507_s6  ;;  %2219 = vrot.lane.b32.xlu0 %v3296_v4, %s3506_s5 }
 0x1d3   : > { %3297 = vpow2.f32 %v2131_v0 }
 0x1d4   : > { %2031 = vrot.lane.b32.xlu1 %v4270_v7, %s3507_s6 }
 0x1d6   : > { %v2000_v34 = vpop.permute.xlu0 %1999  ;;  %v1774_v27 = vpop.permute.xlu1 %1773 }
 0x1d7   : > { %v2090_v20 = vsub.f32 %v3903_v1, %v2000_v34  ;;  %v4279_v50 = vmax.f32 %v4104_v6, %v1774_v27 }
 0x1d9   : > { %4633 = vst [vmem:[#allocation8_spill] sm:$0xff] %v4279_v50  ;;  %v2127_v60 = vmul.f32 1.442695, %v2090_v20  ;;  %v3298_v5 = vpop.eup %3297 }
 0x1da   : > { %2029 = vrot.lane.b32.xlu0 %v4279_v50, %s3507_s6 }
 0x1db   : > { %3299 = vpow2.f32 %v2127_v60 }
 0x1dc   : > { %2227 = vrot.lane.b32.xlu1 %v3298_v5, %s3506_s5 }
 0x1de   : > { %v2002_v11 = vpop.permute.xlu1 %2001  ;;  %v1782_v10 = vpop.permute.xlu2 %1781 }
 0x1df   : > { %v2091_v9 = vsub.f32 %v3913_v19, %v2002_v11  ;;  %v4286_v0 = vmax.f32 %v4152_v18, %v1782_v10 }
 0x1e1   : > { %v3300_v57 = vpop.eup %3299  ;;  %v2129_v4 = vmul.f32 1.442695, %v2091_v9  ;;  %4634 = vst [vmem:[#allocation9_spill] sm:$0xff] %v4286_v0 }
 0x1e2   : > { %2223 = vrot.lane.b32.xlu2 %v3300_v57, %s3506_s5 }
 0x1e3   : > { %3301 = vpow2.f32 %v2129_v4 }
 0x1e4   : > { %2037 = vrot.lane.b32.xlu1 %v4286_v0, %s3507_s6 }
 0x1e6   : > { %v1778_v34 = vpop.permute.xlu0 %1777  ;;  %v2010_v27 = vpop.permute.xlu2 %2009 }
 0x1e7   : > { %v4292_v20 = vmax.f32 %v4128_v15, %v1778_v34  ;;  %v2095_v60 = vsub.f32 %v3974_v54, %v2010_v27 }
 0x1e9   : > { %4635 = vst [vmem:[#allocation10_spill] sm:$0xff] %v4292_v20  ;;  %v3302_v5 = vpop.eup %3301  ;;  %v2137_v11 = vmul.f32 1.442695, %v2095_v60 }
 0x1ea   : > { %2033 = vrot.lane.b32.xlu2 %v4292_v20, %s3507_s6  ;;  %2225 = vrot.lane.b32.xlu0 %v3302_v5, %s3506_s5 }
 0x1eb   : > { %3303 = vpow2.f32 %v2137_v11 }
 0x1ee   : > { %v2006_v10 = vpop.permute.xlu0 %2005  ;;  %v1780_v9 = vpop.permute.xlu1 %1779 }
 0x1ef   : > { %v2093_v57 = vsub.f32 %v3942_v2, %v2006_v10  ;;  %v4300_v4 = vmax.f32 %v4140_v8, %v1780_v9 }
 0x1f1   : > { %4636 = vst [vmem:[#allocation11_spill] sm:$0xff] %v4300_v4  ;;  %v3304_v0 = vpop.eup %3303  ;;  %v2133_v34 = vmul.f32 1.442695, %v2093_v57 }
 0x1f2   : > { %2035 = vrot.lane.b32.xlu0 %v4300_v4, %s3507_s6  ;;  %2233 = vrot.lane.b32.xlu1 %v3304_v0, %s3506_s5 }
 0x1f3   : > { %3305 = vpow2.f32 %v2133_v34 }
 0x1f6   : > { %v2008_v27 = vpop.permute.xlu1 %2007  ;;  %v1788_v60 = vpop.permute.xlu2 %1787 }
 0x1f7   : > { %v2094_v5 = vsub.f32 %v3961_v32, %v2008_v27  ;;  %v4307_v11 = vmax.f32 %v4193_v46, %v1788_v60 }
 0x1f9   : > { %4637 = vst [vmem:[#allocation12_spill] sm:$0xff] %v4307_v11  ;;  %v3306_v7 = vpop.eup %3305  ;;  %v2135_v10 = vmul.f32 1.442695, %v2094_v5 }
 0x1fa   : > { %2229 = vrot.lane.b32.xlu2 %v3306_v7, %s3506_s5  ;;  %2043 = vrot.lane.b32.xlu1 %v4307_v11, %s3507_s6 }
 0x1fb   : > { %3307 = vpow2.f32 %v2135_v10 }
 0x1fe   : > { %v1784_v9 = vpop.permute.xlu0 %1783  ;;  %v2016_v57 = vpop.permute.xlu2 %2015 }
 0x1ff   : > { %v4313_v0 = vmax.f32 %v4169_v35, %v1784_v9  ;;  %v2098_v34 = vsub.f32 %v4015_v3, %v2016_v57 }
 0x201   : > { %4638 = vst [vmem:[#allocation13_spill] sm:$0xff] %v4313_v0  ;;  %v3308_v4 = vpop.eup %3307  ;;  %v2143_v27 = vmul.f32 1.442695, %v2098_v34 }
 0x202   : > { %2039 = vrot.lane.b32.xlu2 %v4313_v0, %s3507_s6  ;;  %2231 = vrot.lane.b32.xlu0 %v3308_v4, %s3506_s5 }
 0x203   : > { %3309 = vpow2.f32 %v2143_v27 }
 0x206   : > { %v2012_v7 = vpop.permute.xlu0 %2011  ;;  %v1786_v60 = vpop.permute.xlu1 %1785 }
 0x207   : > { %v2096_v5 = vsub.f32 %v3993_v22, %v2012_v7  ;;  %v4321_v10 = vmax.f32 %v4181_v31, %v1786_v60  ;;  %v1863_v60 = vsub.f32 %v3867_v63, %v4065_v52 }
 0x209   : > { %4639 = vst [vmem:[#allocation14_spill] sm:$0xff] %v4321_v10  ;;  %v3310_v11 = vpop.eup %3309  ;;  %v2139_v9 = vmul.f32 1.442695, %v2096_v5  ;;  %v1897_v20 = vmul.f32 1.442695, %v1863_v60  ;;  %v1862_v60 = vsub.f32 %v3861_v47, %v4053_v12 }
 0x20a   : > { %2041 = vrot.lane.b32.xlu0 %v4321_v10, %s3507_s6  ;;  %2239 = vrot.lane.b32.xlu1 %v3310_v11, %s3506_s5 }
 0x20b   : > { %3311 = vpow2.f32 %v2139_v9 }
 0x20e   : > { %v2014_v57 = vpop.permute.xlu1 %2013  ;;  %v1794_v34 = vpop.permute.xlu2 %1793 }
 0x20f   : > { %v2097_v4 = vsub.f32 %v4004_v45, %v2014_v57  ;;  %v4328_v27 = vmax.f32 %v4231_v25, %v1794_v34 }
 0x211   : > { %4640 = vst [vmem:[#allocation15_spill] sm:$0xff] %v4328_v27  ;;  %v3312_v0 = vpop.eup %3311  ;;  %v2141_v7 = vmul.f32 1.442695, %v2097_v4 }
 0x212   : > { %2235 = vrot.lane.b32.xlu2 %v3312_v0, %s3506_s5  ;;  %2049 = vrot.lane.b32.xlu1 %v4328_v27, %s3507_s6  ;;  %v1861_v0 = vsub.f32 %v3847_v24, %v4039_v44 }
 0x213   : > { %3313 = vpow2.f32 %v2141_v7 }
 0x216   : > { %v1790_v11 = vpop.permute.xlu0 %1789  ;;  %v2022_v5 = vpop.permute.xlu2 %2021 }
 0x217   : > { %v4336_v9 = vmax.f32 %v4205_v28, %v1790_v11  ;;  %v2101_v57 = vsub.f32 %v4056_v17, %v2022_v5 }
 0x219   : > { %4641 = vst [vmem:[#allocation16_spill] sm:$0xff] %v4336_v9  ;;  %v3314_v34 = vpop.eup %3313  ;;  %v2149_v10 = vmul.f32 1.442695, %v2101_v57 }
 0x21a   : > { %2045 = vrot.lane.b32.xlu2 %v4336_v9, %s3507_s6  ;;  %2237 = vrot.lane.b32.xlu0 %v3314_v34, %s3506_s5  ;;  %v1893_v9 = vmul.f32 1.442695, %v1861_v0 }
 0x21b   : > { %3315 = vpow2.f32 %v2149_v10  ;;  %v1895_v10 = vmul.f32 1.442695, %v1862_v60 }
 0x21c   : > { %3317 = vpow2.f32 %v1897_v20 }
 0x21e   : > { %v2018_v4 = vpop.permute.xlu0 %2017  ;;  %v1792_v7 = vpop.permute.xlu1 %1791 }
 0x21f   : > { %v2099_v11 = vsub.f32 %v4028_v26, %v2018_v4  ;;  %v4346_v27 = vmax.f32 %v4217_v53, %v1792_v7 }
 0x221   : > { %4642 = vst [vmem:[#allocation17_spill] sm:$0xff] %v4346_v27  ;;  %v3316_v5 = vpop.eup %3315  ;;  %v2145_v57 = vmul.f32 1.442695, %v2099_v11 }
 0x222   : > { %2047 = vrot.lane.b32.xlu0 %v4346_v27, %s3507_s6  ;;  %2245 = vrot.lane.b32.xlu1 %v3316_v5, %s3506_s5  ;;  %v3318_v20 = vpop.eup %3317 }
 0x223   : > { %3319 = vpow2.f32 %v2145_v57 }
 0x224   : > { %v2218_v34 = vpop.permute.xlu2 %2217  ;;  %3321 = vpow2.f32 %v1893_v9  ;;  %v1866_v9 = vsub.f32 %v3903_v1, %v4101_v59 }
 0x225   : > { %v2311_v49 = vadd.f32 %v3318_v20, %v2218_v34 }
 0x226   : > { %v2020_v4 = vpop.permute.xlu1 %2019 }
 0x227   : > { %3323 = vlog2.f32 %v2311_v49  ;;  %v2100_v7 = vsub.f32 %v4042_v56, %v2020_v4  ;;  %v1865_v4 = vsub.f32 %v3887_v39, %v4089_v30 }
 0x228   : > { %3325 = vpow2.f32 %v1895_v10 }
 0x229   : > { %v3320_v47 = vpop.eup %3319  ;;  %v2147_v50 = vmul.f32 1.442695, %v2100_v7  ;;  %v1903_v7 = vmul.f32 1.442695, %v1866_v9 }
 0x22a   : > { %2241 = vrot.lane.b32.xlu2 %v3320_v47, %s3506_s5  ;;  %v3322_v0 = vpop.eup %3321 }
 0x22b   : > { %3327 = vpow2.f32 %v2147_v50 }
 0x22c   : > { %v2214_v11 = vpop.permute.xlu0 %2213  ;;  %v2028_v27 = vpop.permute.xlu2 %2027 }
 0x22d   : > { %v3324_v5 = vpop.eup %3323  ;;  %v2309_v57 = vadd.f32 %v3322_v0, %v2214_v11  ;;  %v2104_v60 = vsub.f32 %v4092_v40, %v2028_v27  ;;  %v1901_v27 = vmul.f32 1.442695, %v1865_v4  ;;  %v1864_v11 = vsub.f32 %v3881_v23, %v4077_v62 }
 0x22e   : > { %v3326_v63 = vpop.eup %3325  ;;  %v2346_v49 = vmul.f32 0.6931472, %v3324_v5  ;;  %v2216_v20 = vpop.permute.xlu1 %2215 }
 0x22f   : > { %v2155_v34 = vmul.f32 1.442695, %v2104_v60  ;;  %v2310_v10 = vadd.f32 %v3326_v63, %v2216_v20  ;;  %3329 = vlog2.f32 %v2309_v57 }
 0x230   : > { %v2407_v47 = vadd.f32 %v2346_v49, %v4065_v52  ;;  %v1899_v49 = vmul.f32 1.442695, %v1864_v11 }
 0x231   : > { %v3328_v50 = vpop.eup %3327  ;;  %3331 = vlog2.f32 %v2310_v10 }
 0x232   : > { %2243 = vrot.lane.b32.xlu0 %v3328_v50, %s3506_s5  ;;  %2449 = vperm.xlu1 %3284, %v2407_v47   ;;  %3333 = vpow2.f32 %v2155_v34 }
 0x233   : > { %3335 = vpow2.f32 %v1903_v7 }
 0x234   : > { %v1796_v0 = vpop.permute.xlu0 %1795  ;;  %3337 = vpow2.f32 %v1901_v27 }
 0x235   : > { %v4365_v63 = vmax.f32 %v4248_v43, %v1796_v0  ;;  %v3330_v5 = vpop.eup %3329  ;;  %3339 = vpow2.f32 %v1899_v49 }
 0x236   : > { %v2026_v57 = vpop.permute.xlu1 %2025  ;;  %v2342_v20 = vmul.f32 0.6931472, %v3330_v5 }
 0x237   : > { %4643 = vst [vmem:[#allocation18_spill] sm:$0xff] %v4365_v63  ;;  %v2103_v52 = vsub.f32 %v4080_v13, %v2026_v57  ;;  %2051 = vrot.lane.b32.xlu2 %v4365_v63, %s3507_s6  ;;  %v3332_v60 = vpop.eup %3331 }
 0x238   : > { %v3334_v9 = vpop.eup %3333  ;;  %v2344_v34 = vmul.f32 0.6931472, %v3332_v60  ;;  %v2405_v63 = vadd.f32 %v2342_v20, %v4039_v44  ;;  %v1869_v44 = vsub.f32 %v3942_v2, %v4137_v36 }
 0x239   : > { %v2153_v10 = vmul.f32 1.442695, %v2103_v52  ;;  %v3336_v47 = vpop.eup %3335 }
 0x23a   : > { %2251 = vrot.lane.b32.xlu1 %v3334_v9, %s3506_s5  ;;  %v2406_v4 = vadd.f32 %v2344_v34, %v4053_v12  ;;  %v3338_v27 = vpop.eup %3337  ;;  %v1868_v12 = vsub.f32 %v3931_v48, %v4125_v61 }
 0x23b   : > { %3341 = vpow2.f32 %v2153_v10  ;;  %v3340_v60 = vpop.eup %3339 }
 0x23c   : > { %v2024_v50 = vpop.permute.xlu0 %2023  ;;  %v2224_v7 = vpop.permute.xlu2 %2223  ;;  %2444 = vperm.xlu0 %3283, %v2406_v4   ;;  %v1907_v49 = vmul.f32 1.442695, %v1868_v12 }
 0x23d   : > { %v2102_v0 = vsub.f32 %v4068_v42, %v2024_v50  ;;  %v2314_v57 = vadd.f32 %v3336_v47, %v2224_v7 }
 0x23e   : > { %v2222_v11 = vpop.permute.xlu1 %2221 }
 0x23f   : > { %v2151_v5 = vmul.f32 1.442695, %v2102_v0  ;;  %3343 = vlog2.f32 %v2314_v57  ;;  %v2313_v52 = vadd.f32 %v3338_v27, %v2222_v11  ;;  %2439 = vperm.xlu2 %3285, %v2405_v63  }
 0x241   : > { %3345 = vpow2.f32 %v2151_v5  ;;  %v3342_v9 = vpop.eup %3341  ;;  %v1909_v5 = vmul.f32 1.442695, %v1869_v44 }
 0x242   : > { %3347 = vlog2.f32 %v2313_v52 }
 0x244   : > { %v2220_v34 = vpop.permute.xlu0 %2219  ;;  %v2034_v4 = vpop.permute.xlu2 %2033  ;;  %2249 = vrot.lane.b32.xlu0 %v3342_v9, %s3506_s5 }
 0x245   : > { %v3344_v47 = vpop.eup %3343  ;;  %v2312_v20 = vadd.f32 %v3340_v60, %v2220_v34  ;;  %v2107_v10 = vsub.f32 %v4128_v15, %v2034_v4 }
 0x246   : > { %v2352_v63 = vmul.f32 0.6931472, %v3344_v47  ;;  %v2032_v50 = vpop.permute.xlu1 %2031 }
 0x247   : > { %v3346_v7 = vpop.eup %3345  ;;  %3349 = vlog2.f32 %v2312_v20  ;;  %v2161_v0 = vmul.f32 1.442695, %v2107_v10  ;;  %v2106_v57 = vsub.f32 %v4116_v41, %v2032_v50 }
 0x248   : > { %v3348_v27 = vpop.eup %3347  ;;  %3351 = vpow2.f32 %v1907_v49  ;;  %2247 = vrot.lane.b32.xlu2 %v3346_v7, %s3506_s5  ;;  %v2410_v11 = vadd.f32 %v2352_v63, %v4101_v59  ;;  %v1867_v49 = vsub.f32 %v3913_v19, %v4113_v29 }
 0x249   : > { %v2350_v52 = vmul.f32 0.6931472, %v3348_v27  ;;  %v2159_v12 = vmul.f32 1.442695, %v2106_v57  ;;  %3353 = vpow2.f32 %v2161_v0  ;;  %v1871_v27 = vsub.f32 %v3974_v54, %v4161_v16 }
 0x24a   : > { %2464 = vperm.xlu1 %3284, %v2410_v11   ;;  %3355 = vpow2.f32 %v1909_v5  ;;  %v1905_v7 = vmul.f32 1.442695, %v1867_v49 }
 0x24b   : > { %v2409_v60 = vadd.f32 %v2350_v52, %v4089_v30  ;;  %3357 = vpow2.f32 %v2159_v12 }
 0x24c   : > { %v2030_v9 = vpop.permute.xlu0 %2029 }
 0x24d   : > { %v3350_v34 = vpop.eup %3349  ;;  %v2105_v4 = vsub.f32 %v4104_v6, %v2030_v9  ;;  %2459 = vperm.xlu0 %3283, %v2409_v60   ;;  %v1913_v60 = vmul.f32 1.442695, %v1871_v27 }
 0x24e   : > { %v3352_v47 = vpop.eup %3351  ;;  %v2348_v20 = vmul.f32 0.6931472, %v3350_v34  ;;  %v2228_v59 = vpop.permute.xlu1 %2227 }
 0x24f   : > { %v2157_v44 = vmul.f32 1.442695, %v2105_v4  ;;  %v2316_v10 = vadd.f32 %v3352_v47, %v2228_v59  ;;  %v3354_v50 = vpop.eup %3353 }
 0x250   : > { %v2408_v63 = vadd.f32 %v2348_v20, %v4077_v62  ;;  %v3356_v30 = vpop.eup %3355 }
 0x251   : > { %3359 = vlog2.f32 %v2316_v10  ;;  %v3358_v0 = vpop.eup %3357 }
 0x252   : > { %2454 = vperm.xlu2 %3285, %v2408_v63   ;;  %2257 = vrot.lane.b32.xlu1 %v3354_v50, %s3506_s5  ;;  %3361 = vpow2.f32 %v2157_v44 }
 0x253   : > { %3363 = vpow2.f32 %v1905_v7 }
 0x254   : > { %v2230_v57 = vpop.permute.xlu2 %2229 }
 0x255   : > { %2255 = vrot.lane.b32.xlu0 %v3358_v0, %s3506_s5  ;;  %v2317_v11 = vadd.f32 %v3356_v30, %v2230_v57 }
 0x256   : > { %v2038_v5 = vpop.permute.xlu1 %2037 }
 0x257   : > { %3365 = vlog2.f32 %v2317_v11  ;;  %v2109_v62 = vsub.f32 %v4152_v18, %v2038_v5  ;;  %v3360_v52 = vpop.eup %3359 }
 0x258   : > { %v3362_v12 = vpop.eup %3361  ;;  %v2356_v9 = vmul.f32 0.6931472, %v3360_v52  ;;  %3367 = vpow2.f32 %v1913_v60 }
 0x259   : > { %v2165_v34 = vmul.f32 1.442695, %v2109_v62  ;;  %v3364_v47 = vpop.eup %3363  ;;  %v1870_v62 = vsub.f32 %v3961_v32, %v4149_v14 }
 0x25a   : > { %2253 = vrot.lane.b32.xlu2 %v3362_v12, %s3506_s5  ;;  %v2412_v4 = vadd.f32 %v2356_v9, %v4125_v61 }
 0x25b   : > { %3369 = vpow2.f32 %v2165_v34  ;;  %v1911_v9 = vmul.f32 1.442695, %v1870_v62 }
 0x25c   : > { %v2226_v49 = vpop.permute.xlu0 %2225  ;;  %v2040_v20 = vpop.permute.xlu2 %2039 }
 0x25d   : > { %v3366_v59 = vpop.eup %3365  ;;  %v2315_v44 = vadd.f32 %v3364_v47, %v2226_v49  ;;  %2474 = vperm.xlu0 %3283, %v2412_v4   ;;  %v2110_v10 = vsub.f32 %v4169_v35, %v2040_v20 }
 0x25e   : > { %v2358_v63 = vmul.f32 0.6931472, %v3366_v59  ;;  %v3368_v30 = vpop.eup %3367 }
 0x25f   : > { %3371 = vlog2.f32 %v2315_v44  ;;  %v2167_v50 = vmul.f32 1.442695, %v2110_v10 }
 0x260   : > { %v2413_v7 = vadd.f32 %v2358_v63, %v4137_v36 }
 0x261   : > { %3373 = vpow2.f32 %v2167_v50  ;;  %v3370_v0 = vpop.eup %3369 }
 0x262   : > { %2479 = vperm.xlu1 %3284, %v2413_v7   ;;  %v1874_v7 = vsub.f32 %v4015_v3, %v4202_v51 }
 0x264   : > { %v2036_v61 = vpop.permute.xlu0 %2035  ;;  %v2234_v57 = vpop.permute.xlu1 %2233 }
 0x265   : > { %v3372_v27 = vpop.eup %3371  ;;  %v2108_v11 = vsub.f32 %v4140_v8, %v2036_v61  ;;  %2261 = vrot.lane.b32.xlu0 %v3370_v0, %s3506_s5  ;;  %v2319_v5 = vadd.f32 %v3368_v30, %v2234_v57 }
 0x266   : > { %v2354_v52 = vmul.f32 0.6931472, %v3372_v27  ;;  %v1919_v27 = vmul.f32 1.442695, %v1874_v7 }
 0x267   : > { %v2163_v12 = vmul.f32 1.442695, %v2108_v11  ;;  %3375 = vlog2.f32 %v2319_v5  ;;  %v3374_v60 = vpop.eup %3373 }
 0x268   : > { %v2411_v36 = vadd.f32 %v2354_v52, %v4113_v29 }
 0x269   : > { %3377 = vpow2.f32 %v2163_v12 }
 0x26a   : > { %2469 = vperm.xlu2 %3285, %v2411_v36   ;;  %2263 = vrot.lane.b32.xlu1 %v3374_v60, %s3506_s5  ;;  %3379 = vpow2.f32 %v1911_v9  ;;  %v1872_v9 = vsub.f32 %v3993_v22, %v4178_v37 }
 0x26c   : > { %v2044_v34 = vpop.permute.xlu1 %2043  ;;  %v2236_v4 = vpop.permute.xlu2 %2235 }
 0x26d   : > { %v3376_v47 = vpop.eup %3375  ;;  %v2112_v49 = vsub.f32 %v4193_v46, %v2044_v34 }
 0x26e   : > { %v2362_v20 = vmul.f32 0.6931472, %v3376_v47 }
 0x26f   : > { %v2171_v59 = vmul.f32 1.442695, %v2112_v49  ;;  %v3378_v10 = vpop.eup %3377 }
 0x270   : > { %v2415_v44 = vadd.f32 %v2362_v20, %v4161_v16  ;;  %v3380_v29 = vpop.eup %3379  ;;  %v4644_v20 = vld [vmem:[#allocation5_spill] sm:$0xff] }
 0x271   : > { %3381 = vpow2.f32 %v2171_v59  ;;  %v1873_v59 = vsub.f32 %v4004_v45, %v4644_v20 }
 0x272   : > { %2259 = vrot.lane.b32.xlu2 %v3378_v10, %s3506_s5  ;;  %2489 = vperm.xlu0 %3283, %v2415_v44   ;;  %v1915_v10 = vmul.f32 1.442695, %v1872_v9  ;;  %v1878_v9 = vsub.f32 %v4068_v42, %v4259_v55 }
 0x274   : > { %v2232_v63 = vpop.permute.xlu0 %2231  ;;  %v2046_v50 = vpop.permute.xlu2 %2045 }
 0x275   : > { %v2318_v30 = vadd.f32 %v3380_v29, %v2232_v63  ;;  %v2113_v0 = vsub.f32 %v4205_v28, %v2046_v50  ;;  %v1877_v29 = vsub.f32 %v4056_v17, %v4238_v33  ;;  %v1917_v50 = vmul.f32 1.442695, %v1873_v59 }
 0x277   : > { %3383 = vlog2.f32 %v2318_v30  ;;  %v2173_v61 = vmul.f32 1.442695, %v2113_v0  ;;  %v3382_v57 = vpop.eup %3381  ;;  %v1925_v30 = vmul.f32 1.442695, %v1877_v29  ;;  %v1875_v0 = vsub.f32 %v4028_v26, %v4214_v38 }
 0x279   : > { %3385 = vpow2.f32 %v2173_v61 }
 0x27a   : > { %2267 = vrot.lane.b32.xlu0 %v3382_v57, %s3506_s5  ;;  %3387 = vpow2.f32 %v1919_v27 }
 0x27c   : > { %v2042_v16 = vpop.permute.xlu0 %2041  ;;  %v2240_v11 = vpop.permute.xlu1 %2239 }
 0x27d   : > { %v3384_v5 = vpop.eup %3383  ;;  %v2111_v62 = vsub.f32 %v4181_v31, %v2042_v16  ;;  %v1921_v16 = vmul.f32 1.442695, %v1875_v0 }
 0x27e   : > { %v2360_v52 = vmul.f32 0.6931472, %v3384_v5 }
 0x27f   : > { %v3386_v12 = vpop.eup %3385  ;;  %v2169_v36 = vmul.f32 1.442695, %v2111_v62 }
 0x280   : > { %2269 = vrot.lane.b32.xlu1 %v3386_v12, %s3506_s5  ;;  %v2414_v60 = vadd.f32 %v2360_v52, %v4149_v14  ;;  %v3388_v34 = vpop.eup %3387 }
 0x281   : > { %3389 = vpow2.f32 %v2169_v36  ;;  %v2322_v47 = vadd.f32 %v3388_v34, %v2240_v11 }
 0x282   : > { %2484 = vperm.xlu2 %3285, %v2414_v60  }
 0x283   : > { %3391 = vlog2.f32 %v2322_v47 }
 0x284   : > { %v2050_v49 = vpop.permute.xlu1 %2049  ;;  %v2242_v7 = vpop.permute.xlu2 %2241 }
 0x285   : > { %v2115_v44 = vsub.f32 %v4231_v25, %v2050_v49 }
 0x287   : > { %v2177_v63 = vmul.f32 1.442695, %v2115_v44  ;;  %v3390_v14 = vpop.eup %3389  ;;  %v1876_v44 = vsub.f32 %v4042_v56, %v4228_v21 }
 0x289   : > { %3393 = vpow2.f32 %v2177_v63  ;;  %v3392_v57 = vpop.eup %3391 }
 0x28a   : > { %3395 = vpow2.f32 %v1915_v10  ;;  %2265 = vrot.lane.b32.xlu2 %v3390_v14, %s3506_s5  ;;  %v2368_v52 = vmul.f32 0.6931472, %v3392_v57  ;;  %v1927_v14 = vmul.f32 1.442695, %v1878_v9 }
 0x28b   : > { %3397 = vpow2.f32 %v1917_v50 }
 0x28c   : > { %v2238_v61 = vpop.permute.xlu0 %2237  ;;  %3399 = vpow2.f32 %v1925_v30  ;;  %v2418_v29 = vadd.f32 %v2368_v52, %v4202_v51  ;;  %v1923_v30 = vmul.f32 1.442695, %v1876_v44 }
 0x28d   : > { %3401 = vpow2.f32 %v1921_v16 }
 0x28f   : > { %v3394_v27 = vpop.eup %3393 }
 0x290   : > { %v3396_v11 = vpop.eup %3395  ;;  %2273 = vrot.lane.b32.xlu0 %v3394_v27, %s3506_s5 }
 0x291   : > { %v2320_v5 = vadd.f32 %v3396_v11, %v2236_v4  ;;  %v2052_v62 = vpop.permute.xlu2 %2051  ;;  %v3398_v36 = vpop.eup %3397  ;;  %v1880_v11 = vsub.f32 %v4092_v40, %v4266_v58 }
 0x292   : > { %v2116_v12 = vsub.f32 %v4248_v43, %v2052_v62  ;;  %v3400_v60 = vpop.eup %3399  ;;  %v2321_v34 = vadd.f32 %v3398_v36, %v2238_v61 }
 0x293   : > { %3403 = vlog2.f32 %v2320_v5  ;;  %v3402_v50 = vpop.eup %3401 }
 0x294   : > { %v2179_v47 = vmul.f32 1.442695, %v2116_v12  ;;  %v2048_v49 = vpop.permute.xlu0 %2047  ;;  %v2246_v59 = vpop.permute.xlu1 %2245  ;;  %v2323_v61 = vadd.f32 %v3402_v50, %v2242_v7  ;;  %v1931_v7 = vmul.f32 1.442695, %v1880_v11 }
 0x295   : > { %v2114_v4 = vsub.f32 %v4217_v53, %v2048_v49  ;;  %v2325_v10 = vadd.f32 %v3400_v60, %v2246_v59 }
 0x296   : > { %3405 = vpow2.f32 %v2179_v47 }
 0x297   : > { %v2175_v63 = vmul.f32 1.442695, %v2114_v4  ;;  %3407 = vlog2.f32 %v2325_v10 }
 0x298   : > { %3409 = vlog2.f32 %v2321_v34  ;;  %2504 = vperm.xlu0 %3283, %v2418_v29   ;;  %v4645_v29 = vld [vmem:[#allocation4_spill] sm:$0xff] }
 0x299   : > { %3411 = vpow2.f32 %v2175_v63  ;;  %v2440_v0 = vpop.permute.xlu2 %2439  ;;  %v3404_v51 = vpop.eup %3403 }
 0x29a   : > { %v2597_v57 = vsub.f32 %v3847_v24, %v2440_v0  ;;  %3413 = vpow2.f32 %v1927_v14  ;;  %v2364_v12 = vmul.f32 0.6931472, %v3404_v51  ;;  %v4646_v14 = vld [vmem:[#allocation8_spill] sm:$0xff] }
 0x29b   : > { %3415 = vpow2.f32 %v1923_v30 }
 0x29c   : > { %v3406_v27 = vpop.eup %3405  ;;  %2629 = vst.msk [vmem:[%s4436_s12] sm:$0xff] %vm280_vm0, %v2597_v57  ;;  %3417 = vlog2.f32 %v2323_v61  ;;  %v2416_v49 = vadd.f32 %v2364_v12, %v4178_v37  ;;  %v4647_v37 = vld [vmem:[#allocation6_spill] sm:$0xff] }
 0x29d   : > { %v3408_v16 = vpop.eup %3407  ;;  %2275 = vrot.lane.b32.xlu1 %v3406_v27, %s3506_s5  ;;  %3419 = vpow2.f32 %v1931_v7  ;;  %v1879_v0 = vsub.f32 %v4080_v13, %v4647_v37 }
 0x29e   : > { %v3410_v5 = vpop.eup %3409  ;;  %v2374_v62 = vmul.f32 0.6931472, %v3408_v16 }
 0x29f   : > { %v3412_v52 = vpop.eup %3411  ;;  %v2366_v60 = vmul.f32 0.6931472, %v3410_v5 }
 0x2a0   : > { %2271 = vrot.lane.b32.xlu2 %v3412_v52, %s3506_s5  ;;  %v2421_v24 = vadd.f32 %v2374_v62, %v4238_v33  ;;  %v3414_v36 = vpop.eup %3413  ;;  %v1881_v33 = vsub.f32 %v4104_v6, %v4646_v14  ;;  %v1929_v62 = vmul.f32 1.442695, %v1879_v0 }
 0x2a1   : > { %v3416_v34 = vpop.eup %3415  ;;  %v2417_v50 = vadd.f32 %v2366_v60, %v4644_v20 }
 0x2a2   : > { %2519 = vperm.xlu0 %3283, %v2421_v24   ;;  %v2248_v9 = vpop.permute.xlu2 %2247  ;;  %v3418_v59 = vpop.eup %3417  ;;  %v1933_v61 = vmul.f32 1.442695, %v1881_v33  ;;  %v4650_v33 = vld [vmem:[#allocation7_spill] sm:$0xff] }
 0x2a3   : > { %v2326_v47 = vadd.f32 %v3414_v36, %v2248_v9  ;;  %v2370_v30 = vmul.f32 0.6931472, %v3418_v59  ;;  %v3420_v57 = vpop.eup %3419  ;;  %v4648_v36 = vld [vmem:[#allocation3_spill] sm:$0xff]  ;;  %v4649_v59 = vld [vmem:[#allocation10_spill] sm:$0xff] }
 0x2a4   : > { %v2244_v44 = vpop.permute.xlu0 %2243  ;;  %v2450_v4 = vpop.permute.xlu1 %2449 }
 0x2a5   : > { %v2324_v10 = vadd.f32 %v3416_v34, %v2244_v44  ;;  %v2599_v63 = vsub.f32 %v4645_v29, %v2450_v4  ;;  %2494 = vperm.xlu1 %3284, %v2416_v49   ;;  %3421 = vlog2.f32 %v2326_v47  ;;  %v2419_v51 = vadd.f32 %v2370_v30, %v4214_v38 }
 0x2a6   : > { %v1883_v44 = vsub.f32 %v4128_v15, %v4649_v59 }
 0x2a7   : > { %3423 = vlog2.f32 %v2324_v10  ;;  %2631 = vst.msk [vmem:[%s4436_s12 + $0x10] sm:$0xff] %vm280_vm0, %v2599_v63 }
 0x2a8   : > { %2499 = vperm.xlu2 %3285, %v2417_v50   ;;  %3425 = vpow2.f32 %v1933_v61  ;;  %v1882_v50 = vsub.f32 %v4116_v41, %v4650_v33 }
 0x2aa   : > { %v1935_v61 = vmul.f32 1.442695, %v1882_v50 }
 0x2ab   : > { %v3422_v27 = vpop.eup %3421 }
 0x2ac   : > { %v2252_v16 = vpop.permute.xlu1 %2251  ;;  %v2455_v11 = vpop.permute.xlu2 %2454  ;;  %v2376_v24 = vmul.f32 0.6931472, %v3422_v27 }
 0x2ad   : > { %v3424_v5 = vpop.eup %3423  ;;  %v2328_v20 = vadd.f32 %v3420_v57, %v2252_v16  ;;  %v2600_v52 = vsub.f32 %v3881_v23, %v2455_v11  ;;  %2509 = vperm.xlu1 %3284, %v2419_v51   ;;  %v4651_v51 = vld [vmem:[#allocation11_spill] sm:$0xff] }
 0x2ae   : > { %v2372_v12 = vmul.f32 0.6931472, %v3424_v5  ;;  %v2445_v7 = vpop.permute.xlu0 %2444  ;;  %v2422_v9 = vadd.f32 %v2376_v24, %v4259_v55  ;;  %v3426_v34 = vpop.eup %3425  ;;  %v1937_v55 = vmul.f32 1.442695, %v1883_v44  ;;  %v1884_v27 = vsub.f32 %v4140_v8, %v4651_v51 }
 0x2af   : > { %3427 = vlog2.f32 %v2328_v20  ;;  %2632 = vst.msk [vmem:[%s4436_s12 + $0x18] sm:$0xff] %vm280_vm0, %v2600_v52  ;;  %v2598_v60 = vsub.f32 %v4648_v36, %v2445_v7 }
 0x2b0   : > { %v2420_v38 = vadd.f32 %v2372_v12, %v4228_v21  ;;  %3429 = vpow2.f32 %v1929_v62  ;;  %v1939_v52 = vmul.f32 1.442695, %v1884_v27 }
 0x2b1   : > { %2630 = vst.msk [vmem:[%s4436_s12 + $0x8] sm:$0xff] %vm280_vm0, %v2598_v60 }
 0x2b2   : > { %2514 = vperm.xlu2 %3285, %v2420_v38  }
 0x2b4   : > { %v2254_v23 = vpop.permute.xlu2 %2253 }
 0x2b5   : > { %v3428_v47 = vpop.eup %3427  ;;  %v2329_v49 = vadd.f32 %v3426_v34, %v2254_v23  ;;  %2524 = vperm.xlu1 %3284, %v2422_v9   ;;  %v4652_v9 = vld [vmem:[#allocation9_spill] sm:$0xff] }
 0x2b6   : > { %v2380_v4 = vmul.f32 0.6931472, %v3428_v47  ;;  %v3430_v10 = vpop.eup %3429  ;;  %v2250_v29 = vpop.permute.xlu0 %2249  ;;  %v1885_v34 = vsub.f32 %v4152_v18, %v4652_v9 }
 0x2b7   : > { %3431 = vlog2.f32 %v2329_v49  ;;  %v2327_v63 = vadd.f32 %v3430_v10, %v2250_v29 }
 0x2b8   : > { %v2424_v21 = vadd.f32 %v2380_v4, %v4266_v58  ;;  %v1941_v49 = vmul.f32 1.442695, %v1885_v34  ;;  %v4653_v4 = vld [vmem:[#allocation13_spill] sm:$0xff] }
 0x2b9   : > { %3433 = vlog2.f32 %v2327_v63 }
 0x2ba   : > { %2534 = vperm.xlu0 %3283, %v2424_v21   ;;  %3435 = vpow2.f32 %v1937_v55 }
 0x2bb   : > { %3437 = vpow2.f32 %v1935_v61 }
 0x2bc   : > { %v2465_v30 = vpop.permute.xlu1 %2464  ;;  %3439 = vpow2.f32 %v1939_v52 }
 0x2bd   : > { %v3432_v0 = vpop.eup %3431  ;;  %v2602_v57 = vsub.f32 %v3903_v1, %v2465_v30 }
 0x2be   : > { %v2382_v16 = vmul.f32 0.6931472, %v3432_v0 }
 0x2bf   : > { %2634 = vst.msk [vmem:[%s4436_s12 + $0x28] sm:$0xff] %vm280_vm0, %v2602_v57  ;;  %v2460_v58 = vpop.permute.xlu0 %2459  ;;  %v3434_v11 = vpop.eup %3433 }
 0x2c0   : > { %v2425_v5 = vadd.f32 %v2382_v16, %v4646_v14  ;;  %v2601_v62 = vsub.f32 %v3887_v39, %v2460_v58  ;;  %v2378_v20 = vmul.f32 0.6931472, %v3434_v11  ;;  %v3436_v12 = vpop.eup %3435  ;;  %v4654_v16 = vld [vmem:[#allocation14_spill] sm:$0xff] }
 0x2c1   : > { %v3438_v14 = vpop.eup %3437 }
 0x2c2   : > { %2633 = vst.msk [vmem:[%s4436_s12 + $0x20] sm:$0xff] %vm280_vm0, %v2601_v62  ;;  %2539 = vperm.xlu1 %3284, %v2425_v5   ;;  %v2423_v1 = vadd.f32 %v2378_v20, %v4647_v37  ;;  %v3440_v37 = vpop.eup %3439 }
 0x2c4   : > { %v2258_v24 = vpop.permute.xlu1 %2257  ;;  %v2470_v7 = vpop.permute.xlu2 %2469  ;;  %2529 = vperm.xlu2 %3285, %v2423_v1  }
 0x2c5   : > { %v2331_v36 = vadd.f32 %v3436_v12, %v2258_v24  ;;  %v2603_v60 = vsub.f32 %v3913_v19, %v2470_v7  ;;  %v1886_v19 = vsub.f32 %v4169_v35, %v4653_v4  ;;  %v4655_v24 = vld [vmem:[#allocation12_spill] sm:$0xff] }
 0x2c6   : > { %v1888_v7 = vsub.f32 %v4193_v46, %v4655_v24 }
 0x2c7   : > { %3441 = vlog2.f32 %v2331_v36  ;;  %2635 = vst.msk [vmem:[%s4436_s12 + $0x30] sm:$0xff] %vm280_vm0, %v2603_v60  ;;  %v2256_v39 = vpop.permute.xlu0 %2255  ;;  %v1943_v30 = vmul.f32 1.442695, %v1886_v19 }
 0x2c8   : > { %v2330_v38 = vadd.f32 %v3438_v14, %v2256_v39  ;;  %v1947_v60 = vmul.f32 1.442695, %v1888_v7 }
 0x2ca   : > { %3443 = vlog2.f32 %v2330_v38  ;;  %v4656_v38 = vld [vmem:[#allocation16_spill] sm:$0xff] }
 0x2cb   : > { %v1889_v34 = vsub.f32 %v4205_v28, %v4656_v38 }
 0x2cc   : > { %v2260_v23 = vpop.permute.xlu2 %2259 }
 0x2cd   : > { %v3442_v47 = vpop.eup %3441  ;;  %v2332_v44 = vadd.f32 %v3440_v37, %v2260_v23  ;;  %v1949_v19 = vmul.f32 1.442695, %v1889_v34 }
 0x2ce   : > { %v2386_v10 = vmul.f32 0.6931472, %v3442_v47 }
 0x2cf   : > { %3445 = vlog2.f32 %v2332_v44  ;;  %v2475_v29 = vpop.permute.xlu0 %2474 }
 0x2d0   : > { %v3444_v21 = vpop.eup %3443  ;;  %v2427_v63 = vadd.f32 %v2386_v10, %v4649_v59  ;;  %v2604_v50 = vsub.f32 %v3931_v48, %v2475_v29  ;;  %3447 = vpow2.f32 %v1941_v49  ;;  %v1887_v59 = vsub.f32 %v4181_v31, %v4654_v16  ;;  %v4657_v29 = vld [vmem:[#allocation17_spill] sm:$0xff] }
 0x2d1   : > { %v2384_v55 = vmul.f32 0.6931472, %v3444_v21  ;;  %3449 = vpow2.f32 %v1943_v30  ;;  %v1890_v21 = vsub.f32 %v4217_v53, %v4657_v29 }
 0x2d2   : > { %2636 = vst.msk [vmem:[%s4436_s12 + $0x38] sm:$0xff] %vm280_vm0, %v2604_v50  ;;  %2549 = vperm.xlu0 %3283, %v2427_v63   ;;  %v1945_v20 = vmul.f32 1.442695, %v1887_v59  ;;  %v4658_v59 = vld [vmem:[#allocation15_spill] sm:$0xff] }
 0x2d3   : > { %v2426_v0 = vadd.f32 %v2384_v55, %v4650_v33 }
 0x2d4   : > { %v2480_v61 = vpop.permute.xlu1 %2479 }
 0x2d5   : > { %v3446_v57 = vpop.eup %3445  ;;  %2544 = vperm.xlu2 %3285, %v2426_v0   ;;  %v2605_v27 = vsub.f32 %v3942_v2, %v2480_v61 }
 0x2d6   : > { %v2388_v58 = vmul.f32 0.6931472, %v3446_v57  ;;  %v3448_v11 = vpop.eup %3447 }
 0x2d7   : > { %2637 = vst.msk [vmem:[%s4436_s12 + $0x40] sm:$0xff] %vm280_vm0, %v2605_v27  ;;  %v2262_v48 = vpop.permute.xlu0 %2261  ;;  %v3450_v33 = vpop.eup %3449 }
 0x2d8   : > { %v2428_v5 = vadd.f32 %v2388_v58, %v4651_v51  ;;  %v2333_v62 = vadd.f32 %v3448_v11, %v2262_v48 }
 0x2da   : > { %3451 = vlog2.f32 %v2333_v62  ;;  %2554 = vperm.xlu1 %3284, %v2428_v5  }
 0x2db   : > { %3453 = vpow2.f32 %v1945_v20 }
 0x2dc   : > { %v2264_v52 = vpop.permute.xlu1 %2263  ;;  %v2485_v1 = vpop.permute.xlu2 %2484 }
 0x2dd   : > { %v2334_v2 = vadd.f32 %v3450_v33, %v2264_v52  ;;  %v2606_v12 = vsub.f32 %v3961_v32, %v2485_v1 }
 0x2df   : > { %3455 = vlog2.f32 %v2334_v2  ;;  %2638 = vst.msk [vmem:[%s4436_s12 + $0x48] sm:$0xff] %vm280_vm0, %v2606_v12  ;;  %v4659_v2 = vld [vmem:[#allocation18_spill] sm:$0xff] }
 0x2e0   : > { %v3452_v36 = vpop.eup %3451  ;;  %3457 = vpow2.f32 %v1947_v60  ;;  %v1892_v12 = vsub.f32 %v4248_v43, %v4659_v2 }
 0x2e1   : > { %v2390_v51 = vmul.f32 0.6931472, %v3452_v36  ;;  %v3454_v39 = vpop.eup %3453 }
 0x2e2   : > { %v1955_v34 = vmul.f32 1.442695, %v1892_v12 }
 0x2e3   : > { %v2429_v14 = vadd.f32 %v2390_v51, %v4652_v9 }
 0x2e4   : > { %v2490_v37 = vpop.permute.xlu0 %2489  ;;  %v2266_v23 = vpop.permute.xlu2 %2265 }
 0x2e5   : > { %v3456_v32 = vpop.eup %3455  ;;  %2559 = vperm.xlu2 %3285, %v2429_v14   ;;  %v2607_v47 = vsub.f32 %v3974_v54, %v2490_v37  ;;  %v2335_v49 = vadd.f32 %v3454_v39, %v2266_v23  ;;  %v1951_v54 = vmul.f32 1.442695, %v1890_v21 }
 0x2e6   : > { %v2392_v44 = vmul.f32 0.6931472, %v3456_v32  ;;  %v3458_v9 = vpop.eup %3457 }
 0x2e7   : > { %2639 = vst.msk [vmem:[%s4436_s12 + $0x50] sm:$0xff] %vm280_vm0, %v2607_v47  ;;  %3459 = vlog2.f32 %v2335_v49 }
 0x2e8   : > { %v2430_v10 = vadd.f32 %v2392_v44, %v4653_v4  ;;  %3461 = vpow2.f32 %v1949_v19  ;;  %v1891_v4 = vsub.f32 %v4231_v25, %v4658_v59 }
 0x2ea   : > { %2564 = vperm.xlu0 %3283, %v2430_v10   ;;  %v1953_v48 = vmul.f32 1.442695, %v1891_v4 }
 0x2ec   : > { %v2268_v63 = vpop.permute.xlu0 %2267 }
 0x2ed   : > { %v3460_v50 = vpop.eup %3459  ;;  %v2336_v55 = vadd.f32 %v3458_v9, %v2268_v63 }
 0x2ee   : > { %v2394_v30 = vmul.f32 0.6931472, %v3460_v50  ;;  %v3462_v61 = vpop.eup %3461 }
 0x2ef   : > { %3463 = vlog2.f32 %v2336_v55 }
 0x2f0   : > { %v2431_v0 = vadd.f32 %v2394_v30, %v4654_v16  ;;  %3465 = vpow2.f32 %v1951_v54 }
 0x2f2   : > { %v2270_v57 = vpop.permute.xlu1 %2269  ;;  %2569 = vperm.xlu1 %3284, %v2431_v0  }
 0x2f3   : > { %v2337_v27 = vadd.f32 %v3462_v61, %v2270_v57 }
 0x2f5   : > { %v3464_v58 = vpop.eup %3463  ;;  %3467 = vlog2.f32 %v2337_v27 }
 0x2f6   : > { %v2396_v11 = vmul.f32 0.6931472, %v3464_v58  ;;  %v3466_v62 = vpop.eup %3465  ;;  %3469 = vpow2.f32 %v1953_v48 }
 0x2f8   : > { %v2432_v5 = vadd.f32 %v2396_v11, %v4655_v24 }
 0x2fa   : > { %2574 = vperm.xlu2 %3285, %v2432_v5   ;;  %v2272_v20 = vpop.permute.xlu2 %2271 }
 0x2fb   : > { %v3468_v33 = vpop.eup %3467  ;;  %v2338_v52 = vadd.f32 %v3466_v62, %v2272_v20 }
 0x2fc   : > { %v2398_v16 = vmul.f32 0.6931472, %v3468_v33  ;;  %v3470_v7 = vpop.eup %3469 }
 0x2fd   : > { %3471 = vlog2.f32 %v2338_v52 }
 0x2fe   : > { %v2433_v1 = vadd.f32 %v2398_v16, %v4656_v38 }
 0x300   : > { %2579 = vperm.xlu0 %3283, %v2433_v1  }
 0x302   : > { %v2274_v36 = vpop.permute.xlu0 %2273  ;;  %v2500_v51 = vpop.permute.xlu2 %2499 }
 0x303   : > { %v3472_v24 = vpop.eup %3471  ;;  %v2339_v60 = vadd.f32 %v3470_v7, %v2274_v36  ;;  %v2609_v14 = vsub.f32 %v4004_v45, %v2500_v51 }
 0x304   : > { %v2400_v39 = vmul.f32 0.6931472, %v3472_v24 }
 0x305   : > { %3473 = vlog2.f32 %v2339_v60  ;;  %2641 = vst.msk [vmem:[%s4436_s12 + $0x60] sm:$0xff] %vm280_vm0, %v2609_v14 }
 0x306   : > { %v2434_v38 = vadd.f32 %v2400_v39, %v4657_v29  ;;  %3475 = vpow2.f32 %v1955_v34 }
 0x308   : > { %2584 = vperm.xlu1 %3284, %v2434_v38  }
 0x30a   : > { %v2505_v37 = vpop.permute.xlu0 %2504 }
 0x30b   : > { %v3474_v23 = vpop.eup %3473  ;;  %v2610_v32 = vsub.f32 %v4015_v3, %v2505_v37 }
 0x30c   : > { %v2402_v47 = vmul.f32 0.6931472, %v3474_v23  ;;  %v2515_v49 = vpop.permute.xlu2 %2514  ;;  %v3476_v19 = vpop.eup %3475 }
 0x30d   : > { %2642 = vst.msk [vmem:[%s4436_s12 + $0x68] sm:$0xff] %vm280_vm0, %v2610_v32  ;;  %v2612_v45 = vsub.f32 %v4042_v56, %v2515_v49 }
 0x30e   : > { %v2435_v44 = vadd.f32 %v2402_v47, %v4658_v59 }
 0x30f   : > { %2644 = vst.msk [vmem:[%s4436_s12 + $0x78] sm:$0xff] %vm280_vm0, %v2612_v45  ;;  %v2276_v10 = vpop.permute.xlu1 %2275 }
 0x310   : > { %v2340_v9 = vadd.f32 %v3476_v19, %v2276_v10  ;;  %2589 = vperm.xlu2 %3285, %v2435_v44  }
 0x312   : > { %3477 = vlog2.f32 %v2340_v9 }
 0x314   : > { %v2520_v29 = vpop.permute.xlu0 %2519 }
 0x315   : > { %v2613_v3 = vsub.f32 %v4056_v17, %v2520_v29 }
 0x317   : > { %2645 = vst.msk [vmem:[%s4436_s12 + $0x80] sm:$0xff] %vm280_vm0, %v2613_v3  ;;  %v2495_v21 = vpop.permute.xlu1 %2494 }
 0x318   : > { %v3478_v63 = vpop.eup %3477  ;;  %v2608_v56 = vsub.f32 %v3993_v22, %v2495_v21 }
 0x319   : > { %v2404_v50 = vmul.f32 0.6931472, %v3478_v63 }
 0x31a   : > { %2640 = vst.msk [vmem:[%s4436_s12 + $0x58] sm:$0xff] %vm280_vm0, %v2608_v56 }
 0x31b   : > { %v2436_v55 = vadd.f32 %v2404_v50, %v4659_v2 }
 0x31d   : > { %2594 = vperm.xlu0 %3283, %v2436_v55  }
 0x31e   : > { %v2530_v30 = vpop.permute.xlu2 %2529 }
 0x31f   : > { %v2510_v54 = vpop.permute.xlu1 %2509  ;;  %v2615_v17 = vsub.f32 %v4080_v13, %v2530_v30 }
 0x320   : > { %v2611_v0 = vsub.f32 %v4028_v26, %v2510_v54 }
 0x321   : > { %2647 = vst.msk [vmem:[%s4436_s12 + $0x90] sm:$0xff] %vm280_vm0, %v2615_v17 }
 0x322   : > { %2643 = vst.msk [vmem:[%s4436_s12 + $0x70] sm:$0xff] %vm280_vm0, %v2611_v0 }
 0x327   : > { %v2525_v22 = vpop.permute.xlu1 %2524 }
 0x328   : > { %v2614_v61 = vsub.f32 %v4068_v42, %v2525_v22 }
 0x32a   : > { %2646 = vst.msk [vmem:[%s4436_s12 + $0x88] sm:$0xff] %vm280_vm0, %v2614_v61 }
 0x32c   : > { %v2535_v57 = vpop.permute.xlu0 %2534 }
 0x32d   : > { %v2616_v27 = vsub.f32 %v4092_v40, %v2535_v57 }
 0x32f   : > { %2648 = vst.msk [vmem:[%s4436_s12 + $0x98] sm:$0xff] %vm280_vm0, %v2616_v27  ;;  %v2545_v13 = vpop.permute.xlu2 %2544 }
 0x330   : > { %v2618_v26 = vsub.f32 %v4116_v41, %v2545_v13 }
 0x332   : > { %2650 = vst.msk [vmem:[%s4436_s12 + $0xa8] sm:$0xff] %vm280_vm0, %v2618_v26 }
 0x334   : > { %v2540_v59 = vpop.permute.xlu1 %2539 }
 0x335   : > { %v2617_v4 = vsub.f32 %v4104_v6, %v2540_v59 }
 0x337   : > { %2649 = vst.msk [vmem:[%s4436_s12 + $0xa0] sm:$0xff] %vm280_vm0, %v2617_v4 }
 0x33f   : > { %v2560_v42 = vpop.permute.xlu2 %2559 }
 0x340   : > { %v2621_v58 = vsub.f32 %v4152_v18, %v2560_v42 }
 0x342   : > { %2653 = vst.msk [vmem:[%s4436_s12 + $0xc0] sm:$0xff] %vm280_vm0, %v2621_v58 }
 0x344   : > { %v2550_v40 = vpop.permute.xlu0 %2549 }
 0x345   : > { %v2619_v11 = vsub.f32 %v4128_v15, %v2550_v40 }
 0x347   : > { %2651 = vst.msk [vmem:[%s4436_s12 + $0xb0] sm:$0xff] %vm280_vm0, %v2619_v11 }
 0x34c   : > { %v2555_v41 = vpop.permute.xlu1 %2554 }
 0x34d   : > { %v2620_v48 = vsub.f32 %v4140_v8, %v2555_v41 }
 0x34f   : > { %2652 = vst.msk [vmem:[%s4436_s12 + $0xb8] sm:$0xff] %vm280_vm0, %v2620_v48 }
 0x354   : > { %v2575_v6 = vpop.permute.xlu2 %2574 }
 0x355   : > { %v2624_v5 = vsub.f32 %v4193_v46, %v2575_v6 }
 0x357   : > { %2656 = vst.msk [vmem:[%s4436_s12 + $0xd8] sm:$0xff] %vm280_vm0, %v2624_v5 }
 0x35c   : > { %v2565_v18 = vpop.permute.xlu0 %2564 }
 0x35d   : > { %v2622_v62 = vsub.f32 %v4169_v35, %v2565_v18 }
 0x35f   : > { %2654 = vst.msk [vmem:[%s4436_s12 + $0xc8] sm:$0xff] %vm280_vm0, %v2622_v62 }
 0x364   : > { %v2570_v15 = vpop.permute.xlu1 %2569 }
 0x365   : > { %v2623_v20 = vsub.f32 %v4181_v31, %v2570_v15 }
 0x367   : > { %2655 = vst.msk [vmem:[%s4436_s12 + $0xd0] sm:$0xff] %vm280_vm0, %v2623_v20 }
 0x36a   : > { %v2590_v8 = vpop.permute.xlu2 %2589 }
 0x36b   : > { %v2627_v33 = vsub.f32 %v4231_v25, %v2590_v8 }
 0x36d   : > { %2659 = vst.msk [vmem:[%s4436_s12 + $0xf0] sm:$0xff] %vm280_vm0, %v2627_v33 }
 0x372   : > { %v2580_v46 = vpop.permute.xlu0 %2579 }
 0x373   : > { %v2625_v52 = vsub.f32 %v4205_v28, %v2580_v46 }
 0x375   : > { %2657 = vst.msk [vmem:[%s4436_s12 + $0xe0] sm:$0xff] %vm280_vm0, %v2625_v52 }
 0x37a   : > { %v2585_v16 = vpop.permute.xlu1 %2584 }
 0x37b   : > { %v2626_v35 = vsub.f32 %v4217_v53, %v2585_v16 }
 0x37d   : > { %2658 = vst.msk [vmem:[%s4436_s12 + $0xe8] sm:$0xff] %vm280_vm0, %v2626_v35 }
 0x38f   : > { %v2595_v1 = vpop.permute.xlu0 %2594 }
 0x390   : > { %v2628_v31 = vsub.f32 %v4248_v43, %v2595_v1 }
 0x392   : > { %2660 = vst.msk [vmem:[%s4436_s12 + $0xf8] sm:$0xff] %vm280_vm0, %v2628_v31 }
 0x393 PF: > { %s14_s17 = sadd.s32 1, %s3502_s17   ;;  %s4660_s15 = smov %s3498_s16 }
 0x394   : > { %p11_p5 = scmp.ge.s32.totalorder %s14_s17, 4   ;;  %s4661_s16 = smov %s4663_s18 }
 0x396   :  { %13 = sbr.rel (!%p11_p5) target bundleno = 2 (0x2), region = 80 }

</bundles_post_ra>
